<compile_context>
chip_gen: v7x
topology: tpu7x:2x2x1
jax: 0.10.0
libtpu: 0.0.40
codegen_flags: <defaults>
</compile_context>

<pallas_src>
import numpy as np
import jax
import jax.numpy as jnp
from jax.experimental import pallas as pl
from jax.experimental.pallas import tpu as pltpu

GROUP_NUM = 16
EPS = 1e-10          # module's self.eps
BN_EPS = 1e-5        # nn.BatchNorm2d default eps


def init_params(key, c=256, c_in2=128, c_out=384):
    """Deterministic synthetic parameters with the shapes implied by EFC_block.__init__."""
    ks = list(jax.random.split(key, 20))

    def nw(k, shape, scale=0.05):
        return jax.random.normal(k, shape, jnp.float32) * scale

    p = {}
    p["w_match"] = nw(ks[0], (c_in2, c));  p["b_match"] = nw(ks[1], (1, c))     # conv_match 128->256
    p["w1"] = nw(ks[2], (c, c));           p["b1"] = nw(ks[3], (1, c))          # conv1
    p["w2"] = nw(ks[4], (c, c));           p["b2"] = nw(ks[5], (1, c))          # conv2
    p["w4g"] = nw(ks[6], (c, 1));          p["b4g"] = nw(ks[7], (1, 1))         # conv4_gobal c->1
    p["w_dw"] = nw(ks[8], (3, 3, c));      p["b_dw"] = nw(ks[9], (1, c))        # dwconv 3x3 depthwise
    p["w3"] = nw(ks[10], (c, c));          p["b3"] = nw(ks[11], (1, c))         # conv3
    p["w_gate"] = nw(ks[12], (c, c));      p["b_gate"] = nw(ks[13], (1, c))     # gate_genator conv
    p["w4"] = nw(ks[14], (c, c));          p["b4"] = nw(ks[15], (1, c))         # conv4
    p["w_down"] = nw(ks[16], (c, c_out));  p["b_down"] = nw(ks[17], (1, c_out)) # conv_down 256->384
    p["gamma"] = jax.random.normal(ks[18], (1, c), jnp.float32)                 # nn.Parameter(randn(c,1,1))
    p["beta"] = jnp.zeros((1, c), jnp.float32)                                  # nn.Parameter(zeros(c,1,1))

    # TODO(synk): BatchNorm2d is folded in eval mode (running stats -> per-channel
    # scale/shift); train-mode batch statistics would need a cross-batch pass.
    bn_scale = (1.0 + BN_EPS) ** -0.5   # weight=1, bias=0, running_mean=0, running_var=1
    p["bn_scale"] = jnp.full((1, c), bn_scale, jnp.float32)
    p["bn_shift"] = jnp.zeros((1, c), jnp.float32)
    return p


def efc_block_forward(x1, x2, p, *, data_format="NCHW", out_dtype=jnp.float32):
    f32, bf16 = jnp.float32, jnp.bfloat16

    if data_format == "NCHW":
        N, C, H, W = x1.shape
        C_in2 = x2.shape[1]
        # TODO(synk): keep the surrounding network NHWC (+bf16) end-to-end to avoid these
        # two wrapper transposes (each is a full HBM round trip of the activations).
        x1f = jnp.transpose(x1, (0, 2, 3, 1))
        x2f = jnp.transpose(x2, (0, 2, 3, 1))
    else:  # "NHWC"
        N, H, W, C = x1.shape
        C_in2 = x2.shape[-1]
        x1f, x2f = x1, x2

    HW = H * W
    C_OUT = p["w_down"].shape[1]
    assert HW % 8 == 0 and C % 128 == 0 and C_in2 % 128 == 0
    assert C % GROUP_NUM == 0 and H >= 2 and W >= 2

    # activations in bf16 (full-rate MXU, half the HBM traffic); all stats stay in f32
    x1f = x1f.reshape(N, HW, C).astype(bf16)
    x2f = x2f.reshape(N, HW, C_in2).astype(bf16)

    # ---- weight prep: fold conv_match into conv2, bf16 matmul weights, f32 the rest ----
    w2f = (p["w_match"] @ p["w2"]).astype(bf16)            # (C_in2, C)
    b2f = (p["b_match"] @ p["w2"] + p["b2"]).astype(f32)   # (1, C)

    grp_id = np.arange(C) // (C // GROUP_NUM)
    gsc = jnp.asarray((grp_id[None, :] == np.arange(GROUP_NUM)[:, None]).astype(np.float32))  # (16, C)
    gga = gsc.T                                                                               # (C, 16)

    weights = [
        p["w1"].astype(bf16), p["b1"].astype(f32),
        w2f, b2f,
        p["bn_scale"].astype(f32), p["bn_shift"].astype(f32),
        p["w4g"].T.astype(f32), p["b4g"].astype(f32),          # conv4_gobal as a VPU lane-reduce
        p["gamma"].astype(f32), p["beta"].astype(f32),
        p["w_dw"].reshape(9, C).astype(f32), p["b_dw"].astype(f32),
        p["w3"].astype(bf16), p["b3"].astype(f32),
        p["w_gate"].astype(bf16), p["b_gate"].astype(f32),
        p["w4"].astype(bf16), p["b4"].astype(f32),
        p["w_down"].astype(bf16), p["b_down"].astype(f32),
        gsc, gga,
    ]

    n_g = float((C // GROUP_NUM) * HW)      # elements per group for the group statistics
    w_pow2 = (W & (W - 1)) == 0             # pick a guaranteed-supported col-index path

    def kernel(x1_ref, x2_ref,
               w1_ref, b1_ref, w2f_ref, b2f_ref, bns_ref, bnb_ref,
               w4g_ref, b4g_ref, gam_ref, bet_ref, wdw_ref, bdw_ref,
               w3_ref, b3_ref, wg_ref, bg_ref, w4_ref, b4_ref,
               wdn_ref, bdn_ref, gsc_ref, gga_ref, out_ref):
        x1v = x1_ref[...].reshape(HW, C)               # bf16
        x2v = x2_ref[...].reshape(HW, C_in2)           # bf16

        def pw(x, w_ref, b_ref):                       # 1x1 conv == channel matmul + bias
            return jnp.dot(x, w_ref[...], preferred_element_type=f32) + b_ref[...]

        g1 = pw(x1v, w1_ref, b1_ref)                   # conv1                      (HW, C) f32
        g2 = pw(x2v, w2f_ref, b2f_ref)                 # conv2 . conv_match (folded in wrapper)
        xg = g1 + g2                                   # X_GOBAL

        # ---- per-image reductions reused everywhere (f32 accumulation) ----
        ch_sum = jnp.sum(xg, axis=0, keepdims=True)                # (1, C)
        sq_sum = jnp.sum(xg * xg, axis=0, keepdims=True)           # (1, C)
        gap = ch_sum * (1.0 / HW)                                  # pre-sigmoid GAP(X_GOBAL)

        # group statistics of X_GOBAL (group_num=16): one-pass mean / unbiased std
        gga_m, gsc_m = gga_ref[...], gsc_ref[...]
        g_mean = jnp.dot(ch_sum, gga_m, preferred_element_type=f32) * (1.0 / n_g)    # (1, 16)
        g_sq = jnp.dot(sq_sum, gga_m, preferred_element_type=f32)                    # (1, 16)
        g_var = jnp.maximum(g_sq - n_g * g_mean * g_mean, 0.0) * (1.0 / (n_g - 1.0)) # torch .std(): n-1
        mean_c = jnp.dot(g_mean, gsc_m, preferred_element_type=f32)                  # (1, C)
        std_c = jnp.dot(jnp.sqrt(g_var), gsc_m, preferred_element_type=f32)          # (1, C)
        gn_scale = gam_ref[...] / (std_c + EPS)        # exact divide on a (1,C): ~free
        gn_shift = bet_ref[...] - mean_c * gn_scale

        # ---- up/low split: sigmoid(GAP) >= sigmoid(bn(g))  <=>  GAP >= bn(g) ----
        bn_s, bn_b = bns_ref[...], bnb_ref[...]
        m1 = gap >= (g1 * bn_s + bn_b)                 # == (reweights >= weight_1)
        m2 = gap >= (g2 * bn_s + bn_b)                 # == (reweights >= weight_2)
        x_up = jnp.where(m1, xg, 0.0) + jnp.where(m2, xg, 0.0)
        x_low = (xg + xg) - x_up                       # (< is the exact complement of >=)
        pooled_low = jnp.sum(x_low, axis=0, keepdims=True) * (1.0 / HW)   # (1, C) f32
        x_up = x_up.astype(bf16)                       # conv4 input only needs bf16

        # ---- X_ = sigmoid(conv4_gobal(X_GOBAL)) * X_GOBAL, group-normalized -> x_gui ----
        # NOTE: the "interact" branch applies softmax over a size-1 axis (== 1.0), so the
        # PyTorch `out` equals X_ exactly and the interact convs never affect the output.
        x_c4 = jnp.sum(xg * w4g_ref[...], axis=-1, keepdims=True) + b4g_ref[...]     # (HW, 1)
        acc = jax.nn.sigmoid(x_c4) * xg * gn_scale + gn_shift          # x_gui    (HW, C) f32

        # ---- conv4 on x_up ----
        acc = acc + pw(x_up, w4_ref, b4_ref)

        # ---- gate_genator(x_low): GAP -> 1x1 conv -> ReLU -> channel softmax ----
        gate = jnp.maximum(pw(pooled_low.astype(bf16), wg_ref, bg_ref), 0.0)          # (1, C)
        gate = jnp.exp(gate - jnp.max(gate, axis=-1, keepdims=True))
        gate = gate / jnp.sum(gate, axis=-1, keepdims=True)            # exact (1,1) divide

        # ---- depthwise 3x3 conv (padding=1) on x_low: register-resident 9-tap ----
        # boundary masks from an in-kernel iota (no HBM/VMEM mask tensors)
        pos = jax.lax.broadcasted_iota(jnp.int32, (HW, 1), 0)
        col = (pos & (W - 1)) if w_pow2 else (pos % W)
        m_wl = (col >= 1).astype(f32)                  # x[h, w-1] in range
        m_wr = (col <= W - 2).astype(f32)              # x[h, w+1] in range
        m_ht = (pos >= W).astype(f32)                  # x[h-1, w] in range (row >= 1)
        m_hb = (pos < HW - W).astype(f32)              # x[h+1, w] in range (row <= H-2)

        wdw = wdw_ref[...]                             # (9, C), row-major (kh, kw)
        xl_m1 = pltpu.roll(x_low, 1, axis=0) * m_wl          # x[h, w-1]
        xl_p1 = pltpu.roll(x_low, HW - 1, axis=0) * m_wr     # x[h, w+1]

        def hrow(j):                                   # horizontal taps of kernel row j
            return (xl_m1 * wdw[3 * j:3 * j + 1, :]
                    + x_low * wdw[3 * j + 1:3 * j + 2, :]
                    + xl_p1 * wdw[3 * j + 2:3 * j + 3, :])

        dwc = hrow(1) + bdw_ref[...]                                   # same row
        dwc = dwc + pltpu.roll(hrow(0), W, axis=0) * m_ht              # row above
        dwc = dwc + pltpu.roll(hrow(2), HW - W, axis=0) * m_hb         # row below

        # ---- conv3(dwconv(x_low)) * gate, then conv_down ----
        acc = acc + pw(dwc.astype(bf16), w3_ref, b3_ref) * gate
        out = pw(acc.astype(bf16), wdn_ref, bdn_ref)                   # conv_down  (HW, C_OUT)
        out_ref[...] = out.astype(out_ref.dtype).reshape(1, HW, C_OUT)

    def full_spec(a):
        nd = a.ndim
        return pl.BlockSpec(a.shape, lambda n, _nd=nd: (0,) * _nd)

    in_specs = [
        pl.BlockSpec((1, HW, C), lambda n: (n, 0, 0)),
        pl.BlockSpec((1, HW, C_in2), lambda n: (n, 0, 0)),
    ] + [full_spec(w) for w in weights]

    out = pl.pallas_call(
        kernel,
        out_shape=jax.ShapeDtypeStruct((N, HW, C_OUT), out_dtype),
        grid_spec=pltpu.PrefetchScalarGridSpec(
            num_scalar_prefetch=0,
            grid=(N,),                       # one image per step -> DMA/compute overlap
            in_specs=in_specs,
            out_specs=pl.BlockSpec((1, HW, C_OUT), lambda n: (n, 0, 0)),
        ),
        compiler_params=pltpu.CompilerParams(
            dimension_semantics=("parallel",),
            vmem_limit_bytes=48 * 1024 * 1024,   # above 16/32 MiB scoped defaults, below v7x physical
        ),
    )(x1f, x2f, *weights)

    out = out.reshape(N, H, W, C_OUT)
    if data_format == "NCHW":
        out = jnp.transpose(out, (0, 3, 1, 2))
    return out


if __name__ == "__main__":
    key = jax.random.PRNGKey(0)
    k1, k2, kp = jax.random.split(key, 3)

    # EFC_block's hard-coded conv_match (128->256) / conv_down (256->384) imply c1 = 256.
    N, H, W = 2, 8, 8
    x1 = jax.random.normal(k1, (N, 256, H, W), jnp.float32)
    x2 = jax.random.normal(k2, (N, 128, H, W), jnp.float32)

    params = init_params(kp)
    y = efc_block_forward(x1, x2, params)
    jax.block_until_ready(y)
    assert y.shape == (N, 384, H, W) and y.dtype == jnp.float32
    assert bool(jnp.isfinite(y).all())
    print("KERNEL_OK")
</pallas_src>

<mosaic_0001>
module attributes {stable_mosaic.version = 11 : i64} {
  func.func @kernel(%arg0: i32, %arg1: memref<1x64x256xbf16, #tpu.memory_space<vmem>>, %arg2: memref<1x64x128xbf16, #tpu.memory_space<vmem>>, %arg3: memref<256x256xbf16, #tpu.memory_space<vmem>>, %arg4: memref<1x256xf32, #tpu.memory_space<vmem>>, %arg5: memref<128x256xbf16, #tpu.memory_space<vmem>>, %arg6: memref<1x256xf32, #tpu.memory_space<vmem>>, %arg7: memref<1x256xf32, #tpu.memory_space<vmem>>, %arg8: memref<1x256xf32, #tpu.memory_space<vmem>>, %arg9: memref<1x256xf32, #tpu.memory_space<vmem>>, %arg10: memref<1x1xf32, #tpu.memory_space<vmem>>, %arg11: memref<1x256xf32, #tpu.memory_space<vmem>>, %arg12: memref<1x256xf32, #tpu.memory_space<vmem>>, %arg13: memref<9x256xf32, #tpu.memory_space<vmem>>, %arg14: memref<1x256xf32, #tpu.memory_space<vmem>>, %arg15: memref<256x256xbf16, #tpu.memory_space<vmem>>, %arg16: memref<1x256xf32, #tpu.memory_space<vmem>>, %arg17: memref<256x256xbf16, #tpu.memory_space<vmem>>, %arg18: memref<1x256xf32, #tpu.memory_space<vmem>>, %arg19: memref<256x256xbf16, #tpu.memory_space<vmem>>, %arg20: memref<1x256xf32, #tpu.memory_space<vmem>>, %arg21: memref<256x384xbf16, #tpu.memory_space<vmem>>, %arg22: memref<1x384xf32, #tpu.memory_space<vmem>>, %arg23: memref<16x256xf32, #tpu.memory_space<vmem>>, %arg24: memref<256x16xf32, #tpu.memory_space<vmem>>, %arg25: memref<1x64x384xf32, #tpu.memory_space<vmem>>) attributes {dimension_semantics = [#tpu.dimension_semantics<parallel>], iteration_bounds = array<i64: 2>, scalar_prefetch = 0 : i64, scratch_operands = 0 : i64, tpu.core_type = #tpu.core_type<tc>, window_params = [{transform_indices = @transform_0, window_bounds = array<i64: 1, 64, 256>}, {transform_indices = @transform_1, window_bounds = array<i64: 1, 64, 128>}, {pipeline_mode = #tpu.pipeline_mode<synchronous>, transform_indices = @transform_2, window_bounds = array<i64: 256, 256>}, {pipeline_mode = #tpu.pipeline_mode<synchronous>, transform_indices = @transform_3, window_bounds = array<i64: 1, 256>}, {pipeline_mode = #tpu.pipeline_mode<synchronous>, transform_indices = @transform_4, window_bounds = array<i64: 128, 256>}, {pipeline_mode = #tpu.pipeline_mode<synchronous>, transform_indices = @transform_5, window_bounds = array<i64: 1, 256>}, {pipeline_mode = #tpu.pipeline_mode<synchronous>, transform_indices = @transform_6, window_bounds = array<i64: 1, 256>}, {pipeline_mode = #tpu.pipeline_mode<synchronous>, transform_indices = @transform_7, window_bounds = array<i64: 1, 256>}, {pipeline_mode = #tpu.pipeline_mode<synchronous>, transform_indices = @transform_8, window_bounds = array<i64: 1, 256>}, {pipeline_mode = #tpu.pipeline_mode<synchronous>, transform_indices = @transform_9, window_bounds = array<i64: 1, 1>}, {pipeline_mode = #tpu.pipeline_mode<synchronous>, transform_indices = @transform_10, window_bounds = array<i64: 1, 256>}, {pipeline_mode = #tpu.pipeline_mode<synchronous>, transform_indices = @transform_11, window_bounds = array<i64: 1, 256>}, {pipeline_mode = #tpu.pipeline_mode<synchronous>, transform_indices = @transform_12, window_bounds = array<i64: 9, 256>}, {pipeline_mode = #tpu.pipeline_mode<synchronous>, transform_indices = @transform_13, window_bounds = array<i64: 1, 256>}, {pipeline_mode = #tpu.pipeline_mode<synchronous>, transform_indices = @transform_14, window_bounds = array<i64: 256, 256>}, {pipeline_mode = #tpu.pipeline_mode<synchronous>, transform_indices = @transform_15, window_bounds = array<i64: 1, 256>}, {pipeline_mode = #tpu.pipeline_mode<synchronous>, transform_indices = @transform_16, window_bounds = array<i64: 256, 256>}, {pipeline_mode = #tpu.pipeline_mode<synchronous>, transform_indices = @transform_17, window_bounds = array<i64: 1, 256>}, {pipeline_mode = #tpu.pipeline_mode<synchronous>, transform_indices = @transform_18, window_bounds = array<i64: 256, 256>}, {pipeline_mode = #tpu.pipeline_mode<synchronous>, transform_indices = @transform_19, window_bounds = array<i64: 1, 256>}, {pipeline_mode = #tpu.pipeline_mode<synchronous>, transform_indices = @transform_20, window_bounds = array<i64: 256, 384>}, {pipeline_mode = #tpu.pipeline_mode<synchronous>, transform_indices = @transform_21, window_bounds = array<i64: 1, 384>}, {pipeline_mode = #tpu.pipeline_mode<synchronous>, transform_indices = @transform_22, window_bounds = array<i64: 16, 256>}, {pipeline_mode = #tpu.pipeline_mode<synchronous>, transform_indices = @transform_23, window_bounds = array<i64: 256, 16>}, {transform_indices = @transform_24, window_bounds = array<i64: 1, 64, 384>}]} {
    %c0 = arith.constant 0 : index
    %c0_0 = arith.constant 0 : index
    %c0_1 = arith.constant 0 : index
    %0 = vector.load %arg1[%c0, %c0_0, %c0_1] : memref<1x64x256xbf16, #tpu.memory_space<vmem>>, vector<1x64x256xbf16>
    %1 = vector.shape_cast %0 : vector<1x64x256xbf16> to vector<64x256xbf16>
    %c0_2 = arith.constant 0 : index
    %c0_3 = arith.constant 0 : index
    %c0_4 = arith.constant 0 : index
    %2 = vector.load %arg2[%c0_2, %c0_3, %c0_4] : memref<1x64x128xbf16, #tpu.memory_space<vmem>>, vector<1x64x128xbf16>
    %3 = vector.shape_cast %2 : vector<1x64x128xbf16> to vector<64x128xbf16>
    %c0_5 = arith.constant 0 : index
    %c0_6 = arith.constant 0 : index
    %4 = vector.load %arg3[%c0_5, %c0_6] : memref<256x256xbf16, #tpu.memory_space<vmem>>, vector<256x256xbf16>
    %cst = arith.constant dense<0.000000e+00> : vector<64x256xf32>
    %5 = tpu.matmul %1, %4, %cst {dimension_numbers = #tpu.dot_dimension_numbers<[1], [0], [0], [1], [0, 0, 1, 1], [], []>} : vector<64x256xbf16>, vector<256x256xbf16>, vector<64x256xf32> -> vector<64x256xf32>
    %c0_7 = arith.constant 0 : index
    %c0_8 = arith.constant 0 : index
    %6 = vector.load %arg4[%c0_7, %c0_8] : memref<1x256xf32, #tpu.memory_space<vmem>>, vector<1x256xf32>
    %7 = vector.broadcast %6 : vector<1x256xf32> to vector<64x256xf32>
    %8 = arith.addf %5, %7 : vector<64x256xf32>
    %c0_9 = arith.constant 0 : index
    %c0_10 = arith.constant 0 : index
    %9 = vector.load %arg5[%c0_9, %c0_10] : memref<128x256xbf16, #tpu.memory_space<vmem>>, vector<128x256xbf16>
    %cst_11 = arith.constant dense<0.000000e+00> : vector<64x256xf32>
    %10 = tpu.matmul %3, %9, %cst_11 {dimension_numbers = #tpu.dot_dimension_numbers<[1], [0], [0], [1], [0, 0, 1, 1], [], []>} : vector<64x128xbf16>, vector<128x256xbf16>, vector<64x256xf32> -> vector<64x256xf32>
    %c0_12 = arith.constant 0 : index
    %c0_13 = arith.constant 0 : index
    %11 = vector.load %arg6[%c0_12, %c0_13] : memref<1x256xf32, #tpu.memory_space<vmem>>, vector<1x256xf32>
    %12 = vector.broadcast %11 : vector<1x256xf32> to vector<64x256xf32>
    %13 = arith.addf %10, %12 : vector<64x256xf32>
    %14 = arith.addf %8, %13 : vector<64x256xf32>
    %cst_14 = arith.constant dense<0.000000e+00> : vector<256xf32>
    %15 = vector.multi_reduction <add>, %14, %cst_14 [0] : vector<64x256xf32> to vector<256xf32>
    %16 = vector.shape_cast %15 : vector<256xf32> to vector<1x256xf32>
    %17 = arith.mulf %14, %14 : vector<64x256xf32>
    %cst_15 = arith.constant dense<0.000000e+00> : vector<256xf32>
    %18 = vector.multi_reduction <add>, %17, %cst_15 [0] : vector<64x256xf32> to vector<256xf32>
    %19 = vector.shape_cast %18 : vector<256xf32> to vector<1x256xf32>
    %cst_16 = arith.constant 1.562500e-02 : f32
    %20 = vector.broadcast %cst_16 : f32 to vector<1x256xf32>
    %21 = arith.mulf %16, %20 : vector<1x256xf32>
    %c0_17 = arith.constant 0 : index
    %c0_18 = arith.constant 0 : index
    %22 = vector.load %arg24[%c0_17, %c0_18] : memref<256x16xf32, #tpu.memory_space<vmem>>, vector<256x16xf32>
    %c0_19 = arith.constant 0 : index
    %c0_20 = arith.constant 0 : index
    %23 = vector.load %arg23[%c0_19, %c0_20] : memref<16x256xf32, #tpu.memory_space<vmem>>, vector<16x256xf32>
    %cst_21 = arith.constant dense<0.000000e+00> : vector<1x16xf32>
    %24 = tpu.matmul %16, %22, %cst_21 {dimension_numbers = #tpu.dot_dimension_numbers<[1], [0], [0], [1], [0, 0, 1, 1], [], []>} : vector<1x256xf32>, vector<256x16xf32>, vector<1x16xf32> -> vector<1x16xf32>
    %cst_22 = arith.constant 9.765625E-4 : f32
    %25 = vector.broadcast %cst_22 : f32 to vector<1x16xf32>
    %26 = arith.mulf %24, %25 : vector<1x16xf32>
    %cst_23 = arith.constant dense<0.000000e+00> : vector<1x16xf32>
    %27 = tpu.matmul %19, %22, %cst_23 {dimension_numbers = #tpu.dot_dimension_numbers<[1], [0], [0], [1], [0, 0, 1, 1], [], []>} : vector<1x256xf32>, vector<256x16xf32>, vector<1x16xf32> -> vector<1x16xf32>
    %cst_24 = arith.constant 1.024000e+03 : f32
    %28 = vector.broadcast %cst_24 : f32 to vector<1x16xf32>
    %29 = arith.mulf %28, %26 : vector<1x16xf32>
    %30 = arith.mulf %29, %26 : vector<1x16xf32>
    %31 = arith.subf %27, %30 : vector<1x16xf32>
    %cst_25 = arith.constant 0.000000e+00 : f32
    %32 = vector.broadcast %cst_25 : f32 to vector<1x16xf32>
    %33 = arith.maximumf %31, %32 : vector<1x16xf32>
    %cst_26 = arith.constant 9.77517105E-4 : f32
    %34 = vector.broadcast %cst_26 : f32 to vector<1x16xf32>
    %35 = arith.mulf %33, %34 : vector<1x16xf32>
    %cst_27 = arith.constant dense<0.000000e+00> : vector<1x256xf32>
    %36 = tpu.matmul %26, %23, %cst_27 {dimension_numbers = #tpu.dot_dimension_numbers<[1], [0], [0], [1], [0, 0, 1, 1], [], []>} : vector<1x16xf32>, vector<16x256xf32>, vector<1x256xf32> -> vector<1x256xf32>
    %37 = math.sqrt %35 : vector<1x16xf32>
    %cst_28 = arith.constant dense<0.000000e+00> : vector<1x256xf32>
    %38 = tpu.matmul %37, %23, %cst_28 {dimension_numbers = #tpu.dot_dimension_numbers<[1], [0], [0], [1], [0, 0, 1, 1], [], []>} : vector<1x16xf32>, vector<16x256xf32>, vector<1x256xf32> -> vector<1x256xf32>
    %c0_29 = arith.constant 0 : index
    %c0_30 = arith.constant 0 : index
    %39 = vector.load %arg11[%c0_29, %c0_30] : memref<1x256xf32, #tpu.memory_space<vmem>>, vector<1x256xf32>
    %cst_31 = arith.constant 1.000000e-10 : f32
    %40 = vector.broadcast %cst_31 : f32 to vector<1x256xf32>
    %41 = arith.addf %38, %40 : vector<1x256xf32>
    %42 = arith.divf %39, %41 : vector<1x256xf32>
    %c0_32 = arith.constant 0 : index
    %c0_33 = arith.constant 0 : index
    %43 = vector.load %arg12[%c0_32, %c0_33] : memref<1x256xf32, #tpu.memory_space<vmem>>, vector<1x256xf32>
    %44 = arith.mulf %36, %42 : vector<1x256xf32>
    %45 = arith.subf %43, %44 : vector<1x256xf32>
    %c0_34 = arith.constant 0 : index
    %c0_35 = arith.constant 0 : index
    %46 = vector.load %arg7[%c0_34, %c0_35] : memref<1x256xf32, #tpu.memory_space<vmem>>, vector<1x256xf32>
    %c0_36 = arith.constant 0 : index
    %c0_37 = arith.constant 0 : index
    %47 = vector.load %arg8[%c0_36, %c0_37] : memref<1x256xf32, #tpu.memory_space<vmem>>, vector<1x256xf32>
    %48 = vector.broadcast %46 : vector<1x256xf32> to vector<64x256xf32>
    %49 = arith.mulf %8, %48 : vector<64x256xf32>
    %50 = vector.broadcast %47 : vector<1x256xf32> to vector<64x256xf32>
    %51 = arith.addf %49, %50 : vector<64x256xf32>
    %52 = vector.broadcast %21 : vector<1x256xf32> to vector<64x256xf32>
    %53 = arith.cmpf oge, %52, %51 : vector<64x256xf32>
    %54 = vector.broadcast %46 : vector<1x256xf32> to vector<64x256xf32>
    %55 = arith.mulf %13, %54 : vector<64x256xf32>
    %56 = vector.broadcast %47 : vector<1x256xf32> to vector<64x256xf32>
    %57 = arith.addf %55, %56 : vector<64x256xf32>
    %58 = vector.broadcast %21 : vector<1x256xf32> to vector<64x256xf32>
    %59 = arith.cmpf oge, %58, %57 : vector<64x256xf32>
    %cst_38 = arith.constant 0.000000e+00 : f32
    %60 = vector.broadcast %cst_38 : f32 to vector<64x256xf32>
    %61 = arith.select %53, %14, %60 : vector<64x256xi1>, vector<64x256xf32>
    %cst_39 = arith.constant 0.000000e+00 : f32
    %62 = vector.broadcast %cst_39 : f32 to vector<64x256xf32>
    %63 = arith.select %59, %14, %62 : vector<64x256xi1>, vector<64x256xf32>
    %64 = arith.addf %61, %63 : vector<64x256xf32>
    %65 = arith.addf %14, %14 : vector<64x256xf32>
    %66 = arith.subf %65, %64 : vector<64x256xf32>
    %cst_40 = arith.constant dense<0.000000e+00> : vector<256xf32>
    %67 = vector.multi_reduction <add>, %66, %cst_40 [0] : vector<64x256xf32> to vector<256xf32>
    %68 = vector.shape_cast %67 : vector<256xf32> to vector<1x256xf32>
    %cst_41 = arith.constant 1.562500e-02 : f32
    %69 = vector.broadcast %cst_41 : f32 to vector<1x256xf32>
    %70 = arith.mulf %68, %69 : vector<1x256xf32>
    %71 = arith.truncf %64 : vector<64x256xf32> to vector<64x256xbf16>
    %c0_42 = arith.constant 0 : index
    %c0_43 = arith.constant 0 : index
    %72 = vector.load %arg9[%c0_42, %c0_43] : memref<1x256xf32, #tpu.memory_space<vmem>>, vector<1x256xf32>
    %73 = vector.broadcast %72 : vector<1x256xf32> to vector<64x256xf32>
    %74 = arith.mulf %14, %73 : vector<64x256xf32>
    %cst_44 = arith.constant dense<0.000000e+00> : vector<64xf32>
    %75 = vector.multi_reduction <add>, %74, %cst_44 [1] : vector<64x256xf32> to vector<64xf32>
    %76 = vector.shape_cast %75 : vector<64xf32> to vector<64x1xf32>
    %c0_45 = arith.constant 0 : index
    %c0_46 = arith.constant 0 : index
    %77 = vector.load %arg10[%c0_45, %c0_46] : memref<1x1xf32, #tpu.memory_space<vmem>>, vector<1x1xf32>
    %78 = vector.broadcast %77 : vector<1x1xf32> to vector<64x1xf32>
    %79 = arith.addf %76, %78 : vector<64x1xf32>
    %80 = arith.negf %79 : vector<64x1xf32>
    %81 = math.exp %80 : vector<64x1xf32>
    %cst_47 = arith.constant 1.000000e+00 : f32
    %82 = vector.broadcast %cst_47 : f32 to vector<64x1xf32>
    %83 = arith.addf %82, %81 : vector<64x1xf32>
    %84 = arith.divf %82, %83 : vector<64x1xf32>
    %85 = vector.broadcast %84 : vector<64x1xf32> to vector<64x256xf32>
    %86 = arith.mulf %85, %14 : vector<64x256xf32>
    %87 = vector.broadcast %42 : vector<1x256xf32> to vector<64x256xf32>
    %88 = arith.mulf %86, %87 : vector<64x256xf32>
    %89 = vector.broadcast %45 : vector<1x256xf32> to vector<64x256xf32>
    %90 = arith.addf %88, %89 : vector<64x256xf32>
    %c0_48 = arith.constant 0 : index
    %c0_49 = arith.constant 0 : index
    %91 = vector.load %arg19[%c0_48, %c0_49] : memref<256x256xbf16, #tpu.memory_space<vmem>>, vector<256x256xbf16>
    %cst_50 = arith.constant dense<0.000000e+00> : vector<64x256xf32>
    %92 = tpu.matmul %71, %91, %cst_50 {dimension_numbers = #tpu.dot_dimension_numbers<[1], [0], [0], [1], [0, 0, 1, 1], [], []>} : vector<64x256xbf16>, vector<256x256xbf16>, vector<64x256xf32> -> vector<64x256xf32>
    %c0_51 = arith.constant 0 : index
    %c0_52 = arith.constant 0 : index
    %93 = vector.load %arg20[%c0_51, %c0_52] : memref<1x256xf32, #tpu.memory_space<vmem>>, vector<1x256xf32>
    %94 = vector.broadcast %93 : vector<1x256xf32> to vector<64x256xf32>
    %95 = arith.addf %92, %94 : vector<64x256xf32>
    %96 = arith.addf %90, %95 : vector<64x256xf32>
    %97 = arith.truncf %70 : vector<1x256xf32> to vector<1x256xbf16>
    %c0_53 = arith.constant 0 : index
    %c0_54 = arith.constant 0 : index
    %98 = vector.load %arg17[%c0_53, %c0_54] : memref<256x256xbf16, #tpu.memory_space<vmem>>, vector<256x256xbf16>
    %cst_55 = arith.constant dense<0.000000e+00> : vector<1x256xf32>
    %99 = tpu.matmul %97, %98, %cst_55 {dimension_numbers = #tpu.dot_dimension_numbers<[1], [0], [0], [1], [0, 0, 1, 1], [], []>} : vector<1x256xbf16>, vector<256x256xbf16>, vector<1x256xf32> -> vector<1x256xf32>
    %c0_56 = arith.constant 0 : index
    %c0_57 = arith.constant 0 : index
    %100 = vector.load %arg18[%c0_56, %c0_57] : memref<1x256xf32, #tpu.memory_space<vmem>>, vector<1x256xf32>
    %101 = arith.addf %99, %100 : vector<1x256xf32>
    %cst_58 = arith.constant 0.000000e+00 : f32
    %102 = vector.broadcast %cst_58 : f32 to vector<1x256xf32>
    %103 = arith.maximumf %101, %102 : vector<1x256xf32>
    %cst_59 = arith.constant dense<0xFF800000> : vector<1xf32>
    %104 = vector.multi_reduction <maximumf>, %103, %cst_59 [1] : vector<1x256xf32> to vector<1xf32>
    %105 = vector.shape_cast %104 : vector<1xf32> to vector<1x1xf32>
    %106 = vector.broadcast %105 : vector<1x1xf32> to vector<1x256xf32>
    %107 = arith.subf %103, %106 : vector<1x256xf32>
    %108 = math.exp %107 : vector<1x256xf32>
    %cst_60 = arith.constant dense<0.000000e+00> : vector<1xf32>
    %109 = vector.multi_reduction <add>, %108, %cst_60 [1] : vector<1x256xf32> to vector<1xf32>
    %110 = vector.shape_cast %109 : vector<1xf32> to vector<1x1xf32>
    %111 = vector.broadcast %110 : vector<1x1xf32> to vector<1x256xf32>
    %112 = arith.divf %108, %111 : vector<1x256xf32>
    %113 = tpu.iota {dimensions = array<i32: 0>} : vector<64x1xi32>
    %c7_i32 = arith.constant 7 : i32
    %114 = vector.broadcast %c7_i32 : i32 to vector<64x1xi32>
    %115 = arith.andi %113, %114 : vector<64x1xi32>
    %c1_i32 = arith.constant 1 : i32
    %116 = vector.broadcast %c1_i32 : i32 to vector<64x1xi32>
    %117 = arith.cmpi sge, %115, %116 : vector<64x1xi32>
    %118 = arith.extui %117 : vector<64x1xi1> to vector<64x1xi32>
    %119 = arith.sitofp %118 : vector<64x1xi32> to vector<64x1xf32>
    %c6_i32 = arith.constant 6 : i32
    %120 = vector.broadcast %c6_i32 : i32 to vector<64x1xi32>
    %121 = arith.cmpi sle, %115, %120 : vector<64x1xi32>
    %122 = arith.extui %121 : vector<64x1xi1> to vector<64x1xi32>
    %123 = arith.sitofp %122 : vector<64x1xi32> to vector<64x1xf32>
    %c8_i32 = arith.constant 8 : i32
    %124 = vector.broadcast %c8_i32 : i32 to vector<64x1xi32>
    %125 = arith.cmpi sge, %113, %124 : vector<64x1xi32>
    %126 = arith.extui %125 : vector<64x1xi1> to vector<64x1xi32>
    %127 = arith.sitofp %126 : vector<64x1xi32> to vector<64x1xf32>
    %c56_i32 = arith.constant 56 : i32
    %128 = vector.broadcast %c56_i32 : i32 to vector<64x1xi32>
    %129 = arith.cmpi slt, %113, %128 : vector<64x1xi32>
    %130 = arith.extui %129 : vector<64x1xi1> to vector<64x1xi32>
    %131 = arith.sitofp %130 : vector<64x1xi32> to vector<64x1xf32>
    %c0_61 = arith.constant 0 : index
    %c0_62 = arith.constant 0 : index
    %132 = vector.load %arg13[%c0_61, %c0_62] : memref<9x256xf32, #tpu.memory_space<vmem>>, vector<9x256xf32>
    %c1_i32_63 = arith.constant 1 : i32
    %133 = tpu.dynamic_rotate %66 by %c1_i32_63 dim 0 : vector<64x256xf32>, i32 -> vector<64x256xf32>
    %134 = vector.broadcast %119 : vector<64x1xf32> to vector<64x256xf32>
    %135 = arith.mulf %133, %134 : vector<64x256xf32>
    %c63_i32 = arith.constant 63 : i32
    %136 = tpu.dynamic_rotate %66 by %c63_i32 dim 0 : vector<64x256xf32>, i32 -> vector<64x256xf32>
    %137 = vector.broadcast %123 : vector<64x1xf32> to vector<64x256xf32>
    %138 = arith.mulf %136, %137 : vector<64x256xf32>
    %139 = vector.extract_strided_slice %132 {offsets = [3, 0], sizes = [1, 256], strides = [1, 1]} : vector<9x256xf32> to vector<1x256xf32>
    %140 = vector.broadcast %139 : vector<1x256xf32> to vector<64x256xf32>
    %141 = arith.mulf %135, %140 : vector<64x256xf32>
    %142 = vector.extract_strided_slice %132 {offsets = [4, 0], sizes = [1, 256], strides = [1, 1]} : vector<9x256xf32> to vector<1x256xf32>
    %143 = vector.broadcast %142 : vector<1x256xf32> to vector<64x256xf32>
    %144 = arith.mulf %66, %143 : vector<64x256xf32>
    %145 = arith.addf %141, %144 : vector<64x256xf32>
    %146 = vector.extract_strided_slice %132 {offsets = [5, 0], sizes = [1, 256], strides = [1, 1]} : vector<9x256xf32> to vector<1x256xf32>
    %147 = vector.broadcast %146 : vector<1x256xf32> to vector<64x256xf32>
    %148 = arith.mulf %138, %147 : vector<64x256xf32>
    %149 = arith.addf %145, %148 : vector<64x256xf32>
    %c0_64 = arith.constant 0 : index
    %c0_65 = arith.constant 0 : index
    %150 = vector.load %arg14[%c0_64, %c0_65] : memref<1x256xf32, #tpu.memory_space<vmem>>, vector<1x256xf32>
    %151 = vector.broadcast %150 : vector<1x256xf32> to vector<64x256xf32>
    %152 = arith.addf %149, %151 : vector<64x256xf32>
    %153 = vector.extract_strided_slice %132 {offsets = [0, 0], sizes = [1, 256], strides = [1, 1]} : vector<9x256xf32> to vector<1x256xf32>
    %154 = vector.broadcast %153 : vector<1x256xf32> to vector<64x256xf32>
    %155 = arith.mulf %135, %154 : vector<64x256xf32>
    %156 = vector.extract_strided_slice %132 {offsets = [1, 0], sizes = [1, 256], strides = [1, 1]} : vector<9x256xf32> to vector<1x256xf32>
    %157 = vector.broadcast %156 : vector<1x256xf32> to vector<64x256xf32>
    %158 = arith.mulf %66, %157 : vector<64x256xf32>
    %159 = arith.addf %155, %158 : vector<64x256xf32>
    %160 = vector.extract_strided_slice %132 {offsets = [2, 0], sizes = [1, 256], strides = [1, 1]} : vector<9x256xf32> to vector<1x256xf32>
    %161 = vector.broadcast %160 : vector<1x256xf32> to vector<64x256xf32>
    %162 = arith.mulf %138, %161 : vector<64x256xf32>
    %163 = arith.addf %159, %162 : vector<64x256xf32>
    %c8_i32_66 = arith.constant 8 : i32
    %164 = tpu.dynamic_rotate %163 by %c8_i32_66 dim 0 : vector<64x256xf32>, i32 -> vector<64x256xf32>
    %165 = vector.broadcast %127 : vector<64x1xf32> to vector<64x256xf32>
    %166 = arith.mulf %164, %165 : vector<64x256xf32>
    %167 = arith.addf %152, %166 : vector<64x256xf32>
    %168 = vector.extract_strided_slice %132 {offsets = [6, 0], sizes = [1, 256], strides = [1, 1]} : vector<9x256xf32> to vector<1x256xf32>
    %169 = vector.broadcast %168 : vector<1x256xf32> to vector<64x256xf32>
    %170 = arith.mulf %135, %169 : vector<64x256xf32>
    %171 = vector.extract_strided_slice %132 {offsets = [7, 0], sizes = [1, 256], strides = [1, 1]} : vector<9x256xf32> to vector<1x256xf32>
    %172 = vector.broadcast %171 : vector<1x256xf32> to vector<64x256xf32>
    %173 = arith.mulf %66, %172 : vector<64x256xf32>
    %174 = arith.addf %170, %173 : vector<64x256xf32>
    %175 = vector.extract_strided_slice %132 {offsets = [8, 0], sizes = [1, 256], strides = [1, 1]} : vector<9x256xf32> to vector<1x256xf32>
    %176 = vector.broadcast %175 : vector<1x256xf32> to vector<64x256xf32>
    %177 = arith.mulf %138, %176 : vector<64x256xf32>
    %178 = arith.addf %174, %177 : vector<64x256xf32>
    %c56_i32_67 = arith.constant 56 : i32
    %179 = tpu.dynamic_rotate %178 by %c56_i32_67 dim 0 : vector<64x256xf32>, i32 -> vector<64x256xf32>
    %180 = vector.broadcast %131 : vector<64x1xf32> to vector<64x256xf32>
    %181 = arith.mulf %179, %180 : vector<64x256xf32>
    %182 = arith.addf %167, %181 : vector<64x256xf32>
    %183 = arith.truncf %182 : vector<64x256xf32> to vector<64x256xbf16>
    %c0_68 = arith.constant 0 : index
    %c0_69 = arith.constant 0 : index
    %184 = vector.load %arg15[%c0_68, %c0_69] : memref<256x256xbf16, #tpu.memory_space<vmem>>, vector<256x256xbf16>
    %cst_70 = arith.constant dense<0.000000e+00> : vector<64x256xf32>
    %185 = tpu.matmul %183, %184, %cst_70 {dimension_numbers = #tpu.dot_dimension_numbers<[1], [0], [0], [1], [0, 0, 1, 1], [], []>} : vector<64x256xbf16>, vector<256x256xbf16>, vector<64x256xf32> -> vector<64x256xf32>
    %c0_71 = arith.constant 0 : index
    %c0_72 = arith.constant 0 : index
    %186 = vector.load %arg16[%c0_71, %c0_72] : memref<1x256xf32, #tpu.memory_space<vmem>>, vector<1x256xf32>
    %187 = vector.broadcast %186 : vector<1x256xf32> to vector<64x256xf32>
    %188 = arith.addf %185, %187 : vector<64x256xf32>
    %189 = vector.broadcast %112 : vector<1x256xf32> to vector<64x256xf32>
    %190 = arith.mulf %188, %189 : vector<64x256xf32>
    %191 = arith.addf %96, %190 : vector<64x256xf32>
    %192 = arith.truncf %191 : vector<64x256xf32> to vector<64x256xbf16>
    %c0_73 = arith.constant 0 : index
    %c0_74 = arith.constant 0 : index
    %193 = vector.load %arg21[%c0_73, %c0_74] : memref<256x384xbf16, #tpu.memory_space<vmem>>, vector<256x384xbf16>
    %cst_75 = arith.constant dense<0.000000e+00> : vector<64x384xf32>
    %194 = tpu.matmul %192, %193, %cst_75 {dimension_numbers = #tpu.dot_dimension_numbers<[1], [0], [0], [1], [0, 0, 1, 1], [], []>} : vector<64x256xbf16>, vector<256x384xbf16>, vector<64x384xf32> -> vector<64x384xf32>
    %c0_76 = arith.constant 0 : index
    %c0_77 = arith.constant 0 : index
    %195 = vector.load %arg22[%c0_76, %c0_77] : memref<1x384xf32, #tpu.memory_space<vmem>>, vector<1x384xf32>
    %196 = vector.broadcast %195 : vector<1x384xf32> to vector<64x384xf32>
    %197 = arith.addf %194, %196 : vector<64x384xf32>
    %198 = vector.shape_cast %197 : vector<64x384xf32> to vector<1x64x384xf32>
    %c0_78 = arith.constant 0 : index
    %c0_79 = arith.constant 0 : index
    %c0_80 = arith.constant 0 : index
    %199 = vector.load %arg25[%c0_78, %c0_79, %c0_80] : memref<1x64x384xf32, #tpu.memory_space<vmem>>, vector<1x64x384xf32>
    tpu.vector_store %arg25[%c0_78, %c0_79, %c0_80], %198 {strides = array<i32>} : memref<1x64x384xf32, #tpu.memory_space<vmem>>, vector<1x64x384xf32>,
    return
  }
  func.func @transform_0(%arg0: i32) -> (i32, i32, i32) {
    %c0_i32 = arith.constant 0 : i32
    %c0_i32_0 = arith.constant 0 : i32
    %c0_i32_1 = arith.constant 0 : i32
    return %arg0, %c0_i32, %c0_i32_0 : i32, i32, i32
  }
  func.func @transform_1(%arg0: i32) -> (i32, i32, i32) {
    %c0_i32 = arith.constant 0 : i32
    %c0_i32_0 = arith.constant 0 : i32
    %c0_i32_1 = arith.constant 0 : i32
    return %arg0, %c0_i32, %c0_i32_0 : i32, i32, i32
  }
  func.func @transform_2(%arg0: i32) -> (i32, i32) {
    %c0_i32 = arith.constant 0 : i32
    %c0_i32_0 = arith.constant 0 : i32
    %c0_i32_1 = arith.constant 0 : i32
    return %c0_i32, %c0_i32_0 : i32, i32
  }
  func.func @transform_3(%arg0: i32) -> (i32, i32) {
    %c0_i32 = arith.constant 0 : i32
    %c0_i32_0 = arith.constant 0 : i32
    %c0_i32_1 = arith.constant 0 : i32
    return %c0_i32, %c0_i32_0 : i32, i32
  }
  func.func @transform_4(%arg0: i32) -> (i32, i32) {
    %c0_i32 = arith.constant 0 : i32
    %c0_i32_0 = arith.constant 0 : i32
    %c0_i32_1 = arith.constant 0 : i32
    return %c0_i32, %c0_i32_0 : i32, i32
  }
  func.func @transform_5(%arg0: i32) -> (i32, i32) {
    %c0_i32 = arith.constant 0 : i32
    %c0_i32_0 = arith.constant 0 : i32
    %c0_i32_1 = arith.constant 0 : i32
    return %c0_i32, %c0_i32_0 : i32, i32
  }
  func.func @transform_6(%arg0: i32) -> (i32, i32) {
    %c0_i32 = arith.constant 0 : i32
    %c0_i32_0 = arith.constant 0 : i32
    %c0_i32_1 = arith.constant 0 : i32
    return %c0_i32, %c0_i32_0 : i32, i32
  }
  func.func @transform_7(%arg0: i32) -> (i32, i32) {
    %c0_i32 = arith.constant 0 : i32
    %c0_i32_0 = arith.constant 0 : i32
    %c0_i32_1 = arith.constant 0 : i32
    return %c0_i32, %c0_i32_0 : i32, i32
  }
  func.func @transform_8(%arg0: i32) -> (i32, i32) {
    %c0_i32 = arith.constant 0 : i32
    %c0_i32_0 = arith.constant 0 : i32
    %c0_i32_1 = arith.constant 0 : i32
    return %c0_i32, %c0_i32_0 : i32, i32
  }
  func.func @transform_9(%arg0: i32) -> (i32, i32) {
    %c0_i32 = arith.constant 0 : i32
    %c0_i32_0 = arith.constant 0 : i32
    %c0_i32_1 = arith.constant 0 : i32
    return %c0_i32, %c0_i32_0 : i32, i32
  }
  func.func @transform_10(%arg0: i32) -> (i32, i32) {
    %c0_i32 = arith.constant 0 : i32
    %c0_i32_0 = arith.constant 0 : i32
    %c0_i32_1 = arith.constant 0 : i32
    return %c0_i32, %c0_i32_0 : i32, i32
  }
  func.func @transform_11(%arg0: i32) -> (i32, i32) {
    %c0_i32 = arith.constant 0 : i32
    %c0_i32_0 = arith.constant 0 : i32
    %c0_i32_1 = arith.constant 0 : i32
    return %c0_i32, %c0_i32_0 : i32, i32
  }
  func.func @transform_12(%arg0: i32) -> (i32, i32) {
    %c0_i32 = arith.constant 0 : i32
    %c0_i32_0 = arith.constant 0 : i32
    %c0_i32_1 = arith.constant 0 : i32
    return %c0_i32, %c0_i32_0 : i32, i32
  }
  func.func @transform_13(%arg0: i32) -> (i32, i32) {
    %c0_i32 = arith.constant 0 : i32
    %c0_i32_0 = arith.constant 0 : i32
    %c0_i32_1 = arith.constant 0 : i32
    return %c0_i32, %c0_i32_0 : i32, i32
  }
  func.func @transform_14(%arg0: i32) -> (i32, i32) {
    %c0_i32 = arith.constant 0 : i32
    %c0_i32_0 = arith.constant 0 : i32
    %c0_i32_1 = arith.constant 0 : i32
    return %c0_i32, %c0_i32_0 : i32, i32
  }
  func.func @transform_15(%arg0: i32) -> (i32, i32) {
    %c0_i32 = arith.constant 0 : i32
    %c0_i32_0 = arith.constant 0 : i32
    %c0_i32_1 = arith.constant 0 : i32
    return %c0_i32, %c0_i32_0 : i32, i32
  }
  func.func @transform_16(%arg0: i32) -> (i32, i32) {
    %c0_i32 = arith.constant 0 : i32
    %c0_i32_0 = arith.constant 0 : i32
    %c0_i32_1 = arith.constant 0 : i32
    return %c0_i32, %c0_i32_0 : i32, i32
  }
  func.func @transform_17(%arg0: i32) -> (i32, i32) {
    %c0_i32 = arith.constant 0 : i32
    %c0_i32_0 = arith.constant 0 : i32
    %c0_i32_1 = arith.constant 0 : i32
    return %c0_i32, %c0_i32_0 : i32, i32
  }
  func.func @transform_18(%arg0: i32) -> (i32, i32) {
    %c0_i32 = arith.constant 0 : i32
    %c0_i32_0 = arith.constant 0 : i32
    %c0_i32_1 = arith.constant 0 : i32
    return %c0_i32, %c0_i32_0 : i32, i32
  }
  func.func @transform_19(%arg0: i32) -> (i32, i32) {
    %c0_i32 = arith.constant 0 : i32
    %c0_i32_0 = arith.constant 0 : i32
    %c0_i32_1 = arith.constant 0 : i32
    return %c0_i32, %c0_i32_0 : i32, i32
  }
  func.func @transform_20(%arg0: i32) -> (i32, i32) {
    %c0_i32 = arith.constant 0 : i32
    %c0_i32_0 = arith.constant 0 : i32
    %c0_i32_1 = arith.constant 0 : i32
    return %c0_i32, %c0_i32_0 : i32, i32
  }
  func.func @transform_21(%arg0: i32) -> (i32, i32) {
    %c0_i32 = arith.constant 0 : i32
    %c0_i32_0 = arith.constant 0 : i32
    %c0_i32_1 = arith.constant 0 : i32
    return %c0_i32, %c0_i32_0 : i32, i32
  }
  func.func @transform_22(%arg0: i32) -> (i32, i32) {
    %c0_i32 = arith.constant 0 : i32
    %c0_i32_0 = arith.constant 0 : i32
    %c0_i32_1 = arith.constant 0 : i32
    return %c0_i32, %c0_i32_0 : i32, i32
  }
  func.func @transform_23(%arg0: i32) -> (i32, i32) {
    %c0_i32 = arith.constant 0 : i32
    %c0_i32_0 = arith.constant 0 : i32
    %c0_i32_1 = arith.constant 0 : i32
    return %c0_i32, %c0_i32_0 : i32, i32
  }
  func.func @transform_24(%arg0: i32) -> (i32, i32, i32) {
    %c0_i32 = arith.constant 0 : i32
    %c0_i32_0 = arith.constant 0 : i32
    %c0_i32_1 = arith.constant 0 : i32
    return %arg0, %c0_i32, %c0_i32_0 : i32, i32, i32
  }
}

</mosaic_0001>

<bundles_post_ra>
// kernel: tpu_custom_call.1
= control target key start
LH: loop header
LB: loop body
LE: loop exit
PB: predicated region body
PF: predicated region fallthrough
CT: control target
= control target key end

     0   :  { %s9109_s0 = inlined_call_operand.hbm [shape: bf16[2,64,256], index: 0, kind: input, shape index: {}]   ;;  %s9110_s1 = inlined_call_operand.hbm [shape: bf16[2,64,128], index: 1, kind: input, shape index: {}]   ;;  %s9111_s2 = inlined_call_operand.vmem [shape: bf16[256,256], index: 2, kind: input, shape index: {}]   ;;  %s9112_s3 = inlined_call_operand.hbm [shape: f32[1,256], index: 3, kind: input, shape index: {}]   ;;  %s9113_s4 = inlined_call_operand.hbm [shape: bf16[128,256], index: 4, kind: input, shape index: {}]   ;;  %s9114_s5 = inlined_call_operand.hbm [shape: f32[1,256], index: 5, kind: input, shape index: {}]   ;;  %s9115_s6 = inlined_call_operand.hbm [shape: f32[1,256], index: 6, kind: input, shape index: {}]   ;;  %s9116_s7 = inlined_call_operand.hbm [shape: f32[1,256], index: 7, kind: input, shape index: {}]   ;;  %s9117_s8 = inlined_call_operand.hbm [shape: f32[1,256], index: 8, kind: input, shape index: {}]   ;;  %s9118_s9 = inlined_call_operand.<no memory space> [shape: f32[1,1], index: 9, kind: input, shape index: {}]   ;;  %s9119_s10 = inlined_call_operand.hbm [shape: f32[1,256], index: 10, kind: input, shape index: {}]   ;;  %s9120_s11 = inlined_call_operand.hbm [shape: f32[1,256], index: 11, kind: input, shape index: {}]   ;;  %s9121_s12 = inlined_call_operand.vmem [shape: f32[9,256], index: 12, kind: input, shape index: {}]   ;;  %s9122_s13 = inlined_call_operand.hbm [shape: f32[1,256], index: 13, kind: input, shape index: {}]   ;;  %s9123_s14 = inlined_call_operand.hbm [shape: bf16[256,256], index: 14, kind: input, shape index: {}]   ;;  %s9124_s15 = inlined_call_operand.hbm [shape: f32[1,256], index: 15, kind: input, shape index: {}]   ;;  %s9125_s16 = inlined_call_operand.hbm [shape: bf16[256,256], index: 16, kind: input, shape index: {}]   ;;  %s9126_s17 = inlined_call_operand.hbm [shape: f32[1,256], index: 17, kind: input, shape index: {}]   ;;  %s9127_s18 = inlined_call_operand.hbm [shape: bf16[256,256], index: 18, kind: input, shape index: {}]   ;;  %s9128_s19 = inlined_call_operand.vmem [shape: f32[1,256], index: 19, kind: input, shape index: {}]   ;;  %s9129_s20 = inlined_call_operand.hbm [shape: bf16[256,384], index: 20, kind: input, shape index: {}]   ;;  %s9130_s21 = inlined_call_operand.vmem [shape: f32[1,384], index: 21, kind: input, shape index: {}]   ;;  %s9131_s22 = inlined_call_operand.vmem [shape: f32[16,256], index: 22, kind: input, shape index: {}]   ;;  %s9132_s23 = inlined_call_operand.vmem [shape: f32[256,16], index: 23, kind: input, shape index: {}]   ;;  %s9133_s24 = inlined_call_operand.hbm [shape: f32[2,64,384], index: 24, kind: output, shape index: {}]  }
   0x1   :  { %9302 = sst [smem:[#allocation114_spill]] %s9109_s0  ;;  %v29_v0 = vstv %s9118_s9 }
   0x2   :  { %9303 = sst [smem:[#allocation115_spill]] %s9110_s1  ;;  %30 = vst [vmem:[#allocation2] sm:$0x1] %v29_v0 }
   0x3   :  { %9304 = sst [smem:[#allocation116_spill]] %s9111_s2 }
   0x4   :  { %9305 = sst [smem:[#allocation117_spill]] %s9112_s3 }
   0x5   :  { %9306 = sst [smem:[#allocation118_spill]] %s9113_s4 }
   0x6   :  { %9307 = sst [smem:[#allocation119_spill]] %s9114_s5 }
   0x7   :  { %9308 = sst [smem:[#allocation120_spill]] %s9115_s6 }
   0x8   :  { %9309 = sst [smem:[#allocation121_spill]] %s9116_s7 }
   0x9   :  { %9310 = sst [smem:[#allocation122_spill]] %s9117_s8 }
   0xa   :  { %9311 = sst [smem:[#allocation123_spill]] %s9119_s10 }
   0xb   :  { %9312 = sst [smem:[#allocation124_spill]] %s9120_s11 }
   0xc   :  { %9313 = sst [smem:[#allocation125_spill]] %s9121_s12 }
   0xd   :  { %9314 = sst [smem:[#allocation126_spill]] %s9122_s13 }
   0xe   :  { %9315 = sst [smem:[#allocation127_spill]] %s9123_s14 }
   0xf   :  { %9316 = sst [smem:[#allocation128_spill]] %s9124_s15 }
  0x10   :  { %9317 = sst [smem:[#allocation129_spill]] %s9125_s16 }
  0x11   :  { %9318 = sst [smem:[#allocation130_spill]] %s9126_s17 }
  0x12   :  { %9319 = sst [smem:[#allocation131_spill]] %s9128_s19 }
  0x13   :  { %9320 = sst [smem:[#allocation132_spill]] %s9130_s21 }
  0x14   :  { %9321 = sst [smem:[#allocation133_spill]] %s9131_s22 }
  0x15   :  { %9322 = sst [smem:[#allocation134_spill]] %s9132_s23 }
  0x16   :  { %9323 = sst [smem:[#allocation135_spill]] %s9133_s24 }
  0x17   :  { %31 = vsyncpa [#allocation4], 0 }
  0x18   :  { %33 = vsyncpa [#allocation4 + $0x1], 0 }
  0x19   :  { %34 = vsyncpa [#allocation7], 0 }
  0x1a   :  { %36 = vsyncpa [#allocation7 + $0x1], 0 }
  0x1b   :  { %37 = vsyncpa [#allocation10], 0 }
  0x1c   :  { %38 = vsyncpa [#allocation13], 0 }
  0x1d   :  { %39 = vsyncpa [#allocation16], 0 }
  0x1e   :  { %40 = vsyncpa [#allocation19], 0 }
  0x1f   :  { %41 = vsyncpa [#allocation22], 0 }
  0x20   :  { %42 = vsyncpa [#allocation25], 0 }
  0x21   :  { %43 = vsyncpa [#allocation28], 0 }
  0x22   :  { %44 = vsyncpa [#allocation5], 0 }
  0x23   :  { %46 = vsyncpa [#allocation5 + $0x1], 0  ;;  %s6488_s27 = smov 0   ;;  %s6490_s28 = smov 0  }
  0x24   :  { %s6492_s6 = smov 0   ;;  %s6494_s9 = smov 0  }
  0x25 LB: > { %s6331_s2 = smov [#allocation8]   ;;  %s6509_s0 = sadd.s32 4294967295, %s6329_s9   ;;  %s6329_s9 = sphi %s6494_s9, %s9660_s9   ;;  %s6325_s6 = sphi %s6492_s6, %s9659_s6   ;;  %s6321_s28 = sphi %s6490_s28, %s9658_s28   ;;  %s6317_s27 = sphi %s6488_s27, %s9657_s27  }
  0x26   : > { %s613_s29 = sshll.u32 %s6331_s2, 4  ;;  %p4728_p0 = scmp.ge.s32.totalorder %s6329_s9, 1  ;;  %s614_s29 = int_to_ptr.vmem [resolvable:$true] %s613_s29 }
  0x27   : > { %p9144_p1 = scmp.eq.s32.totalorder %s6509_s0, 0  ;;  %p597_p2 = scmp.lt.s32.totalorder %s6329_s9, 3 }
  0x28   : > { %s6332_s30 = smov [#allocation9]   ;;  %s6333_s8 = smov [#allocation12]  }
  0x29   : > { %p6514_p3 = pnand %p4728_p0, %p597_p2  ;;  %s623_s3 = sshll.u32 %s6332_s30, 4  ;;  %s6521_s3 = int_to_ptr.vmem [resolvable:$true] %s623_s3 }
  0x2a   : > { %s648_s4 = sshll.u32 %s6333_s8, 4  ;;  %s9327_s26 = sld [smem:[#allocation117_spill]]  ;;  %s6529_s4 = int_to_ptr.vmem [resolvable:$true] %s648_s4 }
  0x2b   : > { %s9324_s7 = scalar_select %p6514_p3, 1, 0 }
  0x2c   : > { %p5257_p5 = pneg %p6514_p3 }
  0x2d   : > { %9325 = sst [smem:[#allocation42_spill]] %s9324_s7 }
  0x2e   : > { %p6525_p6 = pnand %p5257_p5, %p9144_p1 }
  0x30   : > { %s5747_s2 = scalar_lea.hbm %s9327_s26, 32  ;;  %p6539_p8 = pneg %p6525_p6 }
  0x31   : > { %p5748_p7 = scmp.ne.s32.totalorder %s9327_s26, %s5747_s2  ;;  %p5754_p11 = scmp.lt.u32.totalorder %s5747_s2, %s9327_s26 }
  0x33   : > { %p5750_p9 = pnand %p6539_p8, %p5748_p7 }
  0x35   : > { %p5751_p10 = pneg %p5750_p9 }
  0x37   : > { %p5756_p12 = pnand %p5754_p11, %p5751_p10 }
  0x39   : > { %5759 = shalt.err (!%p5756_p12)
}
  0x3a   : > { %s5760_s1 = scalar_lea.vmem %s614_s29, 32  ;;  %p5768_p5 = scmp.lt.s32.totalorder %s614_s29, %s614_s29 }
  0x3b   : > { %p5761_p13 = scmp.ne.s32.totalorder %s614_s29, %s5760_s1  ;;  %p5769_p4 = scmp.lt.s32.totalorder %s5760_s1, %s5760_s1 }
  0x3d   : > { %p5763_p0 = pnand %p5761_p13, %p6539_p8  ;;  %p5770_p1 = por %p5769_p4, %p5768_p5 }
  0x3f   : > { %p5764_p2 = pneg %p5763_p0 }
  0x41   : > { %p5771_p3 = pnand %p5770_p1, %p5764_p2 }
  0x43   : > { %5774 = shalt.err (!%p5771_p3)
}
  0x44   : > { %5260 = dma.hbm_to_vmem [thread:$0]  (!%p6525_p6), %s9327_s26, 32, %s614_s29, [#allocation7]  }
  0x45   : > { %s9329_s2 = sld [smem:[#allocation118_spill]] }
  0x4b   : > { %s5775_s8 = scalar_lea.hbm %s9329_s2, 2048 }
  0x4c   : > { %p5776_p7 = scmp.ne.s32.totalorder %s9329_s2, %s5775_s8  ;;  %p5782_p1 = scmp.lt.u32.totalorder %s5775_s8, %s9329_s2 }
  0x4e   : > { %p5778_p9 = pnand %p5776_p7, %p6539_p8 }
  0x50   : > { %p5779_p4 = pneg %p5778_p9 }
  0x52   : > { %p5784_p3 = pnand %p5782_p1, %p5779_p4 }
  0x54   : > { %5787 = shalt.err (!%p5784_p3)
}
  0x55   : > { %s5788_s29 = scalar_lea.vmem %s6521_s3, 2048  ;;  %p5796_p13 = scmp.lt.s32.totalorder %s6521_s3, %s6521_s3 }
  0x56   : > { %p5789_p10 = scmp.ne.s32.totalorder %s6521_s3, %s5788_s29  ;;  %p5797_p0 = scmp.lt.s32.totalorder %s5788_s29, %s5788_s29 }
  0x58   : > { %p5791_p11 = pnand %p5789_p10, %p6539_p8  ;;  %p5798_p2 = por %p5797_p0, %p5796_p13 }
  0x5a   : > { %p5792_p12 = pneg %p5791_p11 }
  0x5c   : > { %p5799_p5 = pnand %p5798_p2, %p5792_p12 }
  0x5e   : > { %5802 = shalt.err (!%p5799_p5)
}
  0x5f   : > { %s9151_s12 = smov 128   ;;  %s9153_s22 = smov 8  }
  0x60   : > { %5263 = dma.hbm_to_vmem [thread:$0]  (!%p6525_p6), %s9329_s2, 2048, %s6521_s3, [#allocation10], %s9151_s12, %s9151_s12, %s9153_s22  }
  0x61   : > { %s9330_s5 = sld [smem:[#allocation120_spill]] }
  0x67   : > { %s5803_s8 = scalar_lea.hbm %s9330_s5, 32 }
  0x68   : > { %p5804_p7 = scmp.ne.s32.totalorder %s9330_s5, %s5803_s8  ;;  %p5810_p1 = scmp.lt.u32.totalorder %s5803_s8, %s9330_s5 }
  0x6a   : > { %p5806_p9 = pnand %p5804_p7, %p6539_p8 }
  0x6c   : > { %p5807_p4 = pneg %p5806_p9 }
  0x6e   : > { %p5812_p3 = pnand %p5810_p1, %p5807_p4 }
  0x70   : > { %5815 = shalt.err (!%p5812_p3)
}
  0x71   : > { %s5816_s3 = scalar_lea.vmem %s6529_s4, 32  ;;  %p5824_p13 = scmp.lt.s32.totalorder %s6529_s4, %s6529_s4 }
  0x72   : > { %p5817_p10 = scmp.ne.s32.totalorder %s6529_s4, %s5816_s3  ;;  %p5825_p0 = scmp.lt.s32.totalorder %s5816_s3, %s5816_s3 }
  0x74   : > { %p5819_p11 = pnand %p5817_p10, %p6539_p8  ;;  %p5826_p2 = por %p5825_p0, %p5824_p13 }
  0x76   : > { %p5820_p12 = pneg %p5819_p11 }
  0x78   : > { %p5827_p5 = pnand %p5826_p2, %p5820_p12 }
  0x7a   : > { %5830 = shalt.err (!%p5827_p5)
}
  0x7b   : > { %5269 = dma.hbm_to_vmem [thread:$0]  (!%p6525_p6), %s9330_s5, 32, %s6529_s4, [#allocation13]  }
  0x7c   : > { %s6336_s23 = smov [#allocation15]   ;;  %s6337_s24 = smov [#allocation18]  }
  0x7d   : > { %s670_s21 = sshll.u32 %s6336_s23, 4  ;;  %s695_s19 = sshll.u32 %s6337_s24, 4  ;;  %s671_s21 = int_to_ptr.vmem [resolvable:$true] %s670_s21  ;;  %s696_s19 = int_to_ptr.vmem [resolvable:$true] %s695_s19 }
  0x7e   : > { %s9331_s29 = sld [smem:[#allocation122_spill]] }
  0x84   : > { %s5831_s3 = scalar_lea.hbm %s9331_s29, 32 }
  0x85   : > { %p5832_p7 = scmp.ne.s32.totalorder %s9331_s29, %s5831_s3  ;;  %p5838_p1 = scmp.lt.u32.totalorder %s5831_s3, %s9331_s29 }
  0x87   : > { %p5834_p9 = pnand %p5832_p7, %p6539_p8 }
  0x89   : > { %p5835_p4 = pneg %p5834_p9 }
  0x8b   : > { %p5840_p3 = pnand %p5838_p1, %p5835_p4 }
  0x8d   : > { %5843 = shalt.err (!%p5840_p3)
}
  0x8e   : > { %s5844_s4 = scalar_lea.vmem %s671_s21, 32  ;;  %p5852_p13 = scmp.lt.s32.totalorder %s671_s21, %s671_s21 }
  0x8f   : > { %p5845_p10 = scmp.ne.s32.totalorder %s671_s21, %s5844_s4  ;;  %p5853_p0 = scmp.lt.s32.totalorder %s5844_s4, %s5844_s4 }
  0x91   : > { %p5847_p11 = pnand %p5845_p10, %p6539_p8  ;;  %p5854_p2 = por %p5853_p0, %p5852_p13 }
  0x93   : > { %p5848_p12 = pneg %p5847_p11 }
  0x95   : > { %p5855_p5 = pnand %p5854_p2, %p5848_p12 }
  0x97   : > { %5858 = shalt.err (!%p5855_p5)
}
  0x98   : > { %5275 = dma.hbm_to_vmem [thread:$0]  (!%p6525_p6), %s9331_s29, 32, %s671_s21, [#allocation16]  }
  0x99   : > { %s9332_s11 = sld [smem:[#allocation124_spill]] }
  0x9f   : > { %s5859_s23 = scalar_lea.hbm %s9332_s11, 32 }
  0xa0   : > { %p5860_p7 = scmp.ne.s32.totalorder %s9332_s11, %s5859_s23  ;;  %p5866_p1 = scmp.lt.u32.totalorder %s5859_s23, %s9332_s11 }
  0xa2   : > { %p5862_p9 = pnand %p5860_p7, %p6539_p8 }
  0xa4   : > { %p5863_p4 = pneg %p5862_p9 }
  0xa6   : > { %p5868_p3 = pnand %p5866_p1, %p5863_p4 }
  0xa8   : > { %5871 = shalt.err (!%p5868_p3)
}
  0xa9   : > { %s5872_s7 = scalar_lea.vmem %s696_s19, 32  ;;  %p5880_p13 = scmp.lt.s32.totalorder %s696_s19, %s696_s19 }
  0xaa   : > { %p5873_p10 = scmp.ne.s32.totalorder %s696_s19, %s5872_s7  ;;  %p5881_p0 = scmp.lt.s32.totalorder %s5872_s7, %s5872_s7 }
  0xac   : > { %p5875_p11 = pnand %p5873_p10, %p6539_p8  ;;  %p5882_p2 = por %p5881_p0, %p5880_p13 }
  0xae   : > { %p5876_p12 = pneg %p5875_p11 }
  0xb0   : > { %p5883_p5 = pnand %p5882_p2, %p5876_p12 }
  0xb2   : > { %5886 = shalt.err (!%p5883_p5)
}
  0xb3   : > { %5281 = dma.hbm_to_vmem [thread:$0]  (!%p6525_p6), %s9332_s11, 32, %s696_s19, [#allocation19]  }
  0xb4   : > { %s6338_s12 = smov [#allocation21]   ;;  %s6339_s2 = smov [#allocation24]  }
  0xb5   : > { %s719_s22 = sshll.u32 %s6338_s12, 4  ;;  %s743_s26 = sshll.u32 %s6339_s2, 4  ;;  %s720_s22 = int_to_ptr.vmem [resolvable:$true] %s719_s22  ;;  %s744_s26 = int_to_ptr.vmem [resolvable:$true] %s743_s26 }
  0xb6   : > { %s9333_s14 = sld [smem:[#allocation127_spill]] }
  0xbc   : > { %s5887_s8 = scalar_lea.hbm %s9333_s14, 4096 }
  0xbd   : > { %p5888_p7 = scmp.ne.s32.totalorder %s9333_s14, %s5887_s8  ;;  %p5894_p1 = scmp.lt.u32.totalorder %s5887_s8, %s9333_s14 }
  0xbf   : > { %p5890_p9 = pnand %p5888_p7, %p6539_p8 }
  0xc1   : > { %p5891_p4 = pneg %p5890_p9 }
  0xc3   : > { %p5896_p3 = pnand %p5894_p1, %p5891_p4 }
  0xc5   : > { %5899 = shalt.err (!%p5896_p3)
}
  0xc6   : > { %s5900_s19 = scalar_lea.vmem %s720_s22, 4096  ;;  %p5908_p13 = scmp.lt.s32.totalorder %s720_s22, %s720_s22 }
  0xc7   : > { %p5901_p10 = scmp.ne.s32.totalorder %s720_s22, %s5900_s19  ;;  %p5909_p0 = scmp.lt.s32.totalorder %s5900_s19, %s5900_s19 }
  0xc9   : > { %p5903_p11 = pnand %p5901_p10, %p6539_p8  ;;  %p5910_p2 = por %p5909_p0, %p5908_p13 }
  0xcb   : > { %p5904_p12 = pneg %p5903_p11 }
  0xcd   : > { %p5911_p5 = pnand %p5910_p2, %p5904_p12 }
  0xcf   : > { %5914 = shalt.err (!%p5911_p5)
}
  0xd0   : > { %s9334_s4 = smov 8   ;;  %s9335_s12 = smov 128  }
  0xd1   : > { %5287 = dma.hbm_to_vmem [thread:$0]  (!%p6525_p6), %s9333_s14, 4096, %s720_s22, [#allocation22], %s9335_s12, %s9335_s12, %s9334_s4  }
  0xd2   : > { %s9336_s16 = sld [smem:[#allocation129_spill]] }
  0xd8   : > { %s5915_s1 = scalar_lea.hbm %s9336_s16, 4096 }
  0xd9   : > { %p5916_p7 = scmp.ne.s32.totalorder %s9336_s16, %s5915_s1  ;;  %p5922_p1 = scmp.lt.u32.totalorder %s5915_s1, %s9336_s16 }
  0xdb   : > { %p5918_p9 = pnand %p5916_p7, %p6539_p8 }
  0xdd   : > { %p5919_p4 = pneg %p5918_p9 }
  0xdf   : > { %p5924_p3 = pnand %p5922_p1, %p5919_p4 }
  0xe1   : > { %5927 = shalt.err (!%p5924_p3)
}
  0xe2   : > { %s5928_s2 = scalar_lea.vmem %s744_s26, 4096  ;;  %p5936_p13 = scmp.lt.s32.totalorder %s744_s26, %s744_s26 }
  0xe3   : > { %p5929_p10 = scmp.ne.s32.totalorder %s744_s26, %s5928_s2  ;;  %p5937_p0 = scmp.lt.s32.totalorder %s5928_s2, %s5928_s2 }
  0xe5   : > { %p5931_p11 = pnand %p5929_p10, %p6539_p8  ;;  %p5938_p2 = por %p5937_p0, %p5936_p13 }
  0xe7   : > { %p5932_p12 = pneg %p5931_p11 }
  0xe9   : > { %p5939_p5 = pnand %p5938_p2, %p5932_p12 }
  0xeb   : > { %5942 = shalt.err (!%p5939_p5)
}
  0xec   : > { %5293 = dma.hbm_to_vmem [thread:$0]  (!%p6525_p6), %s9336_s16, 4096, %s744_s26, [#allocation25], %s9335_s12, %s9335_s12, %s9334_s4  }
  0xed   : > { %s6340_s24 = smov [#allocation27]   ;;  %s6341_s1 = smov [#allocation11]  }
  0xee   : > { %s767_s8 = sshll.u32 %s6340_s24, 4  ;;  %s637_s3 = sshll.u32 %s6341_s1, 4  ;;  %s768_s8 = int_to_ptr.vmem [resolvable:$true] %s767_s8  ;;  %s638_s3 = int_to_ptr.vmem [resolvable:$true] %s637_s3 }
  0xef   : > { %s5943_s19 = scalar_lea.hbm %s9127_s18, 4096 }
  0xf0   : > { %p5944_p7 = scmp.ne.s32.totalorder %s9127_s18, %s5943_s19  ;;  %p5950_p1 = scmp.lt.u32.totalorder %s5943_s19, %s9127_s18 }
  0xf2   : > { %p5946_p9 = pnand %p5944_p7, %p6539_p8 }
  0xf4   : > { %p5947_p4 = pneg %p5946_p9 }
  0xf6   : > { %p5952_p3 = pnand %p5950_p1, %p5947_p4 }
  0xf8   : > { %5955 = shalt.err (!%p5952_p3)
}
  0xf9   : > { %s5956_s26 = scalar_lea.vmem %s768_s8, 4096  ;;  %p5964_p13 = scmp.lt.s32.totalorder %s768_s8, %s768_s8 }
  0xfa   : > { %p5957_p10 = scmp.ne.s32.totalorder %s768_s8, %s5956_s26  ;;  %p5965_p0 = scmp.lt.s32.totalorder %s5956_s26, %s5956_s26 }
  0xfc   : > { %p5959_p11 = pnand %p5957_p10, %p6539_p8  ;;  %p5966_p2 = por %p5965_p0, %p5964_p13 }
  0xfe   : > { %p5960_p12 = pneg %p5959_p11 }
 0x100   : > { %p5967_p5 = pnand %p5966_p2, %p5960_p12 }
 0x102   : > { %5970 = shalt.err (!%p5967_p5)
}
 0x103   : > { %5299 = dma.hbm_to_vmem [thread:$0]  (!%p6525_p6), %s9127_s18, 4096, %s768_s8, [#allocation28], %s9335_s12, %s9335_s12, %s9334_s4  }
 0x104   : > { %s9337_s1 = sld [smem:[#allocation119_spill]] }
 0x10a   : > { %s5971_s7 = scalar_lea.hbm %s9337_s1, 32 }
 0x10b   : > { %p5972_p7 = scmp.ne.s32.totalorder %s9337_s1, %s5971_s7  ;;  %p5978_p1 = scmp.lt.u32.totalorder %s5971_s7, %s9337_s1 }
 0x10d   : > { %p5974_p9 = pnand %p5972_p7, %p6539_p8 }
 0x10f   : > { %p5975_p4 = pneg %p5974_p9 }
 0x111   : > { %p5980_p3 = pnand %p5978_p1, %p5975_p4 }
 0x113   : > { %5983 = shalt.err (!%p5980_p3)
}
 0x114   : > { %s5984_s26 = scalar_lea.vmem %s638_s3, 32  ;;  %p5992_p13 = scmp.lt.s32.totalorder %s638_s3, %s638_s3 }
 0x115   : > { %p5985_p10 = scmp.ne.s32.totalorder %s638_s3, %s5984_s26  ;;  %p5993_p0 = scmp.lt.s32.totalorder %s5984_s26, %s5984_s26 }
 0x117   : > { %p5987_p11 = pnand %p5985_p10, %p6539_p8  ;;  %p5994_p2 = por %p5993_p0, %p5992_p13 }
 0x119   : > { %p5988_p12 = pneg %p5987_p11 }
 0x11b   : > { %p5995_p5 = pnand %p5994_p2, %p5988_p12 }
 0x11d   : > { %5998 = shalt.err (!%p5995_p5)
}
 0x11e   : > { %5266 = dma.hbm_to_vmem [thread:$0]  (!%p6525_p6), %s9337_s1, 32, %s638_s3, [#allocation10]  }
 0x11f   : > { %s6342_s5 = smov [#allocation14]   ;;  %s6343_s24 = smov [#allocation17]  }
 0x120   : > { %s659_s23 = sshll.u32 %s6342_s5, 4  ;;  %s684_s7 = sshll.u32 %s6343_s24, 4  ;;  %s660_s23 = int_to_ptr.vmem [resolvable:$true] %s659_s23  ;;  %s685_s7 = int_to_ptr.vmem [resolvable:$true] %s684_s7 }
 0x121   : > { %s9338_s2 = sld [smem:[#allocation121_spill]] }
 0x127   : > { %s5999_s22 = scalar_lea.hbm %s9338_s2, 32 }
 0x128   : > { %p6000_p7 = scmp.ne.s32.totalorder %s9338_s2, %s5999_s22  ;;  %p6006_p1 = scmp.lt.u32.totalorder %s5999_s22, %s9338_s2 }
 0x12a   : > { %p6002_p9 = pnand %p6000_p7, %p6539_p8 }
 0x12c   : > { %p6003_p4 = pneg %p6002_p9 }
 0x12e   : > { %p6008_p3 = pnand %p6006_p1, %p6003_p4 }
 0x130   : > { %6011 = shalt.err (!%p6008_p3)
}
 0x131   : > { %s6012_s3 = scalar_lea.vmem %s660_s23, 32  ;;  %p6020_p13 = scmp.lt.s32.totalorder %s660_s23, %s660_s23 }
 0x132   : > { %p6013_p10 = scmp.ne.s32.totalorder %s660_s23, %s6012_s3  ;;  %p6021_p0 = scmp.lt.s32.totalorder %s6012_s3, %s6012_s3 }
 0x134   : > { %p6015_p11 = pnand %p6013_p10, %p6539_p8  ;;  %p6022_p2 = por %p6021_p0, %p6020_p13 }
 0x136   : > { %p6016_p12 = pneg %p6015_p11 }
 0x138   : > { %p6023_p5 = pnand %p6022_p2, %p6016_p12 }
 0x13a   : > { %6026 = shalt.err (!%p6023_p5)
}
 0x13b   : > { %5272 = dma.hbm_to_vmem [thread:$0]  (!%p6525_p6), %s9338_s2, 32, %s660_s23, [#allocation13]  }
 0x13c   : > { %s9339_s10 = sld [smem:[#allocation123_spill]] }
 0x142   : > { %s6027_s24 = scalar_lea.hbm %s9339_s10, 32 }
 0x143   : > { %p6028_p7 = scmp.ne.s32.totalorder %s9339_s10, %s6027_s24  ;;  %p6034_p1 = scmp.lt.u32.totalorder %s6027_s24, %s9339_s10 }
 0x145   : > { %p6030_p9 = pnand %p6028_p7, %p6539_p8 }
 0x147   : > { %p6031_p4 = pneg %p6030_p9 }
 0x149   : > { %p6036_p3 = pnand %p6034_p1, %p6031_p4 }
 0x14b   : > { %6039 = shalt.err (!%p6036_p3)
}
 0x14c   : > { %s6040_s8 = scalar_lea.vmem %s685_s7, 32  ;;  %p6048_p13 = scmp.lt.s32.totalorder %s685_s7, %s685_s7 }
 0x14d   : > { %p6041_p10 = scmp.ne.s32.totalorder %s685_s7, %s6040_s8  ;;  %p6049_p0 = scmp.lt.s32.totalorder %s6040_s8, %s6040_s8 }
 0x14f   : > { %p6043_p11 = pnand %p6041_p10, %p6539_p8  ;;  %p6050_p2 = por %p6049_p0, %p6048_p13 }
 0x151   : > { %p6044_p12 = pneg %p6043_p11 }
 0x153   : > { %p6051_p5 = pnand %p6050_p2, %p6044_p12 }
 0x155   : > { %6054 = shalt.err (!%p6051_p5)
}
 0x156   : > { %5278 = dma.hbm_to_vmem [thread:$0]  (!%p6525_p6), %s9339_s10, 32, %s685_s7, [#allocation16]  }
 0x157   : > { %s6344_s14 = smov [#allocation20]   ;;  %s6345_s16 = smov [#allocation23]  }
 0x158   : > { %s709_s11 = sshll.u32 %s6344_s14, 4  ;;  %s733_s5 = sshll.u32 %s6345_s16, 4  ;;  %s710_s11 = int_to_ptr.vmem [resolvable:$true] %s709_s11  ;;  %s734_s5 = int_to_ptr.vmem [resolvable:$true] %s733_s5 }
 0x159   : > { %s9340_s13 = sld [smem:[#allocation126_spill]] }
 0x15f   : > { %s6055_s19 = scalar_lea.hbm %s9340_s13, 32 }
 0x160   : > { %p6056_p7 = scmp.ne.s32.totalorder %s9340_s13, %s6055_s19  ;;  %p6062_p1 = scmp.lt.u32.totalorder %s6055_s19, %s9340_s13 }
 0x162   : > { %p6058_p9 = pnand %p6056_p7, %p6539_p8 }
 0x164   : > { %p6059_p4 = pneg %p6058_p9 }
 0x166   : > { %p6064_p3 = pnand %p6062_p1, %p6059_p4 }
 0x168   : > { %6067 = shalt.err (!%p6064_p3)
}
 0x169   : > { %s6068_s7 = scalar_lea.vmem %s710_s11, 32  ;;  %p6076_p13 = scmp.lt.s32.totalorder %s710_s11, %s710_s11 }
 0x16a   : > { %p6069_p10 = scmp.ne.s32.totalorder %s710_s11, %s6068_s7  ;;  %p6077_p0 = scmp.lt.s32.totalorder %s6068_s7, %s6068_s7 }
 0x16c   : > { %p6071_p11 = pnand %p6069_p10, %p6539_p8  ;;  %p6078_p2 = por %p6077_p0, %p6076_p13 }
 0x16e   : > { %p6072_p12 = pneg %p6071_p11 }
 0x170   : > { %p6079_p5 = pnand %p6078_p2, %p6072_p12 }
 0x172   : > { %6082 = shalt.err (!%p6079_p5)
}
 0x173   : > { %5284 = dma.hbm_to_vmem [thread:$0]  (!%p6525_p6), %s9340_s13, 32, %s710_s11, [#allocation19]  }
 0x174   : > { %s9341_s15 = sld [smem:[#allocation128_spill]] }
 0x17a   : > { %s6083_s21 = scalar_lea.hbm %s9341_s15, 32 }
 0x17b   : > { %p6084_p7 = scmp.ne.s32.totalorder %s9341_s15, %s6083_s21  ;;  %p6090_p1 = scmp.lt.u32.totalorder %s6083_s21, %s9341_s15 }
 0x17d   : > { %p6086_p9 = pnand %p6084_p7, %p6539_p8 }
 0x17f   : > { %p6087_p4 = pneg %p6086_p9 }
 0x181   : > { %p6092_p3 = pnand %p6090_p1, %p6087_p4 }
 0x183   : > { %6095 = shalt.err (!%p6092_p3)
}
 0x184   : > { %s6096_s23 = scalar_lea.vmem %s734_s5, 32  ;;  %p6104_p13 = scmp.lt.s32.totalorder %s734_s5, %s734_s5 }
 0x185   : > { %p6097_p10 = scmp.ne.s32.totalorder %s734_s5, %s6096_s23  ;;  %p6105_p0 = scmp.lt.s32.totalorder %s6096_s23, %s6096_s23 }
 0x187   : > { %p6099_p11 = pnand %p6097_p10, %p6539_p8  ;;  %p6106_p2 = por %p6105_p0, %p6104_p13 }
 0x189   : > { %p6100_p12 = pneg %p6099_p11 }
 0x18b   : > { %p6107_p5 = pnand %p6106_p2, %p6100_p12 }
 0x18d   : > { %6110 = shalt.err (!%p6107_p5)
}
 0x18e   : > { %5290 = dma.hbm_to_vmem [thread:$0]  (!%p6525_p6), %s9341_s15, 32, %s734_s5, [#allocation22]  }
 0x18f   : > { %s6346_s3 = smov [#allocation26]   ;;  %s6347_s16 = smov [#allocation29]  }
 0x190   : > { %s757_s14 = sshll.u32 %s6346_s3, 4  ;;  %s783_s24 = sshll.u32 %s6347_s16, 4  ;;  %s758_s14 = int_to_ptr.vmem [resolvable:$true] %s757_s14  ;;  %s784_s24 = int_to_ptr.vmem [resolvable:$true] %s783_s24 }
 0x191   : > { %s9342_s17 = sld [smem:[#allocation130_spill]] }
 0x197   : > { %s6111_s22 = scalar_lea.hbm %s9342_s17, 32 }
 0x198   : > { %p6112_p7 = scmp.ne.s32.totalorder %s9342_s17, %s6111_s22  ;;  %p6118_p1 = scmp.lt.u32.totalorder %s6111_s22, %s9342_s17 }
 0x19a   : > { %p6114_p9 = pnand %p6112_p7, %p6539_p8 }
 0x19c   : > { %p6115_p4 = pneg %p6114_p9 }
 0x19e   : > { %p6120_p3 = pnand %p6118_p1, %p6115_p4 }
 0x1a0   : > { %6123 = shalt.err (!%p6120_p3)
}
 0x1a1   : > { %s6124_s5 = scalar_lea.vmem %s758_s14, 32  ;;  %p6132_p13 = scmp.lt.s32.totalorder %s758_s14, %s758_s14 }
 0x1a2   : > { %p6125_p10 = scmp.ne.s32.totalorder %s758_s14, %s6124_s5  ;;  %p6133_p0 = scmp.lt.s32.totalorder %s6124_s5, %s6124_s5 }
 0x1a4   : > { %p6127_p11 = pnand %p6125_p10, %p6539_p8  ;;  %p6134_p2 = por %p6133_p0, %p6132_p13 }
 0x1a6   : > { %p6128_p12 = pneg %p6127_p11 }
 0x1a8   : > { %p6135_p5 = pnand %p6134_p2, %p6128_p12 }
 0x1aa   : > { %6138 = shalt.err (!%p6135_p5)
}
 0x1ab   : > { %5296 = dma.hbm_to_vmem [thread:$0]  (!%p6525_p6), %s9342_s17, 32, %s758_s14, [#allocation25]  }
 0x1ac   : > { %s6139_s19 = scalar_lea.hbm %s9129_s20, 6144 }
 0x1ad   : > { %p6140_p7 = scmp.ne.s32.totalorder %s9129_s20, %s6139_s19  ;;  %p6146_p1 = scmp.lt.u32.totalorder %s6139_s19, %s9129_s20 }
 0x1af   : > { %p6142_p9 = pnand %p6140_p7, %p6539_p8 }
 0x1b1   : > { %p6143_p4 = pneg %p6142_p9 }
 0x1b3   : > { %p6148_p3 = pnand %p6146_p1, %p6143_p4 }
 0x1b5   : > { %6151 = shalt.err (!%p6148_p3)
}
 0x1b6   : > { %s6152_s11 = scalar_lea.vmem %s784_s24, 6144  ;;  %p6160_p13 = scmp.lt.s32.totalorder %s784_s24, %s784_s24 }
 0x1b7   : > { %p6153_p10 = scmp.ne.s32.totalorder %s784_s24, %s6152_s11  ;;  %p6161_p0 = scmp.lt.s32.totalorder %s6152_s11, %s6152_s11 }
 0x1b9   : > { %p6155_p11 = pnand %p6153_p10, %p6539_p8  ;;  %p6162_p2 = por %p6161_p0, %p6160_p13 }
 0x1bb   : > { %p6156_p12 = pneg %p6155_p11 }
 0x1bd   : > { %p6163_p5 = pnand %p6162_p2, %p6156_p12 }
 0x1bf   : > { %6166 = shalt.err (!%p6163_p5)
}
 0x1c0   : > { %s6348_s14 = smov 192   ;;  %s6349_s30 = smov 12  }
 0x1c1   : > { %5302 = dma.hbm_to_vmem [thread:$0]  (!%p6525_p6), %s9129_s20, 6144, %s784_s24, [#allocation28], %s6348_s14, %s6348_s14, %s6349_s30  }
 0x1c2   : > { %s4727_s3 = sadd.s32 4294967294, %s6329_s9   ;;  %s6831_s16 = sadd.s32 1, %s6329_s9  }
 0x1c3   : > { %s59_s21 = sadd.s32 1, %s6325_s6  ;;  %s56_s19 = ssub.s32 %s6329_s9, %s6831_s16 }
 0x1c4   : > { %p66_p8 = scmp.ne.s32.totalorder %s6325_s6, %s6321_s28  ;;  %p57_p7 = scmp.eq.s32.totalorder %s56_s19, 0 }
 0x1c5   : > { %p67_p9 = scmp.eq.s32.totalorder %s6329_s9, 0  ;;  %p72_p4 = scmp.ne.s32.totalorder %s6321_s28, %s6317_s27 }
 0x1c6   : > { %p584_p1 = scmp.eq.s32.totalorder %s6509_s0, 1  ;;  %p9343_p10 = scmp.eq.s32.totalorder %s6509_s0, 0 }
 0x1c7   : > { %s6843_s25 = scalar_select %p57_p7, %s6325_s6, %s59_s21  }
 0x1c8   : > { %p68_p3 = por %p67_p9, %p66_p8  ;;  %p6847_p11 = por %p9343_p10, %p72_p4 }
 0x1c9   : > { %p6851_p6 = por %p584_p1, %p66_p8  ;;  %p590_p12 = scmp.eq.s32.totalorder %s4727_s3, 1 }
 0x1ca   : > { %p5329_p13 = scmp.lt.s32.totalorder %s6329_s9, 2  ;;  %s6857_s26 = sand.u32 1, %s6325_s6  }
 0x1cb   : > { %s9345_s22 = scalar_select %p6851_p6, 1, 0 }
 0x1cc   : > { %p6859_p0 = por %p590_p12, %p72_p4  ;;  %s4745_s23 = sshll.u32 %s6857_s26, 6 }
 0x1cd   : > { %s5005_s11 = sshll.u32 %s6329_s9, 10  ;;  %s9347_s5 = sld [smem:[#allocation114_spill]] }
 0x1ce   : > { %s9346_s8 = scalar_select %p6859_p0, 1, 0 }
 0x1cf   : > { %s810_s3 = scalar_lea.vmem [#allocation3], %s4745_s23  ;;  %p6870_p2 = pnand %p5329_p13, %p68_p3 }
 0x1d0   : > { %s817_s21 = sshll.u32 %s810_s3, 4  ;;  %s807_s2 = scalar_lea.sflag [#allocation4], %s6857_s26  ;;  %s6874_s21 = int_to_ptr.vmem [resolvable:$true] %s817_s21 }
 0x1d1   : > { %p6169_p8 = pneg %p6870_p2 }
 0x1d3   : > { %s6868_s7 = scalar_lea.hbm %s9347_s5, %s5005_s11  ;;  %s6172_s14 = scalar_lea.hbm %s9347_s5, 2048 }
 0x1d4   : > { %s6167_s10 = scalar_lea.hbm %s6868_s7, 1024  ;;  %p6173_p4 = scmp.lt.u32.totalorder %s6868_s7, %s9347_s5 }
 0x1d5   : > { %p6168_p5 = scmp.ne.s32.totalorder %s6868_s7, %s6167_s10  ;;  %p6174_p1 = scmp.lt.u32.totalorder %s6172_s14, %s6167_s10 }
 0x1d6   : > { %p6176_p10 = scmp.lt.u32.totalorder %s6167_s10, %s6868_s7 }
 0x1d7   : > { %p6170_p7 = pnand %p6169_p8, %p6168_p5  ;;  %p6175_p3 = por %p6174_p1, %p6173_p4 }
 0x1d9   : > { %p6171_p9 = pneg %p6170_p7  ;;  %p6177_p12 = por %p6176_p10, %p6175_p3 }
 0x1db   : > { %p6178_p13 = pnand %p6177_p12, %p6171_p9 }
 0x1dd   : > { %6181 = shalt.err (!%p6178_p13)
}
 0x1de   : > { %s6182_s1 = scalar_lea.vmem %s6874_s21, 1024  ;;  %s6350_s23 = smov [#allocation3]  }
 0x1df   : > { %p6183_p5 = scmp.ne.s32.totalorder %s6874_s21, %s6182_s1  ;;  %s6187_s11 = sshll.u32 %s6350_s23, 4  ;;  %s6188_s11 = int_to_ptr.vmem [resolvable:$false] %s6187_s11 }
 0x1e0   : > { %s6189_s30 = scalar_lea.vmem %s6188_s11, 2048  ;;  %p6190_p6 = scmp.lt.s32.totalorder %s6874_s21, %s6188_s11 }
 0x1e1   : > { %p6185_p7 = pnand %p6183_p5, %p6169_p8  ;;  %p6191_p4 = scmp.lt.s32.totalorder %s6189_s30, %s6182_s1 }
 0x1e3   : > { %p6186_p0 = pneg %p6185_p7  ;;  %p6192_p1 = por %p6191_p4, %p6190_p6 }
 0x1e5   : > { %p6193_p3 = pnand %p6192_p1, %p6186_p0 }
 0x1e7   : > { %6196 = shalt.err (!%p6193_p3)
}
 0x1e8   : > { %5306 = dma.hbm_to_vmem [thread:$0]  (!%p6870_p2), %s6868_s7, 1024, %s6874_s21, %s807_s2, %s9335_s12, %s9335_s12, %s9334_s4  }
 0x1e9   : > { %s4748_s10 = sshll.u32 %s6857_s26, 5  ;;  %s5006_s14 = sshll.u32 %s6329_s9, 9 }
 0x1ea   : > { %s9349_s23 = sld [smem:[#allocation115_spill]]  ;;  %s831_s30 = scalar_lea.vmem [#allocation6], %s4748_s10 }
 0x1eb   : > { %s838_s5 = sshll.u32 %s831_s30, 4  ;;  %s9350_s13 = sand.u32 1, %s6329_s9   ;;  %s6915_s5 = int_to_ptr.vmem [resolvable:$true] %s838_s5 }
 0x1ec   : > { %s6919_s15 = scalar_lea.sflag [#allocation7], %s9350_s13 }
 0x1f0   : > { %s6913_s11 = scalar_lea.hbm %s9349_s23, %s5006_s14  ;;  %s6202_s2 = scalar_lea.hbm %s9349_s23, 1024 }
 0x1f1   : > { %s6197_s17 = scalar_lea.hbm %s6913_s11, 512  ;;  %p6203_p10 = scmp.lt.u32.totalorder %s6913_s11, %s9349_s23 }
 0x1f2   : > { %p6198_p6 = scmp.ne.s32.totalorder %s6913_s11, %s6197_s17  ;;  %p6204_p12 = scmp.lt.u32.totalorder %s6202_s2, %s6197_s17 }
 0x1f3   : > { %p6206_p5 = scmp.lt.u32.totalorder %s6197_s17, %s6913_s11 }
 0x1f4   : > { %p6200_p0 = pnand %p6198_p6, %p6169_p8  ;;  %p6205_p13 = por %p6204_p12, %p6203_p10 }
 0x1f6   : > { %p6201_p9 = pneg %p6200_p0  ;;  %p6207_p7 = por %p6206_p5, %p6205_p13 }
 0x1f8   : > { %p6208_p4 = pnand %p6207_p7, %p6201_p9 }
 0x1fa   : > { %6211 = shalt.err (!%p6208_p4)
}
 0x1fb   : > { %s6212_s13 = scalar_lea.vmem %s6915_s5, 512  ;;  %s6351_s21 = smov [#allocation6]  }
 0x1fc   : > { %p6213_p1 = scmp.ne.s32.totalorder %s6915_s5, %s6212_s13  ;;  %s6217_s10 = sshll.u32 %s6351_s21, 4  ;;  %s6218_s10 = int_to_ptr.vmem [resolvable:$false] %s6217_s10 }
 0x1fd   : > { %s6219_s14 = scalar_lea.vmem %s6218_s10, 1024  ;;  %p6220_p0 = scmp.lt.s32.totalorder %s6915_s5, %s6218_s10 }
 0x1fe   : > { %p6215_p3 = pnand %p6213_p1, %p6169_p8  ;;  %p6221_p10 = scmp.lt.s32.totalorder %s6219_s14, %s6212_s13 }
 0x200   : > { %p6216_p6 = pneg %p6215_p3  ;;  %p6222_p12 = por %p6221_p10, %p6220_p0 }
 0x202   : > { %p6223_p13 = pnand %p6222_p12, %p6216_p6 }
 0x204   : > { %6226 = shalt.err (!%p6223_p13)
}
 0x205   : > { %s6352_s17 = smov 64   ;;  %s6353_s1 = smov 4  }
 0x206   : > { %5309 = dma.hbm_to_vmem [thread:$0]  (!%p6870_p2), %s6913_s11, 512, %s6915_s5, %s6919_s15, %s6352_s17, %s6352_s17, %s6353_s1  }
 0x207   : > { %s9351_s3 = sld [smem:[#allocation42_spill]] }
 0x20d   : > { %p9352_p8 = scmp.ne.s32.totalorder %s9351_s3, 0 }
 0x20f   : > { %850 = sbr.rel (%p9352_p8) target bundleno = 2048 (0x800), region = 116 }
 0x216   : > { %s6948_s30 = sand.u32 1, %s6321_s28  }
 0x217   : > { %s4752_s4 = sshll.u32 %s6948_s30, 6  ;;  %s853_s12 = scalar_lea.sflag [#allocation4], %s6948_s30 }
 0x218   : > { %s6952_s2 = scalar_lea.vmem [#allocation3], %s4752_s4 }
 0x219   : > { %6272 = dma.done.wait (%p6847_p11), %s853_s12, 1024  }
 0x21a   : > { %6274 = vsyncadd (%p6847_p11), %s853_s12, 4294966272  ;;  %s861_s15 = sand.u32 1, %s6509_s0   ;;  %s4753_s5 = sshll.u32 %s6948_s30, 5 }
 0x21b   : > { %s862_s19 = scalar_lea.sflag [#allocation7], %s861_s15  ;;  %s6960_s11 = scalar_lea.vmem [#allocation6], %s4753_s5 }
 0x21c   : > { %6276 = dma.done.wait (%p6847_p11), %s862_s19, 512  }
 0x21d   : > { %6278 = vsyncadd (%p6847_p11), %s862_s19, 4294966784  ;;  %p9353_p2 = scmp.eq.s32.totalorder %s6509_s0, 0 }
 0x21f   : > { %6280 = dma.done.wait (%p9353_p2), [#allocation7], 32   ;;  %p9354_p9 = pmov %p9353_p2 }
 0x220   : > { %p9355_p5 = pmov %p9353_p2 }
 0x221   : > { %6282 = vsyncadd (%p9354_p9), [#allocation7], 4294967264 }
 0x222   : > { %6284 = dma.done.wait (%p9355_p5), [#allocation10], 2080   ;;  %p9356_p7 = pmov %p9353_p2 }
 0x223   : > { %p9357_p4 = pmov %p9353_p2 }
 0x224   : > { %6286 = vsyncadd (%p9356_p7), [#allocation10], 4294965216 }
 0x225   : > { %6288 = dma.done.wait (%p9357_p4), [#allocation13], 64   ;;  %p9358_p1 = pmov %p9353_p2 }
 0x227   : > { %6290 = vsyncadd (%p9358_p1), [#allocation13], 4294967232  ;;  %p9359_p11 = pmov %p9358_p1 }
 0x228   : > { %p9360_p3 = pmov %p9358_p1 }
 0x229   : > { %6292 = dma.done.wait (%p9359_p11), [#allocation16], 64  }
 0x22a   : > { %6294 = vsyncadd (%p9360_p3), [#allocation16], 4294967232  ;;  %p9361_p6 = pmov %p9358_p1 }
 0x22b   : > { %p9362_p0 = pmov %p9358_p1 }
 0x22c   : > { %6296 = dma.done.wait (%p9361_p6), [#allocation19], 64  }
 0x22d   : > { %6298 = vsyncadd (%p9362_p0), [#allocation19], 4294967232  ;;  %p9363_p10 = pmov %p9362_p0 }
 0x22e   : > { %p9364_p12 = pmov %p9362_p0 }
 0x22f   : > { %6300 = dma.done.wait (%p9363_p10), [#allocation22], 4128  }
 0x230   : > { %6302 = vsyncadd (%p9364_p12), [#allocation22], 4294963168  ;;  %p9365_p13 = pmov %p9362_p0 }
 0x231   : > { %p9366_p8 = pmov %p9362_p0 }
 0x232   : > { %6304 = dma.done.wait (%p9365_p13), [#allocation25], 4128  }
 0x233   : > { %6306 = vsyncadd (%p9366_p8), [#allocation25], 4294963168  ;;  %p9367_p2 = pmov %p9362_p0 }
 0x234   : > { %p9368_p9 = pmov %p9362_p0 }
 0x235   : > { %6308 = dma.done.wait (%p9367_p2), [#allocation28], 10240  }
 0x236   : > { %6310 = vsyncadd (%p9368_p9), [#allocation28], 4294957056  ;;  %v6354_v1 = vmov 0   ;;  %s9369_s7 = sld [smem:[#allocation116_spill]]  ;;  %v5430_v10 = vld [vmem:[#allocation9 + $0x4] ss:$8 sps:$4 sm:$0xff]  }
 0x237   : > { %1493 = vmatprep.mubr.bf16.mxu1 %v6354_v1  ;;  %5405 = vset.pattern.permute.xlu1 %v6354_v1  ;;  %v5432_v11 = vld [vmem:[#allocation9] ss:$8 sps:$4 sm:$0xff]   ;;  %v5436_v13 = vld [vmem:[#allocation9 + $0x14] ss:$8 sps:$4 sm:$0xff]   ;;  %v5438_v14 = vld [vmem:[#allocation9 + $0x10] ss:$8 sps:$4 sm:$0xff]  }
 0x238   : > { %5404 = vset.pattern.permute.xlu0 %v6354_v1  ;;  %1461 = vmatprep.subr.bf16.mxu1 %v5430_v10  ;;  %v5442_v17 = vld [vmem:[#allocation9 + $0x24] ss:$8 sps:$4 sm:$0xff]   ;;  %v5444_v18 = vld [vmem:[#allocation9 + $0x20] ss:$8 sps:$4 sm:$0xff]   ;;  %v5448_v20 = vld [vmem:[#allocation9 + $0x34] ss:$8 sps:$4 sm:$0xff]  }
 0x239   : > { %1462 = vmatpush1.bf16.msra.mxu1 %v5432_v11  ;;  %v5450_v22 = vld [vmem:[#allocation9 + $0x30] ss:$8 sps:$4 sm:$0xff]   ;;  %v5454_v24 = vld [vmem:[#allocation9 + $0x44] ss:$8 sps:$4 sm:$0xff]   ;;  %v5456_v26 = vld [vmem:[#allocation9 + $0x40] ss:$8 sps:$4 sm:$0xff]  }
 0x23a   : > { %1463 = vmatprep.subr.bf16.mxu1 %v5436_v13  ;;  %v5460_v28 = vld [vmem:[#allocation9 + $0x54] ss:$8 sps:$4 sm:$0xff]   ;;  %v5462_v30 = vld [vmem:[#allocation9 + $0x50] ss:$8 sps:$4 sm:$0xff]   ;;  %v5466_v32 = vld [vmem:[#allocation9 + $0x64] ss:$8 sps:$4 sm:$0xff]  }
 0x23b   : > { %v5468_v35 = vld [vmem:[#allocation9 + $0x60] ss:$8 sps:$4 sm:$0xff]   ;;  %v5472_v37 = vld [vmem:[#allocation9 + $0x74] ss:$8 sps:$4 sm:$0xff]   ;;  %v5474_v39 = vld [vmem:[#allocation9 + $0x70] ss:$8 sps:$4 sm:$0xff]  }
 0x23c   : > { %v5406_v2 = vld [vmem:[%s9369_s7 + $0x4] ss:$8 sps:$4 sm:$0xff]   ;;  %v5408_v3 = vld [vmem:[%s9369_s7] ss:$8 sps:$4 sm:$0xff]   ;;  %v5409_v4 = vld [vmem:[%s9369_s7 + $0x14] ss:$8 sps:$4 sm:$0xff]  }
 0x23d   : > { %1256 = vmatprep.subr.bf16.mxu0 %v5406_v2  ;;  %v5411_v5 = vld [vmem:[%s9369_s7 + $0x10] ss:$8 sps:$4 sm:$0xff]   ;;  %v5412_v6 = vld [vmem:[%s9369_s7 + $0x24] ss:$8 sps:$4 sm:$0xff]   ;;  %v5414_v7 = vld [vmem:[%s9369_s7 + $0x20] ss:$8 sps:$4 sm:$0xff]   ;;  %1464 = vmatpush1.bf16.msra.mxu1 %v5438_v14 }
 0x23e   : > { %1257 = vmatpush1.bf16.msra.mxu0 %v5408_v3  ;;  %v5415_v8 = vld [vmem:[%s9369_s7 + $0x34] ss:$8 sps:$4 sm:$0xff]   ;;  %v5417_v9 = vld [vmem:[%s9369_s7 + $0x30] ss:$8 sps:$4 sm:$0xff]   ;;  %v5418_v12 = vld [vmem:[%s9369_s7 + $0x44] ss:$8 sps:$4 sm:$0xff]   ;;  %1465 = vmatprep.subr.bf16.mxu1 %v5442_v17 }
 0x23f   : > { %1258 = vmatprep.subr.bf16.mxu0 %v5409_v4  ;;  %v5420_v15 = vld [vmem:[%s9369_s7 + $0x40] ss:$8 sps:$4 sm:$0xff]   ;;  %v5421_v16 = vld [vmem:[%s9369_s7 + $0x54] ss:$8 sps:$4 sm:$0xff]   ;;  %v5423_v19 = vld [vmem:[%s9369_s7 + $0x50] ss:$8 sps:$4 sm:$0xff]  }
 0x240   : > { %v5424_v21 = vld [vmem:[%s9369_s7 + $0x64] ss:$8 sps:$4 sm:$0xff]   ;;  %v5426_v23 = vld [vmem:[%s9369_s7 + $0x60] ss:$8 sps:$4 sm:$0xff]   ;;  %v5427_v25 = vld [vmem:[%s9369_s7 + $0x74] ss:$8 sps:$4 sm:$0xff]  }
 0x241   : > { %1466 = vmatpush1.bf16.msra.mxu1 %v5444_v18  ;;  %v5429_v27 = vld [vmem:[%s9369_s7 + $0x70] ss:$8 sps:$4 sm:$0xff]   ;;  %v5433_v29 = vld [vmem:[%s9369_s7 + $0x84] ss:$8 sps:$4 sm:$0xff]   ;;  %v5435_v31 = vld [vmem:[%s9369_s7 + $0x80] ss:$8 sps:$4 sm:$0xff]  }
 0x242   : > { %1259 = vmatpush1.bf16.msra.mxu0 %v5411_v5  ;;  %1467 = vmatprep.subr.bf16.mxu1 %v5448_v20  ;;  %v5439_v33 = vld [vmem:[%s9369_s7 + $0x94] ss:$8 sps:$4 sm:$0xff]   ;;  %v5441_v34 = vld [vmem:[%s9369_s7 + $0x90] ss:$8 sps:$4 sm:$0xff]   ;;  %v5445_v38 = vld [vmem:[%s9369_s7 + $0xa4] ss:$8 sps:$4 sm:$0xff]  }
 0x243   : > { %1260 = vmatprep.subr.bf16.mxu0 %v5412_v6  ;;  %v5481_v36 = vld [vmem:[%s6952_s2 + $0x4] ss:$8 sps:$4 sm:$0xff]   ;;  %v5451_v41 = vld [vmem:[%s9369_s7 + $0xb4] ss:$8 sps:$4 sm:$0xff]   ;;  %v5479_v54 = vld [vmem:[%s6952_s2] ss:$8 sps:$4 sm:$0xff]  }
 0x244   : > { %1288 = vmatprep.mubr.bf16.mxu0 %v5481_v36  ;;  %v5447_v40 = vld [vmem:[%s9369_s7 + $0xa0] ss:$8 sps:$4 sm:$0xff]   ;;  %v5453_v42 = vld [vmem:[%s9369_s7 + $0xb0] ss:$8 sps:$4 sm:$0xff]   ;;  %v5457_v44 = vld [vmem:[%s9369_s7 + $0xc4] ss:$8 sps:$4 sm:$0xff]  }
 0x245   : > { %1468 = vmatpush1.bf16.msra.mxu1 %v5450_v22  ;;  %v5478_v43 = vld [vmem:[%s6960_s11] sm:$0xff]   ;;  %v5463_v46 = vld [vmem:[%s9369_s7 + $0xd4] ss:$8 sps:$4 sm:$0xff]   ;;  %v5482_v47 = vld [vmem:[%s6960_s11 + $0x8] sm:$0xff]   ;;  %s9370_s12 = sld [smem:[#allocation134_spill]]  ;;  %s9389_s24 = sld [smem:[#allocation125_spill]] }
 0x246   : > { %1261 = vmatpush1.bf16.msra.mxu0 %v5414_v7  ;;  %1469 = vmatprep.subr.bf16.mxu1 %v5454_v24  ;;  %v5459_v45 = vld [vmem:[%s9369_s7 + $0xc0] ss:$8 sps:$4 sm:$0xff]   ;;  %v5465_v48 = vld [vmem:[%s9369_s7 + $0xd0] ss:$8 sps:$4 sm:$0xff]   ;;  %v5469_v49 = vld [vmem:[%s9369_s7 + $0xe4] ss:$8 sps:$4 sm:$0xff]  }
 0x247   : > { %1262 = vmatprep.subr.bf16.mxu0 %v5415_v8  ;;  %v5471_v50 = vld [vmem:[%s9369_s7 + $0xe0] ss:$8 sps:$4 sm:$0xff]   ;;  %v5475_v51 = vld [vmem:[%s9369_s7 + $0xf4] ss:$8 sps:$4 sm:$0xff]   ;;  %v5477_v53 = vld [vmem:[%s9369_s7 + $0xf0] ss:$8 sps:$4 sm:$0xff]  }
 0x248   : > { %v5486_v52 = vld [vmem:[%s6960_s11 + $0x10] sm:$0xff]   ;;  %v5490_v56 = vld [vmem:[%s6960_s11 + $0x18] sm:$0xff]   ;;  %v5487_v58 = vld [vmem:[%s6952_s2 + $0x24] ss:$8 sps:$4 sm:$0xff]   ;;  %s9549_s3 = sld [smem:[#allocation133_spill]]  ;;  %s9636_s1 = sld [smem:[#allocation131_spill]] }
 0x249   : > { %1470 = vmatpush1.bf16.msra.mxu1 %v5456_v26  ;;  %v5483_v55 = vld [vmem:[%s6952_s2 + $0x14] ss:$8 sps:$4 sm:$0xff]   ;;  %v5485_v57 = vld [vmem:[%s6952_s2 + $0x10] ss:$8 sps:$4 sm:$0xff]   ;;  %v5489_v59 = vld [vmem:[%s6952_s2 + $0x20] ss:$8 sps:$4 sm:$0xff]  }
 0x24a   : > { %1263 = vmatpush1.bf16.msra.mxu0 %v5417_v9  ;;  %1471 = vmatprep.subr.bf16.mxu1 %v5460_v28  ;;  %v5491_v60 = vld [vmem:[%s6952_s2 + $0x34] ss:$8 sps:$4 sm:$0xff]   ;;  %v5493_v61 = vld [vmem:[%s6952_s2 + $0x30] ss:$8 sps:$4 sm:$0xff]   ;;  %s9651_s5 = sld [smem:[#allocation132_spill]]  ;;  %s5189_s11 = smul.u32 192, %s6948_s30 }
 0x24b   : > { %1264 = vmatprep.subr.bf16.mxu0 %v5418_v12  ;;  %v1636_v62 = vld [vmem:[%s9370_s12 + $0x80] sm:$0xff]  ;;  %v1637_v63 = vld [vmem:[%s9370_s12 + $0x88] sm:$0xff]  ;;  %v1638_v4 = vld [vmem:[%s9370_s12 + $0x90] sm:$0xff]  ;;  %s5190_s26 = smul.u32 3072, %s6509_s0  ;;  %s9653_s21 = sld [smem:[#allocation135_spill]] }
 0x24c   : > { %v5117_v0 = vpack.c.bf16 %v1637_v63, %v1636_v62  ;;  %v1621_v2 = vld [vmem:[%s9370_s12 + $0x8] sm:$0xff]  ;;  %v1639_v5 = vld [vmem:[%s9370_s12 + $0x98] sm:$0xff]  ;;  %v1622_v7 = vld [vmem:[%s9370_s12 + $0x10] sm:$0xff]  ;;  %s9010_s19 = scalar_lea.vmem [#allocation30], %s5189_s11  ;;  %s4476_s14 = scalar_lea.sflag [#allocation5], %s6948_s30 }
 0x24d   : > { %1472 = vmatpush1.bf16.msra.mxu1 %v5462_v30  ;;  %v5121_v6 = vpack.c.bf16 %v1639_v5, %v1638_v4  ;;  %v1623_v8 = vld [vmem:[%s9370_s12 + $0x18] sm:$0xff]  ;;  %v1640_v10 = vld [vmem:[%s9370_s12 + $0xa0] sm:$0xff]  ;;  %v1641_v11 = vld [vmem:[%s9370_s12 + $0xa8] sm:$0xff]  ;;  %s4489_s2 = sshll.u32 %s9010_s19, 4  ;;  %p9654_p7 = scmp.ne.s32.totalorder %s9345_s22, 0  ;;  %s9064_s2 = int_to_ptr.vmem [resolvable:$true] %s4489_s2 }
 0x24e   : > { %1265 = vmatpush1.bf16.msra.mxu0 %v5420_v15  ;;  %1473 = vmatprep.subr.bf16.mxu1 %v5466_v32  ;;  %v5123_v9 = vpack.c.bf16 %v1623_v8, %v1622_v7  ;;  %v5125_v12 = vpack.c.bf16 %v1641_v11, %v1640_v10  ;;  %v1624_v13 = vld [vmem:[%s9370_s12 + $0x20] sm:$0xff]  ;;  %v1625_v14 = vld [vmem:[%s9370_s12 + $0x28] sm:$0xff]  ;;  %v1643_v17 = vld [vmem:[%s9370_s12 + $0xb8] sm:$0xff]  ;;  %s6227_s17 = scalar_lea.vmem %s9064_s2, 3072 }
 0x24f   : > { %1266 = vmatprep.subr.bf16.mxu0 %v5421_v16  ;;  %v5127_v15 = vpack.c.bf16 %v1625_v14, %v1624_v13  ;;  %v1642_v16 = vld [vmem:[%s9370_s12 + $0xb0] sm:$0xff]  ;;  %v1627_v20 = vld [vmem:[%s9370_s12 + $0x38] sm:$0xff]  ;;  %v1644_v22 = vld [vmem:[%s9370_s12 + $0xc0] sm:$0xff]  ;;  %p6228_p5 = scmp.ne.s32.totalorder %s9064_s2, %s6227_s17 }
 0x250   : > { %v5129_v18 = vpack.c.bf16 %v1643_v17, %v1642_v16  ;;  %v1629_v26 = vld [vmem:[%s9370_s12 + $0x48] sm:$0xff]  ;;  %v1646_v28 = vld [vmem:[%s9370_s12 + $0xd0] sm:$0xff]  ;;  %v1631_v32 = vld [vmem:[%s9370_s12 + $0x58] sm:$0xff] }
 0x251   : > { %1474 = vmatpush1.bf16.msra.mxu1 %v5468_v35  ;;  %v1649_v35 = vld [vmem:[%s9370_s12 + $0xe8] sm:$0xff]  ;;  %s9059_s10 = scalar_lea.hbm %s9653_s21, %s5190_s26  ;;  %p6229_p4 = pnand %p6228_p5, %p9654_p7 }
 0x252   : > { %1267 = vmatpush1.bf16.msra.mxu0 %v5423_v19  ;;  %1475 = vmatprep.subr.bf16.mxu1 %v5472_v37  ;;  %v1626_v19 = vld [vmem:[%s9370_s12 + $0x30] sm:$0xff]  ;;  %v1632_v37 = vld [vmem:[%s9370_s12 + $0x60] sm:$0xff] }
 0x253   : > { %1268 = vmatprep.subr.bf16.mxu0 %v5424_v21  ;;  %v5131_v21 = vpack.c.bf16 %v1627_v20, %v1626_v19  ;;  %p6230_p1 = pneg %p6229_p4 }
 0x255   : > { %1476 = vmatpush1.bf16.msra.mxu1 %v5474_v39 }
 0x256   : > { %1269 = vmatpush1.bf16.msra.mxu0 %v5426_v23  ;;  %5118 = vmatprep.subr.bf16.mxu1 %v5117_v0  ;;  %v1645_v23 = vld [vmem:[%s9370_s12 + $0xc8] sm:$0xff] }
 0x257   : > { %1270 = vmatprep.subr.bf16.mxu0 %v5427_v25  ;;  %v5133_v24 = vpack.c.bf16 %v1645_v23, %v1644_v22  ;;  %v1628_v25 = vld [vmem:[%s9370_s12 + $0x40] sm:$0xff] }
 0x258   : > { %1494 = vmatmul.mubr.bf16.vlgmr.msra.gmra.mrb[0].mxu1 %v5478_v43  ;;  %v1634_v43 = vld [vmem:[%s9370_s12 + $0x70] sm:$0xff] }
 0x259   : > { %1503 = vmatprep.mubr.bf16.mxu1 %v6354_v1 }
 0x25a   : > { %1271 = vmatpush1.bf16.msra.mxu0 %v5429_v27  ;;  %v5135_v27 = vpack.c.bf16 %v1629_v26, %v1628_v25 }
 0x25b   : > { %1272 = vmatprep.subr.bf16.mxu0 %v5433_v29  ;;  %v1647_v29 = vld [vmem:[%s9370_s12 + $0xd8] sm:$0xff] }
 0x25c   : > { %v5137_v30 = vpack.c.bf16 %v1647_v29, %v1646_v28 }
 0x25e   : > { %1273 = vmatpush1.bf16.msra.mxu0 %v5435_v31  ;;  %v1630_v31 = vld [vmem:[%s9370_s12 + $0x50] sm:$0xff] }
 0x25f   : > { %1274 = vmatprep.subr.bf16.mxu0 %v5439_v33  ;;  %v5139_v33 = vpack.c.bf16 %v1631_v32, %v1630_v31 }
 0x260   : > { %1504 = vmatmul.mubr.bf16.gmra.mrb[4].mxu1 %v5482_v47 }
 0x261   : > { %1513 = vmatprep.mubr.bf16.mxu1 %v6354_v1 }
 0x262   : > { %1275 = vmatpush1.bf16.msra.mxu0 %v5441_v34  ;;  %v1648_v34 = vld [vmem:[%s9370_s12 + $0xe0] sm:$0xff] }
 0x263   : > { %1276 = vmatprep.subr.bf16.mxu0 %v5445_v38  ;;  %v5141_v36 = vpack.c.bf16 %v1649_v35, %v1648_v34  ;;  %v1633_v38 = vld [vmem:[%s9370_s12 + $0x68] sm:$0xff] }
 0x264   : > { %v5143_v39 = vpack.c.bf16 %v1633_v38, %v1632_v37  ;;  %v9161_v37 = vmov 0.0  }
 0x266   : > { %1277 = vmatpush1.bf16.msra.mxu0 %v5447_v40  ;;  %v1650_v40 = vld [vmem:[%s9370_s12 + $0xf0] sm:$0xff] }
 0x267   : > { %1278 = vmatprep.subr.bf16.mxu0 %v5451_v41  ;;  %v1651_v41 = vld [vmem:[%s9370_s12 + $0xf8] sm:$0xff] }
 0x268   : > { %1514 = vmatmul.mubr.bf16.gmra.mrb[8].mxu1 %v5486_v52  ;;  %v2013_v52 = vld [vmem:[#allocation14] sm:$0x3] }
 0x269   : > { %1523 = vmatprep.mubr.bf16.mxu1 %v6354_v1  ;;  %v1620_v1 = vld [vmem:[%s9370_s12] sm:$0xff] }
 0x26a   : > { %1279 = vmatpush1.bf16.msra.mxu0 %v5453_v42  ;;  %v5119_v3 = vpack.c.bf16 %v1621_v2, %v1620_v1  ;;  %v5145_v42 = vpack.c.bf16 %v1651_v41, %v1650_v40 }
 0x26b   : > { %1280 = vmatprep.subr.bf16.mxu0 %v5457_v44  ;;  %v1635_v44 = vld [vmem:[%s9370_s12 + $0x78] sm:$0xff] }
 0x26c   : > { %5120 = vmatpush3.bf16.msra.mxu1 %v5119_v3 }
 0x26d   : > { %5122 = vmatprep.subr.bf16.mxu1 %v5121_v6 }
 0x26e   : > { %1281 = vmatpush1.bf16.msra.mxu0 %v5459_v45  ;;  %v5147_v45 = vpack.c.bf16 %v1635_v44, %v1634_v43 }
 0x26f   : > { %1282 = vmatprep.subr.bf16.mxu0 %v5463_v46  ;;  %v1046_v46 = vlaneseq }
 0x270   : > { %1524 = vmatmul.mubr.bf16.gmra.mrb[12].mxu1 %v5490_v56 }
 0x271   : > { %5124 = vmatpush3.bf16.msra.mxu1 %v5123_v9  ;;  %v7208_v47 = vshrl.u32 %v1046_v46, 7  ;;  %v3138_v46 = vld [vmem:[%s9389_s24 + $0x8] sm:$0xff] }
 0x272   : > { %1283 = vmatpush1.bf16.msra.mxu0 %v5465_v48  ;;  %5126 = vmatprep.subr.bf16.mxu1 %v5125_v12 }
 0x273   : > { %1284 = vmatprep.subr.bf16.mxu0 %v5469_v49  ;;  %9371 = vst [vmem:[#allocation43_spill] sm:$0xff] %v7208_v47  ;;  %v7211_v48 = vsub.s32 0, %v7208_v47  ;;  %v1345_v49 = vld [vmem:[#allocation11] sm:$0x3]  ;;  %v3026_v1 = vadd.s32 8, %v7208_v47  ;;  %v7249_v7 = vsub.s32 1, %v7208_v47 }
 0x274   : > { %v3033_v13 = vand.u32 7, %v7208_v47  ;;  %v3265_v40 = vsub.s32 4, %v7208_v47  ;;  %v3305_v32 = vsub.s32 5, %v7208_v47 }
 0x275   : > { %5128 = vmatpush3.bf16.msra.mxu1 %v5127_v15  ;;  %9372 = vst [vmem:[#allocation44_spill] sm:$0xff] %v7211_v48  ;;  %v7223_v56 = vrot.slane %v2013_v52, %v7211_v48  ;;  %9373 = vst [vmem:[#allocation45_spill] sm:$0xff] %v7249_v7  ;;  %v3034_v14 = vand.u32 7, %v3026_v1  ;;  %v7265_v20 = vrot.slane %v1345_v49, %v7249_v7 }
 0x276   : > { %1285 = vmatpush1.bf16.msra.mxu0 %v5471_v50  ;;  %5130 = vmatprep.subr.bf16.mxu1 %v5129_v18  ;;  %v2012_v50 = vld [vmem:[#allocation12] sm:$0x3]  ;;  %v7271_v22 = vrot.slane %v2013_v52, %v7249_v7  ;;  %vm3041_vm0 = vcmp.ge.s32.totalorder %v3033_v13, 1  ;;  %vm7289_vm3 = vcmp.le.s32.totalorder %v3033_v13, 6 }
 0x277   : > { %1286 = vmatprep.subr.bf16.mxu0 %v5475_v51  ;;  %v7214_v51 = vrot.slane %v1345_v49, %v7211_v48  ;;  %vm3042_vm1 = vcmp.ge.s32.totalorder %v3034_v14, 1  ;;  %vm7302_vm5 = vcmp.le.s32.totalorder %v3034_v14, 6  ;;  %v7314_v38 = vsel %vm3041_vm0, 1.0, %v9161_v37 }
 0x278   : > { %9386 = vst [vmem:[#allocation48_spill] sm:$0xff] %v7314_v38  ;;  %v7353_v52 = vsel %vm7302_vm5, 1.0, %v9161_v37 }
 0x279   : > { %5132 = vmatpush3.bf16.msra.mxu1 %v5131_v21  ;;  %9393 = vst [vmem:[#allocation54_spill] sm:$0xff] %v7353_v52 }
 0x27a   : > { %1287 = vmatpush1.bf16.msra.mxu0 %v5477_v53  ;;  %5134 = vmatprep.subr.bf16.mxu1 %v5133_v24  ;;  %v7217_v53 = vrot.slane %v2012_v50, %v7211_v48 }
 0x27b   : > { %5150 = vmatprep.subr.bf16.mxu0 %v5117_v0 }
 0x27d   : > { %1289 = vmatmul.mubr.bf16.vlgmr.msra.gmra.mrb[0].mxu0 %v5479_v54  ;;  %5136 = vmatpush3.bf16.msra.mxu1 %v5135_v27 }
 0x27e   : > { %1298 = vmatprep.mubr.bf16.mxu0 %v5483_v55  ;;  %5152 = vmatpush3.bf16.msra.mxu0 %v5119_v3  ;;  %v3027_v3 = vadd.s32 16, %v7208_v47 }
 0x27f   : > { %5154 = vmatprep.subr.bf16.mxu0 %v5121_v6  ;;  %5138 = vmatprep.subr.bf16.mxu1 %v5137_v30  ;;  %v3032_v6 = vadd.s32 56, %v7208_v47 }
 0x281   : > { %5140 = vmatpush3.bf16.msra.mxu1 %v5139_v33  ;;  %v3040_v19 = vand.u32 7, %v3032_v6 }
 0x282   : > { %5156 = vmatpush3.bf16.msra.mxu0 %v5123_v9  ;;  %5142 = vmatprep.subr.bf16.mxu1 %v5141_v36  ;;  %v1044_v9 = vld [vmem:[#allocation8] sm:$0x3] }
 0x283   : > { %5158 = vmatprep.subr.bf16.mxu0 %v5125_v12  ;;  %v7274_v23 = vrot.slane %v1044_v9, %v7211_v48  ;;  %v7280_v25 = vrot.slane %v1044_v9, %v7249_v7  ;;  %vm7298_vm4 = vcmp.ge.s32.totalorder %v3040_v19, 1  ;;  %vm3072_vm7 = vcmp.le.s32.totalorder %v3040_v19, 6 }
 0x284   : > { %v7343_v49 = vsel %vm7298_vm4, 1.0, %v9161_v37 }
 0x285   : > { %1299 = vmatmul.mubr.bf16.gmra.mrb[4].mxu0 %v5485_v57  ;;  %5144 = vmatpush3.bf16.msra.mxu1 %v5143_v39  ;;  %9391 = vst [vmem:[#allocation52_spill] sm:$0xff] %v7343_v49 }
 0x286   : > { %1308 = vmatprep.mubr.bf16.mxu0 %v5487_v58  ;;  %5160 = vmatpush3.bf16.msra.mxu0 %v5127_v15  ;;  %v3035_v15 = vand.u32 7, %v3027_v3 }
 0x287   : > { %5162 = vmatprep.subr.bf16.mxu0 %v5129_v18  ;;  %5146 = vmatprep.subr.bf16.mxu1 %v5145_v42  ;;  %v2248_v18 = vld [vmem:[#allocation15] sm:$0x3] }
 0x288   : > { %v7283_v26 = vrot.slane %v2248_v18, %v7211_v48  ;;  %vm7285_vm2 = vcmp.ge.s32.totalorder %v3035_v15, 1  ;;  %vm7306_vm6 = vcmp.le.s32.totalorder %v3035_v15, 6  ;;  %v7311_v35 = vrot.slane %v2248_v18, %v7249_v7 }
 0x289   : > { %5148 = vmatpush3.bf16.msra.mxu1 %v5147_v45  ;;  %v7330_v44 = vsel %vm7285_vm2, 1.0, %v9161_v37  ;;  %v7383_v15 = vrot.slane %v3138_v46, %v7249_v7 }
 0x28a   : > { %5164 = vmatpush3.bf16.msra.mxu0 %v5131_v21  ;;  %v7268_v21 = vrot.slane %v2012_v50, %v7249_v7  ;;  %9374 = vst [vmem:[#allocation46_spill] sm:$0xff] %v7283_v26  ;;  %9385 = vst [vmem:[#allocation47_spill] sm:$0xff] %v7311_v35  ;;  %v7348_v50 = vsel %vm7289_vm3, 1.0, %v9161_v37 }
 0x28b   : > { %5166 = vmatprep.subr.bf16.mxu0 %v5133_v24  ;;  %9388 = vst [vmem:[#allocation50_spill] sm:$0xff] %v7330_v44  ;;  %9392 = vst [vmem:[#allocation53_spill] sm:$0xff] %v7348_v50 }
 0x28c   : > { %9400 = vst [vmem:[#allocation61_spill] sm:$0xff] %v7383_v15 }
 0x28d   : > { %1309 = vmatmul.mubr.bf16.gmra.mrb[8].mxu0 %v5489_v59 }
 0x28e   : > { %1318 = vmatprep.mubr.bf16.mxu0 %v5491_v60  ;;  %5168 = vmatpush3.bf16.msra.mxu0 %v5135_v27 }
 0x28f   : > { %5170 = vmatprep.subr.bf16.mxu0 %v5137_v30 }
 0x292   : > { %5172 = vmatpush3.bf16.msra.mxu0 %v5139_v33 }
 0x293   : > { %5174 = vmatprep.subr.bf16.mxu0 %v5141_v36 }
 0x295   : > { %1319 = vmatmul.mubr.bf16.gmra.mrb[12].mxu0 %v5493_v61 }
 0x296   : > { %5176 = vmatpush3.bf16.msra.mxu0 %v5143_v39  ;;  %v7317_v39 = vsel %vm3042_vm1, 1.0, %v9161_v37 }
 0x297   : > { %5178 = vmatprep.subr.bf16.mxu0 %v5145_v42  ;;  %9387 = vst [vmem:[#allocation49_spill] sm:$0xff] %v7317_v39 }
 0x29a   : > { %5180 = vmatpush3.bf16.msra.mxu0 %v5147_v45  ;;  %v7335_v45 = vld [vmem:[%s9389_s24] sm:$0xff] }
 0x29b   : > { %9390 = vst [vmem:[#allocation51_spill] sm:$0xff] %v7335_v45  ;;  %v7372_v9 = vrot.slane %v7335_v45, %v3265_v40 }
 0x29d   : > { %9397 = vst [vmem:[#allocation58_spill] sm:$0xff] %v7372_v9 }
 0x32b   : > { %v1495_v54 = vpop.f32.mrb[0].mxu1 }
 0x32c   : > { %v7220_v55 = vadd.f32 %v1495_v54, %v7214_v51  ;;  %v1497_v57 = vpop.f32.mrb[1].mxu1  ;;  %v7358_v54 = vsel %vm7306_vm6, 1.0, %v9161_v37 }
 0x32d   : > { %v1499_v58 = vpop.f32.mrb[2].mxu1  ;;  %9394 = vst [vmem:[#allocation55_spill] sm:$0xff] %v7358_v54 }
 0x32e   : > { %v2084_v59 = vmul.f32 %v7217_v53, %v7220_v55  ;;  %v7228_v60 = vadd.f32 %v1499_v58, %v7214_v51  ;;  %v7230_v61 = vpop.f32.mrb[3].mxu1  ;;  %v1498_v58 = vadd.f32 %v1497_v57, %v7265_v20 }
 0x32f   : > { %v7394_v33 = vadd.f32 %v7230_v61, %v7265_v20 }
 0x330   : > { %v7233_v62 = vadd.f32 %v2084_v59, %v7223_v56  ;;  %v2086_v63 = vmul.f32 %v7217_v53, %v7228_v60 }
 0x332   : > { %v7238_v0 = vadd.f32 %v2086_v63, %v7223_v56 }
 0x333   : > { %v1505_v2 = vpop.f32.mrb[4].mxu1 }
 0x334   : > { %v7243_v4 = vadd.f32 %v1505_v2, %v7214_v51  ;;  %v7245_v5 = vpop.f32.mrb[5].mxu1  ;;  %v3241_v2 = vsub.s32 3, %v7208_v47 }
 0x335   : > { %v1509_v8 = vpop.f32.mrb[6].mxu1 }
 0x336   : > { %v2088_v10 = vmul.f32 %v7217_v53, %v7243_v4  ;;  %v7254_v11 = vadd.f32 %v1509_v8, %v7214_v51  ;;  %v7256_v12 = vpop.f32.mrb[7].mxu1  ;;  %v7369_v8 = vsel %vm3072_vm7, 1.0, %v9161_v37  ;;  %v7424_v37 = vrot.slane %v3138_v46, %v3241_v2 }
 0x337   : > { %9396 = vst [vmem:[#allocation57_spill] sm:$0xff] %v7369_v8 }
 0x338   : > { %v7260_v16 = vadd.f32 %v2088_v10, %v7223_v56  ;;  %v2090_v17 = vmul.f32 %v7217_v53, %v7254_v11  ;;  %v7374_v10 = vrot.slane %v3138_v46, %v3265_v40  ;;  %v7405_v40 = vrot.slane %v7335_v45, %v3241_v2  ;;  %9406 = vst [vmem:[#allocation67_spill] sm:$0xff] %v7424_v37 }
 0x339   : > { %v1508_v2 = vadd.f32 %v7245_v5, %v7265_v20 }
 0x33a   : > { %v7277_v24 = vadd.f32 %v2090_v17, %v7223_v56  ;;  %9398 = vst [vmem:[#allocation59_spill] sm:$0xff] %v7374_v10  ;;  %v3533_v17 = vsub.s32 7, %v7208_v47  ;;  %9403 = vst [vmem:[#allocation64_spill] sm:$0xff] %v7405_v40 }
 0x33b   : > { %v1515_v27 = vpop.f32.mrb[8].mxu1  ;;  %v2089_v44 = vmul.f32 %v7268_v21, %v1508_v2 }
 0x33c   : > { %v7294_v30 = vadd.f32 %v1515_v27, %v7214_v51  ;;  %v7296_v31 = vpop.f32.mrb[9].mxu1  ;;  %v7435_v9 = vrot.slane %v7335_v45, %v3533_v17 }
 0x33d   : > { %v1519_v36 = vpop.f32.mrb[10].mxu1 }
 0x33e   : > { %v2092_v41 = vmul.f32 %v7217_v53, %v7294_v30  ;;  %v7323_v42 = vadd.f32 %v1519_v36, %v7214_v51  ;;  %v7325_v43 = vpop.f32.mrb[11].mxu1  ;;  %9410 = vst [vmem:[#allocation71_spill] sm:$0xff] %v7435_v9  ;;  %v3343_v9 = vld [vmem:[#allocation20] sm:$0x3] }
 0x340   : > { %v7362_v63 = vadd.f32 %v2092_v41, %v7223_v56  ;;  %v2094_v1 = vmul.f32 %v7217_v53, %v7323_v42 }
 0x342   : > { %9395 = vst [vmem:[#allocation56_spill] sm:$0xff] %v7362_v63  ;;  %v7380_v14 = vadd.f32 %v2094_v1, %v7223_v56 }
 0x343   : > { %v1525_v29 = vpop.f32.mrb[12].mxu1 }
 0x344   : > { %9399 = vst [vmem:[#allocation60_spill] sm:$0xff] %v7380_v14  ;;  %v7414_v61 = vadd.f32 %v1525_v29, %v7214_v51  ;;  %v7432_v29 = vrot.slane %v3138_v46, %v3305_v32 }
 0x346   : > { %9409 = vst [vmem:[#allocation70_spill] sm:$0xff] %v7432_v29 }
 0x350   : > { %v1290_v59 = vpop.f32.mrb[0].mxu0 }
 0x351   : > { %v1291_v3 = vadd.f32 %v1290_v59, %v7274_v23  ;;  %v1292_v6 = vpop.f32.mrb[1].mxu0 }
 0x352   : > { %v7377_v57 = vadd.f32 %v1292_v6, %v7280_v25  ;;  %v1294_v13 = vpop.f32.mrb[2].mxu0 }
 0x353   : > { %v7387_v18 = vadd.f32 %v7220_v55, %v1291_v3  ;;  %v2025_v19 = vmul.f32 %v7217_v53, %v1291_v3  ;;  %v1295_v27 = vadd.f32 %v1294_v13, %v7274_v23  ;;  %v1296_v28 = vpop.f32.mrb[3].mxu0  ;;  %v7402_v55 = vpop.f32.mrb[13].mxu1  ;;  %v3509_v3 = vsub.s32 6, %v7208_v47 }
 0x354   : > { %v7397_v34 = vadd.f32 %v1498_v58, %v7377_v57  ;;  %v7400_v36 = vadd.f32 %v1296_v28, %v7280_v25  ;;  %v1529_v1 = vpop.f32.mrb[14].mxu1 }
 0x355   : > { %9401 = vst [vmem:[#allocation62_spill] sm:$0xff] %v7387_v18  ;;  %v7408_v41 = vadd.f32 %v7223_v56, %v2025_v19  ;;  %v7411_v59 = vadd.f32 %v7228_v60, %v1295_v27  ;;  %v2027_v6 = vmul.f32 %v7217_v53, %v1295_v27  ;;  %v7422_v28 = vpop.f32.mrb[15].mxu1  ;;  %v7427_v19 = vsub.s32 2, %v7208_v47 }
 0x356   : > { %9402 = vst [vmem:[#allocation63_spill] sm:$0xff] %v7397_v34  ;;  %v7420_v13 = vadd.f32 %v7394_v33, %v7400_v36  ;;  %v7430_v60 = vrot.slane %v7335_v45, %v3305_v32  ;;  %v7437_v27 = vrot.slane %v3138_v46, %v3533_v17  ;;  %v2096_v17 = vmul.f32 %v7217_v53, %v7414_v61 }
 0x357   : > { %9404 = vst [vmem:[#allocation65_spill] sm:$0xff] %v7411_v59  ;;  %9407 = vst [vmem:[#allocation68_spill] sm:$0xff] %v7427_v19  ;;  %v7440_v40 = vadd.f32 %v7223_v56, %v2027_v6  ;;  %v2262_v54 = vmul.f32 %v7283_v26, %v7411_v59  ;;  %v7452_v6 = vrot.slane %v3138_v46, %v7211_v48 }
 0x358   : > { %9405 = vst [vmem:[#allocation66_spill] sm:$0xff] %v7420_v13  ;;  %9408 = vst [vmem:[#allocation69_spill] sm:$0xff] %v7430_v60  ;;  %v1300_v15 = vpop.f32.mrb[4].mxu0  ;;  %v2263_v60 = vmul.f32 %v7311_v35, %v7420_v13  ;;  %v7461_v37 = vrot.slane %v3138_v46, %v7427_v19 }
 0x359   : > { %9411 = vst [vmem:[#allocation72_spill] sm:$0xff] %v7437_v27  ;;  %v1301_v32 = vadd.f32 %v1300_v15, %v7274_v23  ;;  %v1302_v29 = vpop.f32.mrb[5].mxu0  ;;  %9412 = vst [vmem:[#allocation73_spill] sm:$0xff] %v7452_v6  ;;  %v7455_v27 = vrot.slane %v7335_v45, %v3509_v3  ;;  %v7463_v15 = vrot.slane %v3138_v46, %v3509_v3 }
 0x35a   : > { %v7458_v5 = vadd.f32 %v1302_v29, %v7280_v25  ;;  %v1304_v10 = vpop.f32.mrb[6].mxu0  ;;  %v2279_v8 = vadd.f32 %v2263_v60, %v2262_v54  ;;  %9414 = vst [vmem:[#allocation75_spill] sm:$0xff] %v7461_v37  ;;  %v2085_v29 = vmul.f32 %v7268_v21, %v1498_v58  ;;  %v7489_v3 = vrot.slane %v3343_v9, %v7249_v7 }
 0x35b   : > { %9413 = vst [vmem:[#allocation74_spill] sm:$0xff] %v7455_v27  ;;  %9415 = vst [vmem:[#allocation76_spill] sm:$0xff] %v7463_v15  ;;  %v7466_v52 = vadd.f32 %v7243_v4, %v1301_v32  ;;  %v2029_v50 = vmul.f32 %v7217_v53, %v1301_v32  ;;  %v1305_v6 = vadd.f32 %v1304_v10, %v7274_v23  ;;  %v1306_v49 = vpop.f32.mrb[7].mxu0 }
 0x35c   : > { %v7471_v27 = vadd.f32 %v2096_v17, %v7223_v56  ;;  %v7475_v54 = vadd.f32 %v1508_v2, %v7458_v5  ;;  %v7478_v60 = vadd.f32 %v1306_v49, %v7280_v25  ;;  %2280 = vadd.xlane.f32.xlu1 %v2279_v8  ;;  %v7481_v4 = vrot.slane %v3343_v9, %v7211_v48 }
 0x35d   : > { %9416 = vst [vmem:[#allocation77_spill] sm:$0xff] %v7466_v52  ;;  %v7484_v46 = vadd.f32 %v7223_v56, %v2029_v50  ;;  %v1512_v10 = vadd.f32 %v7256_v12, %v7265_v20  ;;  %9420 = vst [vmem:[#allocation81_spill] sm:$0xff] %v7489_v3  ;;  %v7493_v58 = vrot.slane %v7335_v45, %v7249_v7  ;;  %v7503_v50 = vadd.s32 24, %v7208_v47 }
 0x35e   : > { %9417 = vst [vmem:[#allocation78_spill] sm:$0xff] %v7471_v27  ;;  %9418 = vst [vmem:[#allocation79_spill] sm:$0xff] %v7475_v54  ;;  %v7496_v49 = vadd.f32 %v7254_v11, %v1305_v6  ;;  %v2031_v8 = vmul.f32 %v7217_v53, %v1305_v6  ;;  %v7500_v32 = vadd.f32 %v1529_v1, %v7214_v51 }
 0x35f   : > { %9419 = vst [vmem:[#allocation80_spill] sm:$0xff] %v7481_v4  ;;  %9421 = vst [vmem:[#allocation82_spill] sm:$0xff] %v7493_v58  ;;  %v1550_v12 = vadd.f32 %v7411_v59, %v7387_v18  ;;  %v7508_v9 = vadd.f32 %v1512_v10, %v7478_v60  ;;  %v2264_v17 = vmul.f32 %v7283_v26, %v7466_v52  ;;  %v7523_v4 = vadd.s32 32, %v7208_v47 }
 0x360   : > { %9422 = vst [vmem:[#allocation83_spill] sm:$0xff] %v7496_v49  ;;  %9423 = vst [vmem:[#allocation84_spill] sm:$0xff] %v7503_v50  ;;  %v2265_v11 = vmul.f32 %v7311_v35, %v7475_v54  ;;  %v7515_v6 = vadd.f32 %v2085_v29, %v7271_v22  ;;  %v7518_v51 = vadd.f32 %v7223_v56, %v2031_v8  ;;  %v1310_v7 = vpop.f32.mrb[8].mxu0 }
 0x361   : > { %9424 = vst [vmem:[#allocation85_spill] sm:$0xff] %v7508_v9  ;;  %v1518_v1 = vadd.f32 %v7296_v31, %v7265_v20  ;;  %9425 = vst [vmem:[#allocation86_spill] sm:$0xff] %v7523_v4  ;;  %v1551_v58 = vadd.f32 %v1550_v12, %v7466_v52  ;;  %v1311_v3 = vadd.f32 %v1310_v7, %v7274_v23  ;;  %v1312_v37 = vpop.f32.mrb[9].mxu0 }
 0x362   : > { %v1522_v15 = vadd.f32 %v7325_v43, %v7265_v20  ;;  %v2282_v29 = vadd.f32 %v2265_v11, %v2264_v17  ;;  %v2087_v8 = vmul.f32 %v7268_v21, %v7394_v33  ;;  %v7533_v31 = vadd.f32 %v1312_v37, %v7280_v25  ;;  %v1314_v39 = vpop.f32.mrb[10].mxu0 }
 0x363   : > { %v2098_v38 = vmul.f32 %v7217_v53, %v7500_v32  ;;  %v2091_v12 = vmul.f32 %v7268_v21, %v1512_v10  ;;  %v7539_v7 = vadd.f32 %v7294_v30, %v1311_v3  ;;  %v2033_v43 = vmul.f32 %v7217_v53, %v1311_v3  ;;  %v1316_v33 = vpop.f32.mrb[11].mxu0 }
 0x364   : > { %v1315_v17 = vadd.f32 %v1314_v39, %v7274_v23  ;;  %2283 = vadd.xlane.f32.xlu1 %v2282_v29  ;;  %v2093_v2 = vmul.f32 %v7268_v21, %v1518_v1  ;;  %v7545_v37 = vadd.f32 %v1518_v1, %v7533_v31  ;;  %v7548_v11 = vadd.f32 %v1316_v33, %v7280_v25 }
 0x365   : > { %9426 = vst [vmem:[#allocation87_spill] sm:$0xff] %v7539_v7  ;;  %v7551_v47 = vadd.f32 %v2098_v38, %v7223_v56  ;;  %v1552_v30 = vadd.f32 %v1551_v58, %v7496_v49  ;;  %v7555_v10 = vadd.f32 %v7223_v56, %v2033_v43  ;;  %v2095_v39 = vmul.f32 %v7268_v21, %v1522_v15 }
 0x366   : > { %9427 = vst [vmem:[#allocation88_spill] sm:$0xff] %v7545_v37  ;;  %v7559_v3 = vadd.f32 %v7323_v42, %v1315_v17  ;;  %v7562_v29 = vadd.f32 %v2087_v8, %v7271_v22  ;;  %v2026_v1 = vmul.f32 %v7268_v21, %v7377_v57  ;;  %v2035_v33 = vmul.f32 %v7217_v53, %v1315_v17 }
 0x367   : > { %v7568_v38 = vadd.f32 %v1522_v15, %v7548_v11  ;;  %v7571_v58 = vadd.f32 %v2089_v44, %v7271_v22  ;;  %v7574_v43 = vadd.f32 %v2091_v12, %v7271_v22  ;;  %v1553_v42 = vadd.f32 %v1552_v30, %v7539_v7 }
 0x368   : > { %9428 = vst [vmem:[#allocation89_spill] sm:$0xff] %v7559_v3  ;;  %v1528_v8 = vadd.f32 %v7402_v55, %v7265_v20  ;;  %v7580_v27 = vadd.f32 %v7223_v56, %v2035_v33  ;;  %v1320_v57 = vpop.f32.mrb[12].mxu0  ;;  %v2268_v17 = vmul.f32 %v7283_v26, %v7539_v7  ;;  %v2269_v15 = vmul.f32 %v7311_v35, %v7545_v37 }
 0x369   : > { %9429 = vst [vmem:[#allocation90_spill] sm:$0xff] %v7568_v38  ;;  %v1563_v44 = vadd.f32 %v7420_v13, %v7397_v34  ;;  %v1576_v12 = vmul.f32 %v7387_v18, %v7387_v18  ;;  %v7591_v30 = vadd.f32 %v2093_v2, %v7271_v22  ;;  %v7594_v55 = vadd.f32 %v2095_v39, %v7271_v22  ;;  %v1322_v14 = vpop.f32.mrb[13].mxu0 }
 0x36a   : > { %v1321_v33 = vadd.f32 %v1320_v57, %v7274_v23  ;;  %v7598_v63 = vadd.f32 %v7271_v22, %v2026_v1  ;;  %v7601_v4 = vadd.f32 %v1322_v14, %v7280_v25  ;;  %v1324_v50 = vpop.f32.mrb[14].mxu0  ;;  %v2288_v19 = vadd.f32 %v2269_v15, %v2268_v17 }
 0x36b   : > { %v1564_v45 = vadd.f32 %v1563_v44, %v7475_v54  ;;  %v1554_v18 = vadd.f32 %v1553_v42, %v7559_v3  ;;  %v1325_v57 = vadd.f32 %v1324_v50, %v7274_v23  ;;  %v1326_v48 = vpop.f32.mrb[15].mxu0  ;;  %v7612_v1 = vadd.f32 %v7397_v34, %v7397_v34 }
 0x36c   : > { %v7606_v2 = vadd.f32 %v7414_v61, %v1321_v33  ;;  %v2037_v39 = vmul.f32 %v7217_v53, %v1321_v33  ;;  %v1532_v14 = vadd.f32 %v7422_v28, %v7265_v20  ;;  %v7617_v17 = vadd.f32 %v1528_v8, %v7601_v4  ;;  %2289 = vadd.xlane.f32.xlu1 %v2288_v19 }
 0x36d   : > { %9431 = vst [vmem:[#allocation92_spill] sm:$0xff] %v7612_v1  ;;  %v7620_v42 = vadd.f32 %v1326_v48, %v7280_v25  ;;  %v1578_v61 = vmul.f32 %v7411_v59, %v7411_v59  ;;  %v7629_v15 = vadd.f32 %v7500_v32, %v1325_v57  ;;  %v2028_v20 = vmul.f32 %v7268_v21, %v7400_v36 }
 0x36e   : > { %9430 = vst [vmem:[#allocation91_spill] sm:$0xff] %v7606_v2  ;;  %9432 = vst [vmem:[#allocation93_spill] sm:$0xff] %v7617_v17  ;;  %v1555_v23 = vadd.f32 %v1554_v18, %v7606_v2  ;;  %v7626_v50 = vadd.f32 %v7223_v56, %v2037_v39  ;;  %v2039_v28 = vmul.f32 %v7217_v53, %v1325_v57 }
 0x36f   : > { %9433 = vst [vmem:[#allocation94_spill] sm:$0xff] %v7629_v15  ;;  %v7635_v19 = vadd.f32 %v1532_v14, %v7620_v42  ;;  %v1565_v48 = vadd.f32 %v1564_v45, %v7508_v9  ;;  %v7640_v25 = vadd.f32 %v7420_v13, %v7420_v13  ;;  %v2272_v32 = vmul.f32 %v7283_v26, %v7606_v2 }
 0x370   : > { %v1556_v18 = vadd.f32 %v1555_v23, %v7629_v15  ;;  %v1579_v44 = vmul.f32 %v7420_v13, %v7420_v13  ;;  %v2030_v53 = vmul.f32 %v7268_v21, %v7458_v5  ;;  %v7650_v36 = vadd.f32 %v7223_v56, %v2039_v28 }
 0x371   : > { %9434 = vst [vmem:[#allocation95_spill] sm:$0xff] %v7635_v19  ;;  %9435 = vst [vmem:[#allocation96_spill] sm:$0xff] %v7640_v25  ;;  %v2273_v45 = vmul.f32 %v7311_v35, %v7617_v17  ;;  %v1566_v33 = vadd.f32 %v1565_v48, %v7545_v37  ;;  %v1580_v39 = vmul.f32 %v7466_v52, %v7466_v52 }
 0x372   : > { %v1557_v57 = vrot.slane %v1556_v18, 4  ;;  %v1577_v23 = vmul.f32 %v7397_v34, %v7397_v34  ;;  %v1581_v26 = vmul.f32 %v7475_v54, %v7475_v54  ;;  %v1592_v59 = vadd.f32 %v1578_v61, %v1576_v12 }
 0x373   : > { %v7662_v5 = vadd.f32 %v7271_v22, %v2028_v20  ;;  %v2294_v56 = vadd.f32 %v2273_v45, %v2272_v32  ;;  %v1567_v28 = vadd.f32 %v1566_v33, %v7568_v38  ;;  %v1582_v48 = vmul.f32 %v7496_v49, %v7496_v49 }
 0x374   : > { %v1558_v35 = vadd.f32 %v1557_v57, %v1556_v18  ;;  %v1583_v52 = vmul.f32 %v7508_v9, %v7508_v9  ;;  %v1605_v25 = vadd.f32 %v1579_v44, %v1577_v23  ;;  %v7670_v1 = vadd.f32 %v7271_v22, %v2030_v53 }
 0x375   : > { %v2097_v13 = vmul.f32 %v7268_v21, %v1528_v8  ;;  %2295 = vadd.xlane.f32.xlu1 %v2294_v56  ;;  %v1568_v12 = vadd.f32 %v1567_v28, %v7617_v17  ;;  %v1585_v61 = vmul.f32 %v7545_v37, %v7545_v37  ;;  %v1584_v18 = vmul.f32 %v7539_v7, %v7539_v7 }
 0x376   : > { %v1559_v20 = vrot.slane %v1558_v35, 2  ;;  %v1606_v32 = vadd.f32 %v1605_v25, %v1581_v26  ;;  %v1593_v45 = vadd.f32 %v1592_v59, %v1580_v39  ;;  %v7680_v44 = vadd.f32 %v7475_v54, %v7475_v54 }
 0x377   : > { %v2032_v53 = vmul.f32 %v7268_v21, %v7478_v60  ;;  %v1569_v8 = vadd.f32 %v1568_v12, %v7635_v19  ;;  %v1587_v33 = vmul.f32 %v7568_v38, %v7568_v38  ;;  %v1586_v26 = vmul.f32 %v7559_v3, %v7559_v3 }
 0x378   : > { %v1560_v57 = vadd.f32 %v1559_v20, %v1558_v35  ;;  %v1607_v23 = vadd.f32 %v1606_v32, %v1583_v52  ;;  %v1594_v25 = vadd.f32 %v1593_v45, %v1582_v48  ;;  %v2034_v59 = vmul.f32 %v7268_v21, %v7533_v31 }
 0x379   : > { %v2036_v39 = vmul.f32 %v7268_v21, %v7548_v11  ;;  %v1570_v56 = vrot.slane %v1569_v8, 4  ;;  %v1589_v60 = vmul.f32 %v7617_v17, %v7617_v17  ;;  %v1588_v35 = vmul.f32 %v7606_v2, %v7606_v2 }
 0x37a   : > { %v1561_v28 = vrot.slane %v1560_v57, 1  ;;  %v1608_v12 = vadd.f32 %v1607_v23, %v1585_v61  ;;  %v1595_v52 = vadd.f32 %v1594_v25, %v1584_v18  ;;  %v2099_v20 = vmul.f32 %v7268_v21, %v1532_v14 }
 0x37b   : > { %v2038_v48 = vmul.f32 %v7268_v21, %v7601_v4  ;;  %v1571_v32 = vadd.f32 %v1570_v56, %v1569_v8  ;;  %v1591_v31 = vmul.f32 %v7635_v19, %v7635_v19  ;;  %v1590_v3 = vmul.f32 %v7629_v15, %v7629_v15 }
 0x37c   : > { %v1562_v11 = vadd.f32 %v1561_v28, %v1560_v57  ;;  %v1609_v45 = vadd.f32 %v1608_v12, %v1587_v33  ;;  %v1596_v7 = vadd.f32 %v1595_v52, %v1586_v26  ;;  %v7705_v61 = vadd.f32 %v7271_v22, %v2032_v53 }
 0x37d   : > { %v7708_v18 = vadd.f32 %v7271_v22, %v2034_v59  ;;  %v7711_v14 = vadd.f32 %v2097_v13, %v7271_v22  ;;  %v1572_v4 = vrot.slane %v1571_v32, 2  ;;  %v7714_v8 = vadd.f32 %v7271_v22, %v2036_v39 }
 0x37e   : > { %v7716_v23 = vmul.f32 0.015625, %v1562_v11  ;;  %v1610_v33 = vadd.f32 %v1609_v45, %v1589_v60  ;;  %v1597_v57 = vadd.f32 %v1596_v7, %v1588_v35  ;;  %v7719_v25 = vadd.f32 %v2099_v20, %v7271_v22 }
 0x37f   : > { %v7722_v53 = vadd.f32 %v7271_v22, %v2038_v48  ;;  %v2040_v26 = vmul.f32 %v7268_v21, %v7620_v42  ;;  %v1573_v59 = vadd.f32 %v1572_v4, %v1571_v32 }
 0x380   : > { %vm2082_vm8 = vcmp.ge.f32.partialorder %v7716_v23, %v7650_v36  ;;  %vm2130_vm9 = vcmp.ge.f32.partialorder %v7716_v23, %v7551_v47  ;;  %v1611_v13 = vadd.f32 %v1610_v33, %v1591_v31  ;;  %v1598_v39 = vadd.f32 %v1597_v57, %v1590_v3  ;;  %v9438_v57 = vld [vmem:[#allocation66_spill] sm:$0xff] }
 0x381   : > { %v2146_v7 = vsel %vm2082_vm8, %v7629_v15, 0.0  ;;  %v2162_v56 = vsel %vm2130_vm9, %v7629_v15, 0.0  ;;  %v1574_v60 = vrot.slane %v1573_v59, 1  ;;  %v2067_v47 = vadd.f32 %v7271_v22, %v2040_v26 }
 0x382   : > { %v7734_v28 = vadd.f32 %v2162_v56, %v2146_v7  ;;  %v1612_v21 = vrot.slane %v1611_v13, 4  ;;  %v1599_v42 = vrot.slane %v1598_v39, 4  ;;  %v9437_v22 = vmov 0.0  }
 0x383   : > { %v1575_v36 = vadd.f32 %v1574_v60, %v1573_v59 }
 0x384   : > { %9436 = vst [vmem:[#allocation97_spill] sm:$0xff] %v7734_v28  ;;  %v1613_v3 = vadd.f32 %v1612_v21, %v1611_v13  ;;  %v1600_v12 = vadd.f32 %v1599_v42, %v1598_v39 }
 0x385   : > { %v1619_v35 = vmul.f32 0.015625, %v1575_v36  ;;  %1720 = vmatprep.mubr.f32.mxu1 %v1575_v36  ;;  %v9447_v36 = vld [vmem:[#allocation92_spill] sm:$0xff] }
 0x386   : > { %1721 = vmatmul.mubr.f32.vlgmr.msra.gmra.mrb[16].mxu1 %v1562_v11  ;;  %v1614_v52 = vrot.slane %v1613_v3, 2  ;;  %v1601_v20 = vrot.slane %v1600_v12, 2 }
 0x387   : > { %vm2069_vm5 = vcmp.ge.f32.partialorder %v1619_v35, %v7598_v63  ;;  %vm2071_vm6 = vcmp.ge.f32.partialorder %v1619_v35, %v7662_v5  ;;  %vm2073_vm7 = vcmp.ge.f32.partialorder %v1619_v35, %v7670_v1  ;;  %vm2075_vm8 = vcmp.ge.f32.partialorder %v1619_v35, %v7705_v61  ;;  %1952 = vmatprep.mubr.f32.mxu1 %v9437_v22 }
 0x388   : > { %v1615_v48 = vadd.f32 %v1614_v52, %v1613_v3  ;;  %v1602_v32 = vadd.f32 %v1601_v20, %v1600_v12  ;;  %vm2077_vm9 = vcmp.ge.f32.partialorder %v1619_v35, %v7708_v18  ;;  %vm2079_vm2 = vcmp.ge.f32.partialorder %v1619_v35, %v7714_v8  ;;  %v9450_v12 = vld [vmem:[#allocation44_spill] sm:$0xff] }
 0x389   : > { %vm2081_vm3 = vcmp.ge.f32.partialorder %v1619_v35, %v7722_v53  ;;  %vm2083_vm0 = vcmp.ge.f32.partialorder %v1619_v35, %v2067_v47  ;;  %vm2117_vm4 = vcmp.ge.f32.partialorder %v1619_v35, %v7515_v6  ;;  %vm2119_vm1 = vcmp.ge.f32.partialorder %v1619_v35, %v7562_v29  ;;  %v9449_v47 = vld [vmem:[#allocation96_spill] sm:$0xff] }
 0x38a   : > { %v1616_v31 = vrot.slane %v1615_v48, 1  ;;  %v1603_v11 = vrot.slane %v1602_v32, 1  ;;  %vm2121_vm15 = vcmp.ge.f32.partialorder %v1619_v35, %v7571_v58  ;;  %vm2123_vm14 = vcmp.ge.f32.partialorder %v1619_v35, %v7574_v43  ;;  %v9452_v20 = vld [vmem:[#allocation68_spill] sm:$0xff] }
 0x38b   : > { %vm2125_vm13 = vcmp.ge.f32.partialorder %v1619_v35, %v7591_v30  ;;  %vm2127_vm12 = vcmp.ge.f32.partialorder %v1619_v35, %v7594_v55  ;;  %vm2129_vm11 = vcmp.ge.f32.partialorder %v1619_v35, %v7711_v14  ;;  %vm2131_vm10 = vcmp.ge.f32.partialorder %v1619_v35, %v7719_v25  ;;  %v9451_v35 = vld [vmem:[#allocation51_spill] sm:$0xff] }
 0x38c   : > { %v1617_v45 = vadd.f32 %v1616_v31, %v1615_v48  ;;  %v1604_v4 = vadd.f32 %v1603_v11, %v1602_v32  ;;  %v2133_v33 = vsel %vm2069_vm5, %v7397_v34, 0.0  ;;  %v2135_v26 = vsel %vm2071_vm6, %v9438_v57, 0.0  ;;  %v9453_v32 = vld [vmem:[#allocation84_spill] sm:$0xff]  ;;  %v9454_v11 = vld [vmem:[#allocation86_spill] sm:$0xff] }
 0x38d   : > { %v2137_v59 = vsel %vm2073_vm7, %v7475_v54, 0.0  ;;  %v2139_v13 = vsel %vm2075_vm8, %v7508_v9, 0.0  ;;  %v2141_v39 = vsel %vm2077_vm9, %v7545_v37, 0.0  ;;  %v2143_v63 = vsel %vm2079_vm2, %v7568_v38, 0.0 }
 0x38e   : > { %1791 = vmatprep.mubr.f32.mxu0 %v1617_v45  ;;  %v2145_v5 = vsel %vm2081_vm3, %v7617_v17, 0.0  ;;  %v2147_v1 = vsel %vm2083_vm0, %v7635_v19, 0.0  ;;  %v2149_v61 = vsel %vm2117_vm4, %v7397_v34, 0.0  ;;  %v2151_v18 = vsel %vm2119_vm1, %v9438_v57, 0.0 }
 0x38f   : > { %1792 = vmatmul.mubr.f32.vlgmr.msra.gmra.mrb[16].mxu0 %v1604_v4  ;;  %v2153_v8 = vsel %vm2121_vm15, %v7475_v54, 0.0  ;;  %v2155_v53 = vsel %vm2123_vm14, %v7508_v9, 0.0  ;;  %v2157_v7 = vsel %vm2125_vm13, %v7545_v37, 0.0  ;;  %v2159_v6 = vsel %vm2127_vm12, %v7568_v38, 0.0  ;;  %v9455_v4 = vld [vmem:[#allocation62_spill] sm:$0xff] }
 0x390   : > { %1870 = vmatprep.mubr.f32.mxu0 %v9437_v22  ;;  %v2161_v29 = vsel %vm2129_vm11, %v7617_v17, 0.0  ;;  %v2163_v58 = vsel %vm2131_vm10, %v7635_v19, 0.0  ;;  %v7821_v43 = vadd.f32 %v2149_v61, %v2133_v33  ;;  %v7823_v56 = vadd.f32 %v2151_v18, %v2135_v26  ;;  %v9459_v61 = vld [vmem:[#allocation78_spill] sm:$0xff] }
 0x391   : > { %v7825_v30 = vadd.f32 %v2153_v8, %v2137_v59  ;;  %v7827_v60 = vadd.f32 %v2155_v53, %v2139_v13  ;;  %v7829_v55 = vadd.f32 %v2157_v7, %v2141_v39  ;;  %v7831_v21 = vadd.f32 %v2159_v6, %v2143_v63  ;;  %v9456_v39 = vld [vmem:[#allocation65_spill] sm:$0xff] }
 0x392   : > { %9439 = vst [vmem:[#allocation98_spill] sm:$0xff] %v7821_v43  ;;  %9440 = vst [vmem:[#allocation99_spill] sm:$0xff] %v7823_v56  ;;  %v7833_v42 = vadd.f32 %v2161_v29, %v2145_v5  ;;  %v7835_v14 = vadd.f32 %v2163_v58, %v2147_v1  ;;  %v7839_v25 = vsub.f32 %v9447_v36, %v7821_v43  ;;  %v3036_v31 = vand.u32 7, %v9453_v32  ;;  %v9457_v5 = vld [vmem:[#allocation56_spill] sm:$0xff]  ;;  %v9463_v53 = vld [vmem:[#allocation77_spill] sm:$0xff] }
 0x393   : > { %9441 = vst [vmem:[#allocation100_spill] sm:$0xff] %v7825_v30  ;;  %9442 = vst [vmem:[#allocation101_spill] sm:$0xff] %v7827_v60  ;;  %v7843_v3 = vsub.f32 %v9449_v47, %v7823_v56  ;;  %v7847_v52 = vrot.slane %v9451_v35, %v9450_v12  ;;  %v7851_v48 = vrot.slane %v9451_v35, %v9452_v20  ;;  %v3037_v45 = vand.u32 7, %v9454_v11  ;;  %v9458_v1 = vld [vmem:[#allocation60_spill] sm:$0xff]  ;;  %v9466_v29 = vld [vmem:[#allocation87_spill] sm:$0xff] }
 0x394   : > { %9443 = vst [vmem:[#allocation102_spill] sm:$0xff] %v7829_v55  ;;  %9444 = vst [vmem:[#allocation103_spill] sm:$0xff] %v7831_v21  ;;  %v2180_v33 = vadd.f32 %v9455_v4, %v9455_v4  ;;  %v7859_v26 = vsub.f32 %v7680_v44, %v7825_v30  ;;  %v2182_v63 = vadd.f32 %v9456_v39, %v9456_v39  ;;  %v9468_v58 = vld [vmem:[#allocation89_spill] sm:$0xff]  ;;  %v9475_v36 = vld [vmem:[#allocation43_spill] sm:$0xff]  ;;  %vm7955_vm9 = vcmp.ge.s32.totalorder %v3036_v31, 1 }
 0x395   : > { %9445 = vst [vmem:[#allocation104_spill] sm:$0xff] %v7833_v42  ;;  %9446 = vst [vmem:[#allocation105_spill] sm:$0xff] %v7835_v14  ;;  %v2225_v59 = vadd.f32 %v7843_v3, %v7839_v25  ;;  %vm2124_vm10 = vcmp.ge.f32.partialorder %v7716_v23, %v9457_v5  ;;  %vm2126_vm11 = vcmp.ge.f32.partialorder %v7716_v23, %v9458_v1  ;;  %vm3157_vm8 = vcmp.lt.s32.totalorder %v9475_v36, 1  ;;  %v9529_v56 = vld [vmem:[#allocation64_spill] sm:$0xff] }
 0x396   : > { %9448 = vst [vmem:[#allocation92_spill] sm:$0xff] %v7839_v25  ;;  %vm2128_vm12 = vcmp.ge.f32.partialorder %v7716_v23, %v9459_v61  ;;  %vm9461_vm13 = vcmp.ge.f32.partialorder %v7716_v23, %v7408_v41  ;;  %vm9462_vm14 = vcmp.ge.f32.partialorder %v7716_v23, %v7440_v40  ;;  %vm9464_vm15 = vcmp.ge.f32.partialorder %v7716_v23, %v7484_v46 }
 0x397   : > { %v7874_v44 = vadd.f32 %v2225_v59, %v7859_v26  ;;  %v2132_v18 = vsel %vm9461_vm13, %v9455_v4, 0.0  ;;  %v2134_v8 = vsel %vm9462_vm14, %v9456_v39, 0.0  ;;  %v2136_v7 = vsel %vm9464_vm15, %v9463_v53, 0.0 }
 0x398   : > { %vm9465_vm0 = vcmp.ge.f32.partialorder %v7716_v23, %v7518_v51  ;;  %vm9467_vm1 = vcmp.ge.f32.partialorder %v7716_v23, %v7555_v10  ;;  %vm9469_vm2 = vcmp.ge.f32.partialorder %v7716_v23, %v7580_v27  ;;  %vm9470_vm3 = vcmp.ge.f32.partialorder %v7716_v23, %v7233_v62 }
 0x399   : > { %9460 = vst [vmem:[#allocation96_spill] sm:$0xff] %v7874_v44  ;;  %v2138_v6 = vsel %vm9465_vm0, %v7496_v49, 0.0  ;;  %v2140_v41 = vsel %vm9467_vm1, %v9466_v29, 0.0  ;;  %v2142_v40 = vsel %vm9469_vm2, %v9468_v58, 0.0  ;;  %v2148_v46 = vsel %vm9470_vm3, %v9455_v4, 0.0 }
 0x39a   : > { %vm9471_vm4 = vcmp.ge.f32.partialorder %v7716_v23, %v7626_v50  ;;  %vm9472_vm5 = vcmp.ge.f32.partialorder %v7716_v23, %v7238_v0  ;;  %vm9473_vm6 = vcmp.ge.f32.partialorder %v7716_v23, %v7260_v16  ;;  %vm9474_vm7 = vcmp.ge.f32.partialorder %v7716_v23, %v7277_v24 }
 0x39b   : > { %v2144_v51 = vsel %vm9471_vm4, %v7606_v2, 0.0  ;;  %v2150_v10 = vsel %vm9472_vm5, %v9456_v39, 0.0  ;;  %v2152_v27 = vsel %vm9473_vm6, %v9463_v53, 0.0  ;;  %v2154_v62 = vsel %vm9474_vm7, %v7496_v49, 0.0  ;;  %v9504_v39 = vld [vmem:[#allocation50_spill] sm:$0xff] }
 0x39c   : > { %v2156_v50 = vsel %vm2124_vm10, %v9466_v29, 0.0  ;;  %v2158_v0 = vsel %vm2126_vm11, %v9468_v58, 0.0  ;;  %v2160_v16 = vsel %vm2128_vm12, %v7606_v2, 0.0  ;;  %v7933_v47 = vadd.f32 %v2148_v46, %v2132_v18 }
 0x39d   : > { %v2184_v24 = vadd.f32 %v9463_v53, %v9463_v53  ;;  %v7937_v35 = vadd.f32 %v2150_v10, %v2134_v8  ;;  %v7939_v32 = vadd.f32 %v2152_v27, %v2136_v7  ;;  %v7941_v11 = vadd.f32 %v2154_v62, %v2138_v6 }
 0x39e   : > { %9476 = vst [vmem:[#allocation51_spill] sm:$0xff] %v7933_v47  ;;  %v7943_v59 = vadd.f32 %v2156_v50, %v2140_v41  ;;  %v7945_v5 = vadd.f32 %v2158_v0, %v2142_v40  ;;  %v7947_v1 = vadd.f32 %v2160_v16, %v2144_v51  ;;  %v7950_v23 = vsub.f32 %v2180_v33, %v7933_v47  ;;  %v9525_v47 = vld [vmem:[#allocation75_spill] sm:$0xff] }
 0x39f   : > { %9477 = vst [vmem:[#allocation84_spill] sm:$0xff] %v7937_v35  ;;  %9478 = vst [vmem:[#allocation86_spill] sm:$0xff] %v7939_v32  ;;  %v7953_v61 = vsub.f32 %v2182_v63, %v7937_v35  ;;  %vm7959_vm10 = vcmp.ge.s32.totalorder %v3037_v45, 1  ;;  %vm7963_vm11 = vcmp.le.s32.totalorder %v3036_v31, 6  ;;  %v2192_v6 = vadd.f32 %v7606_v2, %v7606_v2 }
 0x3a0   : > { %9479 = vst [vmem:[#allocation56_spill] sm:$0xff] %v7941_v11  ;;  %9480 = vst [vmem:[#allocation60_spill] sm:$0xff] %v7943_v59  ;;  %v7970_v33 = vsub.f32 %v2184_v24, %v7939_v32  ;;  %vm7974_vm12 = vcmp.le.s32.totalorder %v3037_v45, 6  ;;  %v2194_v40 = vadd.f32 %v7629_v15, %v7629_v15  ;;  %v2193_v50 = vadd.f32 %v7617_v17, %v7617_v17 }
 0x3a1   : > { %9481 = vst [vmem:[#allocation78_spill] sm:$0xff] %v7945_v5  ;;  %9482 = vst [vmem:[#allocation43_spill] sm:$0xff] %v7947_v1  ;;  %v2212_v31 = vadd.f32 %v7953_v61, %v7950_v23  ;;  %v2195_v16 = vadd.f32 %v7635_v19, %v7635_v19  ;;  %v3143_v45 = vrot.slane %v7953_v61, 7  ;;  %v3144_v10 = vrot.slane %v7843_v3, 7 }
 0x3a2   : > { %9483 = vst [vmem:[#allocation106_spill] sm:$0xff] %v7950_v23  ;;  %v7997_v0 = vsub.f32 %v2194_v40, %v7734_v28  ;;  %v9216_v27 = vrot.slane %v7970_v33, 7  ;;  %v9217_v62 = vrot.slane %v7859_v26, 7  ;;  %vm3206_vm13 = vcmp.lt.s32.totalorder %v9475_v36, 7 }
 0x3a3   : > { %v8002_v24 = vadd.f32 %v2212_v31, %v7970_v33  ;;  %v8010_v51 = vsub.f32 %v2195_v16, %v7835_v14  ;;  %v8015_v40 = vsel %vm7955_vm9, 1.0, %v9437_v22  ;;  %v8020_v31 = vsel %vm7959_vm10, 1.0, %v9437_v22  ;;  %v9508_v14 = vld [vmem:[#allocation53_spill] sm:$0xff] }
 0x3a4   : > { %v8025_v46 = vsel %vm7963_vm11, 1.0, %v9437_v22  ;;  %v8028_v63 = vsub.f32 %v2193_v50, %v7833_v42  ;;  %v8031_v16 = vsub.f32 %v2192_v6, %v7947_v1  ;;  %v3168_v18 = vsel %vm3157_vm8, %v3143_v45, %v9216_v27 }
 0x3a5   : > { %9492 = vst [vmem:[#allocation107_spill] sm:$0xff] %v8002_v24  ;;  %9493 = vst [vmem:[#allocation108_spill] sm:$0xff] %v8010_v51  ;;  %v3169_v8 = vsel %vm3157_vm8, %v3144_v10, %v9217_v62  ;;  %v2186_v7 = vadd.f32 %v7496_v49, %v7496_v49  ;;  %v2187_v50 = vadd.f32 %v7508_v9, %v7508_v9  ;;  %v3141_v13 = vrot.slane %v7950_v23, 7  ;;  %v9530_v24 = vld [vmem:[#allocation81_spill] sm:$0xff] }
 0x3a6   : > { %9494 = vst [vmem:[#allocation109_spill] sm:$0xff] %v8028_v63  ;;  %9495 = vst [vmem:[#allocation110_spill] sm:$0xff] %v8031_v16  ;;  %v8049_v6 = vsel %vm7974_vm12, 1.0, %v9437_v22  ;;  %v2188_v27 = vadd.f32 %v9466_v29, %v9466_v29  ;;  %v2189_v20 = vadd.f32 %v7545_v37, %v7545_v37  ;;  %v2191_v62 = vadd.f32 %v7568_v38, %v7568_v38 }
 0x3a7   : > { %v3155_v17 = vrot.slane %v7997_v0, 7  ;;  %v2190_v2 = vadd.f32 %v9468_v58, %v9468_v58  ;;  %v8061_v19 = vsub.f32 %v2187_v50, %v7827_v60  ;;  %v3142_v41 = vrot.slane %v7839_v25, 7 }
 0x3a8   : > { %v3156_v15 = vrot.slane %v8010_v51, 7  ;;  %v8066_v29 = vsub.f32 %v2189_v20, %v7829_v55  ;;  %v8069_v37 = vsub.f32 %v2191_v62, %v7831_v21  ;;  %v8074_v49 = vsub.f32 %v2186_v7, %v7941_v11 }
 0x3a9   : > { %v8077_v50 = vsub.f32 %v2188_v27, %v7943_v59  ;;  %v8080_v58 = vsub.f32 %v2190_v2, %v7945_v5  ;;  %v3170_v20 = vsel %vm3157_vm8, %v3141_v13, %v3143_v45  ;;  %v3172_v62 = vsel %vm3157_vm8, %v3155_v17, %v3141_v13 }
 0x3aa   : > { %9496 = vst [vmem:[#allocation111_spill] sm:$0xff] %v8069_v37  ;;  %v3191_v34 = vrot.slane %v7839_v25, 1  ;;  %v3192_v38 = vrot.slane %v7953_v61, 1  ;;  %v3193_v9 = vrot.slane %v7843_v3, 1  ;;  %v3173_v7 = vsel %vm3157_vm8, %v3156_v15, %v3142_v41 }
 0x3ab   : > { %9497 = vst [vmem:[#allocation112_spill] sm:$0xff] %v8080_v58  ;;  %v3190_v27 = vrot.slane %v7950_v23, 1  ;;  %v3194_v2 = vrot.slane %v7970_v33, 1  ;;  %v3195_v4 = vrot.slane %v7859_v26, 1  ;;  %v9498_v45 = vrot.slane %v8031_v16, 7 }
 0x3ac   : > { %v9499_v54 = vrot.slane %v8028_v63, 7  ;;  %v3171_v57 = vsel %vm3157_vm8, %v3142_v41, %v3144_v10  ;;  %v3220_v10 = vsel %vm3206_vm13, %v3191_v34, %v3193_v9  ;;  %v9503_v41 = vld [vmem:[#allocation49_spill] sm:$0xff]  ;;  %v8127_v42 = vmul.f32 %v9504_v39, %v3168_v18 }
 0x3ad   : > { %v3158_v13 = vsel %vm3157_vm8, %v9498_v45, %v3155_v17  ;;  %v3217_v1 = vsel %vm3206_vm13, %v3192_v38, %v3194_v2  ;;  %v3218_v17 = vsel %vm3206_vm13, %v3193_v9, %v3195_v4  ;;  %v9500_v45 = vld [vmem:[#allocation48_spill] sm:$0xff]  ;;  %v8121_v12 = vmul.f32 %v9503_v41, %v3170_v20 }
 0x3ae   : > { %v3159_v53 = vsel %vm3157_vm8, %v9499_v54, %v3156_v15  ;;  %v8112_v28 = vmul.f32 %v9500_v45, %v3172_v62  ;;  %v8115_v54 = vmul.f32 %v9500_v45, %v3173_v7  ;;  %v8124_v22 = vmul.f32 %v9503_v41, %v3171_v57  ;;  %v9505_v45 = vld [vmem:[#allocation52_spill] sm:$0xff] }
 0x3af   : > { %v3219_v62 = vsel %vm3206_vm13, %v3190_v27, %v3192_v38  ;;  %v8132_v7 = vmul.f32 %v9504_v39, %v3169_v8  ;;  %v8135_v15 = vmul.f32 %v9505_v45, %v3158_v13  ;;  %v9507_v9 = vrot.slane %v8010_v51, 1  ;;  %v9513_v13 = vld [vmem:[#allocation54_spill] sm:$0xff] }
 0x3b0   : > { %9501 = vst [vmem:[#allocation48_spill] sm:$0xff] %v8112_v28  ;;  %9502 = vst [vmem:[#allocation113_spill] sm:$0xff] %v8115_v54  ;;  %v8142_v57 = vmul.f32 %v9508_v14, %v3220_v10  ;;  %v8145_v18 = vmul.f32 %v9505_v45, %v3159_v53  ;;  %v9511_v41 = vrot.slane %v8074_v49, 1  ;;  %v9512_v39 = vrot.slane %v8061_v19, 1 }
 0x3b1   : > { %9506 = vst [vmem:[#allocation49_spill] sm:$0xff] %v8135_v15  ;;  %v3222_v20 = vsel %vm3206_vm13, %v9507_v9, %v3191_v34  ;;  %v8156_v59 = vmul.f32 %v9513_v13, %v3218_v17  ;;  %v9514_v34 = vrot.slane %v7997_v0, 1  ;;  %v8163_v53 = vmul.f32 %v9508_v14, %v3219_v62  ;;  %v9519_v17 = vld [vmem:[#allocation59_spill] sm:$0xff] }
 0x3b2   : > { %9509 = vst [vmem:[#allocation50_spill] sm:$0xff] %v8142_v57  ;;  %9510 = vst [vmem:[#allocation52_spill] sm:$0xff] %v8145_v18  ;;  %v3215_v38 = vsel %vm3206_vm13, %v3194_v2, %v9511_v41  ;;  %v3216_v8 = vsel %vm3206_vm13, %v3195_v4, %v9512_v39  ;;  %v8166_v45 = vmul.f32 %v9513_v13, %v3217_v1  ;;  %v9516_v2 = vld [vmem:[#allocation67_spill] sm:$0xff]  ;;  %v9517_v41 = vld [vmem:[#allocation57_spill] sm:$0xff]  ;;  %vm1802_vm14 = vcmask 130048  }
 0x3b3   : > { %v3221_v10 = vsel %vm3206_vm13, %v9514_v34, %v3190_v27  ;;  %9515 = vst [vmem:[#allocation53_spill] sm:$0xff] %v8163_v53  ;;  %v3248_v9 = vmul.f32 %v9516_v2, %v8115_v54  ;;  %v8171_v5 = vmul.f32 %v9517_v41, %v3222_v20  ;;  %v3250_v4 = vmul.f32 %v9516_v2, %v8124_v22  ;;  %v9520_v14 = vld [vmem:[#allocation55_spill] sm:$0xff]  ;;  %v9521_v13 = vld [vmem:[#allocation70_spill] sm:$0xff]  ;;  %v9522_v20 = vld [vmem:[#allocation73_spill] sm:$0xff] }
 0x3b4   : > { %v3272_v39 = vmul.f32 %v9519_v17, %v7839_v25  ;;  %v3274_v27 = vmul.f32 %v9519_v17, %v7843_v3  ;;  %v8180_v62 = vmul.f32 %v9520_v14, %v3215_v38  ;;  %v8183_v1 = vmul.f32 %v9520_v14, %v3216_v8  ;;  %v9524_v8 = vld [vmem:[#allocation61_spill] sm:$0xff] }
 0x3b5   : > { %9518 = vst [vmem:[#allocation54_spill] sm:$0xff] %v8171_v5  ;;  %v3312_v34 = vmul.f32 %v9521_v13, %v8142_v57  ;;  %v3380_v55 = vmul.f32 %v9522_v20, %v8115_v54  ;;  %v3314_v11 = vmul.f32 %v9521_v13, %v8156_v59  ;;  %v3394_v30 = vmul.f32 %v9522_v20, %v8145_v18 }
 0x3b6   : > { %v3288_v21 = vadd.f32 %v3272_v39, %v3248_v9  ;;  %v3290_v32 = vadd.f32 %v3274_v27, %v3250_v4  ;;  %v8194_v38 = vmul.f32 %v9517_v41, %v3221_v10  ;;  %v3404_v14 = vmul.f32 %v9524_v8, %v7839_v25  ;;  %v8205_v9 = vld [vmem:[%s9389_s24 + $0x18] ss:$0 sm:$0xff]  ;;  %v9527_v41 = vld [vmem:[#allocation76_spill] sm:$0xff] }
 0x3b7   : > { %v3418_v60 = vmul.f32 %v9524_v8, %v8010_v51  ;;  %v3444_v54 = vmul.f32 %v9525_v47, %v8142_v57  ;;  %9526 = vst [vmem:[#allocation57_spill] sm:$0xff] %v8205_v9  ;;  %v3458_v10 = vmul.f32 %v9525_v47, %v8171_v5  ;;  %v3518_v27 = vmul.f32 %v9527_v41, %v8124_v22  ;;  %v9528_v57 = vld [vmem:[#allocation72_spill] sm:$0xff] }
 0x3b8   : > { %9523 = vst [vmem:[#allocation67_spill] sm:$0xff] %v8194_v38  ;;  %v3328_v4 = vadd.f32 %v3312_v34, %v3288_v21  ;;  %v3330_v39 = vadd.f32 %v3314_v11, %v3290_v32  ;;  %v3420_v25 = vadd.f32 %v3404_v14, %v3380_v55  ;;  %v3520_v35 = vmul.f32 %v9527_v41, %v8132_v7 }
 0x3b9   : > { %v3434_v18 = vadd.f32 %v3418_v60, %v3394_v30  ;;  %v3542_v43 = vmul.f32 %v9528_v57, %v7843_v3  ;;  %v3249_v16 = vmul.f32 %v9529_v56, %v8121_v12  ;;  %v3544_v11 = vmul.f32 %v9528_v57, %v7859_v26  ;;  %v9531_v60 = vld [vmem:[#allocation69_spill] sm:$0xff] }
 0x3ba   : > { %v3356_v21 = vadd.f32 %v9530_v24, %v3328_v4  ;;  %v3358_v32 = vadd.f32 %v9530_v24, %v3330_v39  ;;  %v3460_v34 = vadd.f32 %v3444_v54, %v3420_v25  ;;  %v3582_v30 = vmul.f32 %v8205_v9, %v8156_v59  ;;  %v9532_v25 = vld [vmem:[#allocation58_spill] sm:$0xff] }
 0x3bb   : > { %v3474_v5 = vadd.f32 %v3458_v10, %v3434_v18  ;;  %v3558_v55 = vadd.f32 %v3542_v43, %v3518_v27  ;;  %v3313_v14 = vmul.f32 %v9531_v60, %v8166_v45  ;;  %v3560_v51 = vadd.f32 %v3544_v11, %v3520_v35 }
 0x3bc   : > { %v3584_v63 = vmul.f32 %v8205_v9, %v8183_v1  ;;  %v3247_v4 = vmul.f32 %v9529_v56, %v8112_v28  ;;  %v3494_v44 = vadd.f32 %v3460_v34, %v3358_v32  ;;  %v3271_v54 = vmul.f32 %v9532_v25, %v7950_v23  ;;  %v9533_v32 = vld [vmem:[#allocation82_spill] sm:$0xff] }
 0x3bd   : > { %v3476_v39 = vmul.f32 0.0, %v3474_v5  ;;  %v3598_v58 = vadd.f32 %v3582_v30, %v3558_v55  ;;  %v3273_v18 = vmul.f32 %v9532_v25, %v7953_v61  ;;  %v3311_v10 = vmul.f32 %v9531_v60, %v8163_v53 }
 0x3be   : > { %v3600_v43 = vadd.f32 %v3584_v63, %v3560_v51  ;;  %v3379_v35 = vmul.f32 %v7847_v52, %v8112_v28  ;;  %v3287_v11 = vadd.f32 %v3271_v54, %v3247_v4  ;;  %v3393_v5 = vmul.f32 %v7847_v52, %v8135_v15 }
 0x3bf   : > { %v3492_v27 = vadd.f32 %v3476_v39, %v3356_v21  ;;  %v3403_v34 = vmul.f32 %v9533_v32, %v7950_v23  ;;  %v3289_v63 = vadd.f32 %v3273_v18, %v3249_v16  ;;  %v3417_v51 = vmul.f32 %v9533_v32, %v7997_v0  ;;  %v8252_v21 = vld [vmem:[%s9389_s24 + $0x10] ss:$0 sm:$0xff] }
 0x3c0   : > { %v8241_v55 = vadd.f32 %v3600_v43, %v3494_v44  ;;  %v3443_v30 = vmul.f32 %v7851_v48, %v8163_v53  ;;  %v3327_v4 = vadd.f32 %v3311_v10, %v3287_v11  ;;  %v3457_v44 = vmul.f32 %v7851_v48, %v8194_v38  ;;  %v9536_v43 = vld [vmem:[#allocation74_spill] sm:$0xff]  ;;  %v9538_v10 = vld [vmem:[#allocation71_spill] sm:$0xff] }
 0x3c1   : > { %v8247_v60 = vadd.f32 %v3598_v58, %v3492_v27  ;;  %v3419_v39 = vadd.f32 %v3403_v34, %v3379_v35  ;;  %v3329_v54 = vadd.f32 %v3313_v14, %v3289_v63  ;;  %v3433_v16 = vadd.f32 %v3417_v51, %v3393_v5  ;;  %v9537_v27 = vld [vmem:[#allocation80_spill] sm:$0xff] }
 0x3c2   : > { %9534 = vst [vmem:[#allocation59_spill] sm:$0xff] %v8241_v55  ;;  %v3517_v18 = vmul.f32 %v9536_v43, %v8121_v12  ;;  %v3519_v53 = vmul.f32 %v9536_v43, %v8127_v42  ;;  %v3355_v23 = vadd.f32 %v9537_v27, %v3327_v4  ;;  %v3541_v35 = vmul.f32 %v9538_v10, %v7953_v61 }
 0x3c3   : > { %9535 = vst [vmem:[#allocation55_spill] sm:$0xff] %v8247_v60  ;;  %v3459_v28 = vadd.f32 %v3443_v30, %v3419_v39  ;;  %v3357_v11 = vadd.f32 %v9537_v27, %v3329_v54  ;;  %v3473_v34 = vadd.f32 %v3457_v44, %v3433_v16  ;;  %v3543_v14 = vmul.f32 %v9538_v10, %v7970_v33 }
 0x3c4   : > { %v3581_v5 = vmul.f32 %v8252_v21, %v8166_v45  ;;  %v3557_v63 = vadd.f32 %v3541_v35, %v3517_v18  ;;  %v3583_v51 = vmul.f32 %v8252_v21, %v8180_v62  ;;  %v3148_v58 = vrot.slane %v8061_v19, 7 }
 0x3c5   : > { %v9282_v30 = vrot.slane %v8066_v29, 7  ;;  %v3475_v4 = vmul.f32 0.0, %v3473_v34  ;;  %v3493_v39 = vadd.f32 %v3459_v28, %v3357_v11  ;;  %v3559_v38 = vadd.f32 %v3543_v14, %v3519_v53 }
 0x3c6   : > { %v3199_v54 = vrot.slane %v8066_v29, 1  ;;  %v3597_v44 = vadd.f32 %v3581_v5, %v3557_v63  ;;  %v9539_v18 = vrot.slane %v7859_v26, 7  ;;  %v9281_v15 = vrot.slane %v8069_v37, 1 }
 0x3c7   : > { %v3165_v16 = vsel %vm3157_vm8, %v3148_v58, %v9282_v30  ;;  %v3491_v60 = vadd.f32 %v3475_v4, %v3355_v23  ;;  %v3599_v55 = vadd.f32 %v3583_v51, %v3559_v38  ;;  %v9540_v34 = vrot.slane %v8061_v19, 1 }
 0x3c8   : > { %v3167_v35 = vsel %vm3157_vm8, %v9539_v18, %v3148_v58  ;;  %v8288_v53 = vmul.f32 %v8020_v31, %v3165_v16  ;;  %v3212_v11 = vsel %vm3206_vm13, %v3199_v54, %v9281_v15  ;;  %v3252_v23 = vmul.f32 %v9516_v2, %v8132_v7 }
 0x3c9   : > { %v8285_v28 = vmul.f32 %v8015_v40, %v3167_v35  ;;  %v3214_v58 = vsel %vm3206_vm13, %v9540_v34, %v3199_v54  ;;  %v3276_v38 = vmul.f32 %v9519_v17, %v7859_v26  ;;  %v8302_v14 = vadd.f32 %v3597_v44, %v3491_v60 }
 0x3ca   : > { %v8304_v5 = vadd.f32 %v3599_v55, %v3493_v39  ;;  %v8307_v63 = vmul.f32 %v8025_v46, %v3214_v58  ;;  %v8310_v51 = vmul.f32 %v8049_v6, %v3212_v11  ;;  %v3278_v54 = vmul.f32 %v9519_v17, %v8061_v19 }
 0x3cb   : > { %9541 = vst [vmem:[#allocation70_spill] sm:$0xff] %v8302_v14  ;;  %v3254_v4 = vmul.f32 %v9516_v2, %v8285_v28  ;;  %v3292_v16 = vadd.f32 %v3276_v38, %v3252_v23  ;;  %v3316_v18 = vmul.f32 %v9521_v13, %v8183_v1  ;;  %v3382_v39 = vmul.f32 %v9522_v20, %v8124_v22 }
 0x3cc   : > { %9542 = vst [vmem:[#allocation73_spill] sm:$0xff] %v8304_v5  ;;  %v3318_v55 = vmul.f32 %v9521_v13, %v8307_v63  ;;  %v3384_v44 = vmul.f32 %v9522_v20, %v8132_v7  ;;  %v3406_v34 = vmul.f32 %v9524_v8, %v7843_v3  ;;  %v3408_v58 = vmul.f32 %v9524_v8, %v7859_v26 }
 0x3cd   : > { %v3294_v35 = vadd.f32 %v3278_v54, %v3254_v4  ;;  %v3332_v11 = vadd.f32 %v3316_v18, %v3292_v16  ;;  %v3446_v23 = vmul.f32 %v9525_v47, %v8156_v59  ;;  %v3448_v38 = vmul.f32 %v9525_v47, %v8183_v1 }
 0x3ce   : > { %v3522_v22 = vmul.f32 %v9527_v41, %v8285_v28  ;;  %v3524_v7 = vmul.f32 %v9527_v41, %v8288_v53  ;;  %v3422_v16 = vadd.f32 %v3406_v34, %v3382_v39  ;;  %v3424_v3 = vadd.f32 %v3408_v58, %v3384_v44 }
 0x3cf   : > { %v3334_v4 = vadd.f32 %v3318_v55, %v3294_v35  ;;  %v3360_v54 = vadd.f32 %v9530_v24, %v3332_v11  ;;  %v3546_v26 = vmul.f32 %v9528_v57, %v8061_v19  ;;  %v3548_v59 = vmul.f32 %v9528_v57, %v8066_v29 }
 0x3d0   : > { %v3586_v1 = vmul.f32 %v8205_v9, %v8307_v63  ;;  %v3588_v18 = vmul.f32 %v8205_v9, %v8310_v51  ;;  %v3462_v15 = vadd.f32 %v3446_v23, %v3422_v16  ;;  %v3464_v55 = vadd.f32 %v3448_v38, %v3424_v3  ;;  %v9544_v9 = vld [vmem:[#allocation112_spill] sm:$0xff] }
 0x3d1   : > { %v3362_v60 = vadd.f32 %v9530_v24, %v3334_v4  ;;  %v3147_v35 = vrot.slane %v8074_v49, 7  ;;  %v3562_v39 = vadd.f32 %v3546_v26, %v3522_v22  ;;  %v3564_v44 = vadd.f32 %v3548_v59, %v3524_v7 }
 0x3d2   : > { %v3149_v11 = vrot.slane %v8077_v50, 7  ;;  %v3198_v34 = vrot.slane %v8077_v50, 1  ;;  %v3496_v58 = vadd.f32 %v3462_v15, %v3360_v54  ;;  %v9543_v14 = vrot.slane %v7970_v33, 7 }
 0x3d3   : > { %v3498_v30 = vadd.f32 %v3464_v55, %v3362_v60  ;;  %v9288_v57 = vrot.slane %v9544_v9, 1  ;;  %v3602_v4 = vadd.f32 %v3586_v1, %v3562_v39  ;;  %v3604_v23 = vadd.f32 %v3588_v18, %v3564_v44  ;;  %v9548_v1 = vld [vmem:[#allocation69_spill] sm:$0xff] }
 0x3d4   : > { %v3166_v5 = vsel %vm3157_vm8, %v9543_v14, %v3147_v35  ;;  %v3164_v38 = vsel %vm3157_vm8, %v3147_v35, %v3149_v11  ;;  %v9545_v60 = vrot.slane %v8074_v49, 1  ;;  %v3251_v54 = vmul.f32 %v9529_v56, %v8127_v42 }
 0x3d5   : > { %v8361_v22 = vmul.f32 %v8015_v40, %v3166_v5  ;;  %v8364_v15 = vmul.f32 %v8020_v31, %v3164_v38  ;;  %v3211_v14 = vsel %vm3206_vm13, %v3198_v34, %v9288_v57  ;;  %v8376_v16 = vadd.f32 %v3602_v4, %v3496_v58 }
 0x3d6   : > { %v3213_v7 = vsel %vm3206_vm13, %v9545_v60, %v3198_v34  ;;  %v8378_v40 = vadd.f32 %v3604_v23, %v3498_v30  ;;  %v8384_v5 = vmul.f32 %v8049_v6, %v3211_v14  ;;  %v3275_v26 = vmul.f32 %v9532_v25, %v7970_v33 }
 0x3d7   : > { %9546 = vst [vmem:[#allocation58_spill] sm:$0xff] %v8376_v16  ;;  %v8381_v31 = vmul.f32 %v8025_v46, %v3213_v7  ;;  %v3253_v3 = vmul.f32 %v9529_v56, %v8361_v22  ;;  %v3277_v59 = vmul.f32 %v9532_v25, %v8074_v49  ;;  %v3315_v18 = vmul.f32 %v9548_v1, %v8180_v62  ;;  %v5628_v16 = vld [vmem:[#allocation21 + $0xc4] ss:$8 sps:$4 sm:$0xff]  }
 0x3d8   : > { %9547 = vst [vmem:[#allocation82_spill] sm:$0xff] %v8378_v40  ;;  %v3381_v6 = vmul.f32 %v7847_v52, %v8121_v12  ;;  %v3383_v55 = vmul.f32 %v7847_v52, %v8127_v42  ;;  %v3291_v35 = vadd.f32 %v3275_v26, %v3251_v54  ;;  %v3405_v44 = vmul.f32 %v9533_v32, %v7953_v61 }
 0x3d9   : > { %v3317_v46 = vmul.f32 %v9548_v1, %v8381_v31  ;;  %v3293_v39 = vadd.f32 %v3277_v59, %v3253_v3  ;;  %v3407_v34 = vmul.f32 %v9533_v32, %v7970_v33  ;;  %v3445_v58 = vmul.f32 %v7851_v48, %v8166_v45 }
 0x3da   : > { %v3447_v4 = vmul.f32 %v7851_v48, %v8180_v62  ;;  %v3521_v12 = vmul.f32 %v9536_v43, %v8361_v22  ;;  %v3523_v42 = vmul.f32 %v9536_v43, %v8364_v15  ;;  %v3331_v23 = vadd.f32 %v3315_v18, %v3291_v35 }
 0x3db   : > { %v3333_v38 = vadd.f32 %v3317_v46, %v3293_v39  ;;  %v3421_v14 = vadd.f32 %v3405_v44, %v3381_v6  ;;  %v3423_v60 = vadd.f32 %v3407_v34, %v3383_v55  ;;  %v3545_v61 = vmul.f32 %v9538_v10, %v8074_v49  ;;  %v1653_v39 = vld [vmem:[%s9549_s3 + $0x8] sm:$0xff]  ;;  %v1655_v44 = vld [vmem:[%s9549_s3 + $0x18] sm:$0xff] }
 0x3dc   : > { %v3547_v33 = vmul.f32 %v9538_v10, %v8077_v50  ;;  %v3359_v45 = vadd.f32 %v9537_v27, %v3331_v23  ;;  %v3585_v59 = vmul.f32 %v8252_v21, %v8381_v31  ;;  %v3587_v18 = vmul.f32 %v8252_v21, %v8384_v5 }
 0x3dd   : > { %v3361_v62 = vadd.f32 %v9537_v27, %v3333_v38  ;;  %v3461_v7 = vadd.f32 %v3445_v58, %v3421_v14  ;;  %v3463_v54 = vadd.f32 %v3447_v4, %v3423_v60  ;;  %v3561_v3 = vadd.f32 %v3545_v61, %v3521_v12  ;;  %v1652_v12 = vld [vmem:[%s9549_s3] sm:$0xff] }
 0x3de   : > { %v3563_v26 = vadd.f32 %v3547_v33, %v3523_v42  ;;  %v5181_v34 = vpack.c.bf16 %v1655_v44, %v1653_v39  ;;  %v1654_v42 = vld [vmem:[%s9549_s3 + $0x10] sm:$0xff]  ;;  %v4831_v14 = vld [vmem:[#allocation2] ss:$0 sm:$0xff]  ;;  %v3282_v23 = vmul.f32 %v9519_v17, %v8069_v37  ;;  %vm3004_vm5 = vcmask 1040384  }
 0x3df   : > { %v3495_v46 = vadd.f32 %v3461_v7, %v3359_v45  ;;  %v3497_v6 = vadd.f32 %v3463_v54, %v3361_v62  ;;  %v3601_v55 = vadd.f32 %v3585_v59, %v3561_v3  ;;  %v5183_v38 = vpack.c.bf16 %v1654_v42, %v1652_v12  ;;  %v5496_v33 = vld [vmem:[#allocation24 + $0x4] ss:$8 sps:$4 sm:$0xff]   ;;  %v9553_v12 = vld [vmem:[#allocation109_spill] sm:$0xff] }
 0x3e0   : > { %v3603_v35 = vadd.f32 %v3587_v18, %v3563_v26  ;;  %5182 = vmatprep.subr.bf16.mxu0 %v5181_v34  ;;  %5186 = vmatprep.subr.bf16.mxu1 %v5181_v34  ;;  %v5517_v3 = vld [vmem:[#allocation27 + $0x4] ss:$8 sps:$4 sm:$0xff]  }
 0x3e1   : > { %v8430_v58 = vadd.f32 %v3601_v55, %v3495_v46  ;;  %5184 = vmatpush1.bf16.msra.mxu0 %v5183_v38  ;;  %5188 = vmatpush1.bf16.msra.mxu1 %v5183_v38  ;;  %v9554_v38 = vld [vmem:[#allocation108_spill] sm:$0xff] }
 0x3e2   : > { %v8432_v4 = vadd.f32 %v3603_v35, %v3497_v6  ;;  %2961 = vmatprep.subr.bf16.mxu0 %v5496_v33  ;;  %2666 = vmatprep.subr.bf16.mxu1 %v5517_v3  ;;  %v9552_v35 = vld [vmem:[#allocation96_spill] sm:$0xff] }
 0x3e3   : > { %9550 = vst [vmem:[#allocation74_spill] sm:$0xff] %v8430_v58  ;;  %v2227_v39 = vadd.f32 %v9552_v35, %v8061_v19  ;;  %v5625_v58 = vld [vmem:[#allocation21 + $0xb4] ss:$8 sps:$4 sm:$0xff]  }
 0x3e4   : > { %9551 = vst [vmem:[#allocation80_spill] sm:$0xff] %v8432_v4  ;;  %v3412_v4 = vmul.f32 %v9524_v8, %v8066_v29 }
 0x3e5   : > { %v2228_v44 = vadd.f32 %v2227_v39, %v8066_v29  ;;  %v5497_v39 = vld [vmem:[#allocation24 + $0x10] ss:$8 sps:$4 sm:$0xff]  }
 0x3e7   : > { %v2229_v34 = vadd.f32 %v2228_v44, %v8069_v37  ;;  %v5502_v44 = vld [vmem:[#allocation24 + $0x24] ss:$8 sps:$4 sm:$0xff]  }
 0x3e9   : > { %v2281_v60 = vpop.xlane.xlu1 %2280  ;;  %v2230_v42 = vadd.f32 %v2229_v34, %v9553_v12 }
 0x3ea   : > { %v2308_v61 = vadd.f32 %v4831_v14, %v2281_v60 }
 0x3ec   : > { %v4833_v45 = vmul.f32 -1.442695, %v2308_v61 }
 0x3ee   : > { %5702 = vpow2.f32 %v4833_v45 }
 0x3f1   : > { %v2284_v62 = vpop.xlane.xlu1 %2283 }
 0x3f2   : > { %v2309_v7 = vadd.f32 %v4831_v14, %v2284_v62  ;;  %v2231_v14 = vadd.f32 %v2230_v42, %v9554_v38 }
 0x3f4   : > { %v4834_v54 = vmul.f32 -1.442695, %v2309_v7  ;;  %v2232_v60 = vrot.slane %v2231_v14, 4 }
 0x3f6   : > { %5704 = vpow2.f32 %v4834_v54  ;;  %v2233_v61 = vadd.f32 %v2232_v60, %v2231_v14 }
 0x3f8   : > { %v5703_v26 = vpop.eup %5702  ;;  %v2234_v33 = vrot.slane %v2233_v61, 2 }
 0x3f9   : > { %v2340_v59 = vadd.f32 1.0, %v5703_v26 }
 0x3fa   : > { %v2235_v45 = vadd.f32 %v2234_v33, %v2233_v61  ;;  %v5500_v61 = vld [vmem:[#allocation24 + $0x20] ss:$8 sps:$4 sm:$0xff]   ;;  %v5505_v33 = vld [vmem:[#allocation24 + $0x34] ss:$8 sps:$4 sm:$0xff]  }
 0x3fb   : > { %5706 = vrcp.f32 %v2340_v59 }
 0x3fc   : > { %v2236_v62 = vrot.slane %v2235_v45, 1 }
 0x3fe   : > { %v2237_v7 = vadd.f32 %v2236_v62, %v2235_v45 }
 0x400   : > { %v5705_v18 = vpop.eup %5704  ;;  %v2239_v26 = vmul.f32 0.015625, %v2237_v7  ;;  %v5503_v7 = vld [vmem:[#allocation24 + $0x30] ss:$8 sps:$4 sm:$0xff]  }
 0x401   : > { %v2341_v46 = vadd.f32 1.0, %v5705_v18  ;;  %v5494_v18 = vld [vmem:[#allocation24] ss:$8 sps:$4 sm:$0xff]  }
 0x403   : > { %5708 = vrcp.f32 %v2341_v46 }
 0x405   : > { %v5707_v6 = vpop.eup %5706 }
 0x406   : > { %2370 = vperm.xlu1 %5405, %v5707_v6   ;;  %v5499_v6 = vld [vmem:[#allocation24 + $0x14] ss:$8 sps:$4 sm:$0xff]  }
 0x40d   : > { %v5709_v55 = vpop.eup %5708 }
 0x40e   : > { %2375 = vperm.xlu1 %5405, %v5709_v55   ;;  %v2756_v55 = vpack.c.bf16 %v2239_v26, %v2239_v26  ;;  %v5506_v26 = vld [vmem:[#allocation24 + $0x40] ss:$8 sps:$4 sm:$0xff]  }
 0x459   : > { %v5039_v54 = vpop.f32.mrb[16].mxu1 }
 0x45a   : > { %v5040_v3 = vpop.f32.mrb[17].mxu1 }
 0x45b   : > { %v5041_v59 = vadd.f32 %v5040_v3, %v5039_v54  ;;  %v5508_v54 = vld [vmem:[#allocation24 + $0x44] ss:$8 sps:$4 sm:$0xff]  }
 0x45d   : > { %v1726_v46 = vmul.f32 0.0009765625, %v5041_v59  ;;  %v5511_v59 = vld [vmem:[#allocation24 + $0x54] ss:$8 sps:$4 sm:$0xff]  }
 0x45f   : > { %v1797_v35 = vmul.f32 1024.0, %v1726_v46  ;;  %4829 = vmatmul.mubr.msk.f32.vlgmr.msra.gmra.mrb[18].mxu0 %vm1802_vm14, %v1726_v46 }
 0x460   : > { %2962 = vmatpush1.bf16.msra.mxu0 %v5494_v18  ;;  %2993 = vmatprep.mubr.bf16.mxu0 %v2756_v55  ;;  %v9555_v18 = vld [vmem:[#allocation107_spill] sm:$0xff] }
 0x461   : > { %2963 = vmatprep.subr.bf16.mxu0 %v5499_v6  ;;  %v1798_v42 = vmul.f32 %v1797_v35, %v1726_v46  ;;  %v2214_v46 = vadd.f32 %v9555_v18, %v8074_v49  ;;  %v5509_v6 = vld [vmem:[#allocation24 + $0x50] ss:$8 sps:$4 sm:$0xff]   ;;  %v5514_v55 = vld [vmem:[#allocation24 + $0x64] ss:$8 sps:$4 sm:$0xff]  }
 0x462   : > { %v5074_v34 = vpop.f32.mrb[16].mxu0  ;;  %v9557_v18 = vld [vmem:[#allocation99_spill] sm:$0xff] }
 0x463   : > { %v5075_v14 = vpop.f32.mrb[17].mxu0  ;;  %v2215_v35 = vadd.f32 %v2214_v46, %v8077_v50  ;;  %v9558_v46 = vld [vmem:[#allocation98_spill] sm:$0xff] }
 0x464   : > { %v5076_v60 = vadd.f32 %v5075_v14, %v5074_v34  ;;  %2964 = vmatpush1.bf16.msra.mxu0 %v5497_v39  ;;  %v5512_v39 = vld [vmem:[#allocation24 + $0x60] ss:$8 sps:$4 sm:$0xff]  }
 0x465   : > { %2965 = vmatprep.subr.bf16.mxu0 %v5502_v44  ;;  %v5520_v44 = vld [vmem:[#allocation24 + $0x74] ss:$8 sps:$4 sm:$0xff]  }
 0x466   : > { %v1799_v45 = vsub.f32 %v5076_v60, %v1798_v42  ;;  %v2216_v42 = vadd.f32 %v2215_v35, %v9544_v9  ;;  %v5515_v60 = vld [vmem:[#allocation27] ss:$8 sps:$4 sm:$0xff]  }
 0x467   : > { %v5524_v35 = vld [vmem:[#allocation24 + $0x80] ss:$8 sps:$4 sm:$0xff]  }
 0x468   : > { %v1800_v62 = vmax.f32 %v1799_v45, 0.0  ;;  %2966 = vmatpush1.bf16.msra.mxu0 %v5500_v61  ;;  %v5518_v45 = vld [vmem:[#allocation24 + $0x70] ss:$8 sps:$4 sm:$0xff]  }
 0x469   : > { %2967 = vmatprep.subr.bf16.mxu0 %v5505_v33 }
 0x46a   : > { %v1801_v3 = vmul.f32 0.0009775171, %v1800_v62  ;;  %v5523_v62 = vld [vmem:[#allocation27 + $0x14] ss:$8 sps:$4 sm:$0xff]  }
 0x46c   : > { %5710 = vrsqrt.f32 %v1801_v3  ;;  %2968 = vmatpush1.bf16.msra.mxu0 %v5503_v7  ;;  %vm1879_vm15 = vcmp.eq.f32.partialorder %v1801_v3, inf  ;;  %v1882_v61 = vand.u32 2147483648, %v1801_v3  ;;  %vm1881_vm0 = vcmp.eq.f32.partialorder %v1801_v3, 0.0 }
 0x46d   : > { %2969 = vmatprep.subr.bf16.mxu0 %v5508_v54  ;;  %v5526_v54 = vld [vmem:[#allocation24 + $0x84] ss:$8 sps:$4 sm:$0xff]  }
 0x470   : > { %2970 = vmatpush1.bf16.msra.mxu0 %v5506_v26  ;;  %v9556_v26 = vld [vmem:[#allocation110_spill] sm:$0xff] }
 0x471   : > { %2971 = vmatprep.subr.bf16.mxu0 %v5511_v59  ;;  %v2217_v59 = vadd.f32 %v2216_v42, %v9556_v26  ;;  %v5530_v42 = vld [vmem:[#allocation24 + $0x90] ss:$8 sps:$4 sm:$0xff]  }
 0x474   : > { %2972 = vmatpush1.bf16.msra.mxu0 %v5509_v6  ;;  %v9559_v6 = vpack.c.bf16 %v9557_v18, %v9558_v46  ;;  %v5542_v18 = vld [vmem:[#allocation24 + $0xb0] ss:$8 sps:$4 sm:$0xff]  }
 0x475   : > { %2973 = vmatprep.subr.bf16.mxu0 %v5514_v55  ;;  %v5521_v55 = vld [vmem:[#allocation27 + $0x10] ss:$8 sps:$4 sm:$0xff]   ;;  %v5547_v46 = vld [vmem:[#allocation27 + $0x54] ss:$8 sps:$4 sm:$0xff]  }
 0x476   : > { %v5711_v34 = vpop.eup %5710 }
 0x477   : > { %v1878_v14 = vmul.f32 %v5711_v34, %v1801_v3  ;;  %v5527_v34 = vld [vmem:[#allocation27 + $0x20] ss:$8 sps:$4 sm:$0xff]  }
 0x478   : > { %2974 = vmatpush1.bf16.msra.mxu0 %v5512_v39  ;;  %v5529_v39 = vld [vmem:[#allocation27 + $0x24] ss:$8 sps:$4 sm:$0xff]  }
 0x479   : > { %v1880_v33 = vsel %vm1879_vm15, %v1801_v3, %v1878_v14  ;;  %2975 = vmatprep.subr.bf16.mxu0 %v5520_v44  ;;  %v5532_v3 = vld [vmem:[#allocation24 + $0x94] ss:$8 sps:$4 sm:$0xff]   ;;  %v2218_v44 = vadd.f32 %v2217_v59, %v7997_v0  ;;  %v5539_v59 = vld [vmem:[#allocation27 + $0x40] ss:$8 sps:$4 sm:$0xff]  }
 0x47a   : > { %v1883_v7 = vsel %vm1881_vm0, %v1882_v61, %v1880_v33  ;;  %v5535_v14 = vld [vmem:[#allocation27 + $0x34] ss:$8 sps:$4 sm:$0xff]   ;;  %v5533_v33 = vld [vmem:[#allocation27 + $0x30] ss:$8 sps:$4 sm:$0xff]  }
 0x47b   : > { %4830 = vmatmul.mubr.msk.f32.vlgmr.msra.gmra.mrb[18].mxu1 %vm1802_vm14, %v1883_v7  ;;  %v2219_v61 = vrot.slane %v2218_v44, 4  ;;  %v5544_v7 = vld [vmem:[#allocation24 + $0xb4] ss:$8 sps:$4 sm:$0xff]  }
 0x47c   : > { %2667 = vmatpush1.bf16.msra.mxu1 %v5515_v60  ;;  %2698 = vmatprep.mubr.bf16.mxu1 %v9559_v6  ;;  %v5538_v60 = vld [vmem:[#allocation24 + $0xa4] ss:$8 sps:$4 sm:$0xff]  }
 0x47d   : > { %2668 = vmatprep.subr.bf16.mxu1 %v5523_v62  ;;  %2976 = vmatpush1.bf16.msra.mxu0 %v5518_v45  ;;  %v5536_v45 = vld [vmem:[#allocation24 + $0xa0] ss:$8 sps:$4 sm:$0xff]   ;;  %v5550_v6 = vld [vmem:[#allocation24 + $0xc4] ss:$8 sps:$4 sm:$0xff]  }
 0x47e   : > { %2977 = vmatprep.subr.bf16.mxu0 %v5526_v54  ;;  %v5541_v62 = vld [vmem:[#allocation27 + $0x44] ss:$8 sps:$4 sm:$0xff]   ;;  %v2220_v54 = vadd.f32 %v2219_v61, %v2218_v44  ;;  %v5551_v44 = vld [vmem:[#allocation27 + $0x60] ss:$8 sps:$4 sm:$0xff]  }
 0x47f   : > { %v5562_v61 = vld [vmem:[#allocation24 + $0xe4] ss:$8 sps:$4 sm:$0xff]  }
 0x480   : > { %2669 = vmatpush1.bf16.msra.mxu1 %v5521_v55  ;;  %v2221_v55 = vrot.slane %v2220_v54, 2 }
 0x481   : > { %2670 = vmatprep.subr.bf16.mxu1 %v5529_v39  ;;  %2978 = vmatpush1.bf16.msra.mxu0 %v5524_v35  ;;  %v5545_v35 = vld [vmem:[#allocation27 + $0x50] ss:$8 sps:$4 sm:$0xff]   ;;  %v5548_v39 = vld [vmem:[#allocation24 + $0xc0] ss:$8 sps:$4 sm:$0xff]  }
 0x482   : > { %2979 = vmatprep.subr.bf16.mxu0 %v5532_v3  ;;  %v5553_v3 = vld [vmem:[#allocation27 + $0x64] ss:$8 sps:$4 sm:$0xff]  }
 0x484   : > { %2671 = vmatpush1.bf16.msra.mxu1 %v5527_v34  ;;  %v5556_v34 = vld [vmem:[#allocation24 + $0xd4] ss:$8 sps:$4 sm:$0xff]  }
 0x485   : > { %2672 = vmatprep.subr.bf16.mxu1 %v5535_v14  ;;  %2980 = vmatpush1.bf16.msra.mxu0 %v5530_v42  ;;  %v2222_v42 = vadd.f32 %v2221_v55, %v2220_v54  ;;  %v5554_v14 = vld [vmem:[#allocation24 + $0xd0] ss:$8 sps:$4 sm:$0xff]   ;;  %v5563_v54 = vld [vmem:[#allocation27 + $0x80] ss:$8 sps:$4 sm:$0xff]  }
 0x486   : > { %2981 = vmatprep.subr.bf16.mxu0 %v5538_v60  ;;  %v5559_v60 = vld [vmem:[#allocation27 + $0x74] ss:$8 sps:$4 sm:$0xff]  }
 0x488   : > { %2673 = vmatpush1.bf16.msra.mxu1 %v5533_v33  ;;  %v2223_v33 = vrot.slane %v2222_v42, 1 }
 0x489   : > { %2674 = vmatprep.subr.bf16.mxu1 %v5541_v62  ;;  %2982 = vmatpush1.bf16.msra.mxu0 %v5536_v45  ;;  %v5557_v45 = vld [vmem:[#allocation27 + $0x70] ss:$8 sps:$4 sm:$0xff]   ;;  %v5560_v62 = vld [vmem:[#allocation24 + $0xe0] ss:$8 sps:$4 sm:$0xff]  }
 0x48a   : > { %2983 = vmatprep.subr.bf16.mxu0 %v5544_v7  ;;  %v5565_v7 = vld [vmem:[#allocation27 + $0x84] ss:$8 sps:$4 sm:$0xff]  }
 0x48c   : > { %2675 = vmatpush1.bf16.msra.mxu1 %v5539_v59  ;;  %v5568_v59 = vld [vmem:[#allocation24 + $0xf4] ss:$8 sps:$4 sm:$0xff]  }
 0x48d   : > { %2676 = vmatprep.subr.bf16.mxu1 %v5547_v46  ;;  %2984 = vmatpush1.bf16.msra.mxu0 %v5542_v18  ;;  %v2224_v18 = vadd.f32 %v2223_v33, %v2222_v42  ;;  %v5566_v46 = vld [vmem:[#allocation24 + $0xf0] ss:$8 sps:$4 sm:$0xff]  }
 0x48e   : > { %2985 = vmatprep.subr.bf16.mxu0 %v5550_v6  ;;  %v5571_v6 = vld [vmem:[#allocation27 + $0x94] ss:$8 sps:$4 sm:$0xff]   ;;  %v5575_v42 = vld [vmem:[#allocation27 + $0xb0] ss:$8 sps:$4 sm:$0xff]  }
 0x48f   : > { %v2238_v55 = vmul.f32 0.015625, %v2224_v18  ;;  %v5581_v33 = vld [vmem:[#allocation27 + $0xd0] ss:$8 sps:$4 sm:$0xff]   ;;  %v5592_v18 = vld [vmem:[#allocation21 + $0x4] ss:$8 sps:$4 sm:$0xff]  }
 0x490   : > { %2677 = vmatpush1.bf16.msra.mxu1 %v5545_v35  ;;  %v5569_v35 = vld [vmem:[#allocation27 + $0x90] ss:$8 sps:$4 sm:$0xff]  }
 0x491   : > { %2678 = vmatprep.subr.bf16.mxu1 %v5553_v3  ;;  %2986 = vmatpush1.bf16.msra.mxu0 %v5548_v39  ;;  %v5574_v39 = vld [vmem:[#allocation27 + $0xa4] ss:$8 sps:$4 sm:$0xff]   ;;  %v2755_v3 = vpack.c.bf16 %v2238_v55, %v2238_v55 }
 0x492   : > { %2987 = vmatprep.subr.bf16.mxu0 %v5556_v34  ;;  %v5572_v34 = vld [vmem:[#allocation27 + $0xa0] ss:$8 sps:$4 sm:$0xff]  }
 0x493   : > { %v9561_v55 = vld [vmem:[#allocation51_spill] sm:$0xff] }
 0x494   : > { %2679 = vmatpush1.bf16.msra.mxu1 %v5551_v44  ;;  %v5577_v44 = vld [vmem:[#allocation27 + $0xb4] ss:$8 sps:$4 sm:$0xff]  }
 0x495   : > { %2680 = vmatprep.subr.bf16.mxu1 %v5559_v60  ;;  %2988 = vmatpush1.bf16.msra.mxu0 %v5554_v14  ;;  %v5580_v14 = vld [vmem:[#allocation27 + $0xc4] ss:$8 sps:$4 sm:$0xff]   ;;  %v5578_v60 = vld [vmem:[#allocation27 + $0xc0] ss:$8 sps:$4 sm:$0xff]  }
 0x496   : > { %2989 = vmatprep.subr.bf16.mxu0 %v5562_v61  ;;  %v5583_v61 = vld [vmem:[#allocation27 + $0xd4] ss:$8 sps:$4 sm:$0xff]  }
 0x498   : > { %2681 = vmatpush1.bf16.msra.mxu1 %v5557_v45  ;;  %v5586_v45 = vld [vmem:[#allocation27 + $0xe4] ss:$8 sps:$4 sm:$0xff]  }
 0x499   : > { %2682 = vmatprep.subr.bf16.mxu1 %v5565_v7  ;;  %2990 = vmatpush1.bf16.msra.mxu0 %v5560_v62  ;;  %v5584_v62 = vld [vmem:[#allocation27 + $0xe0] ss:$8 sps:$4 sm:$0xff]   ;;  %v5589_v7 = vld [vmem:[#allocation27 + $0xf4] ss:$8 sps:$4 sm:$0xff]  }
 0x49a   : > { %2991 = vmatprep.subr.bf16.mxu0 %v5568_v59  ;;  %v5587_v59 = vld [vmem:[#allocation27 + $0xf0] ss:$8 sps:$4 sm:$0xff]  }
 0x49c   : > { %2683 = vmatpush1.bf16.msra.mxu1 %v5563_v54  ;;  %v5590_v54 = vld [vmem:[#allocation21] ss:$8 sps:$4 sm:$0xff]  }
 0x49d   : > { %2684 = vmatprep.subr.bf16.mxu1 %v5571_v6  ;;  %2992 = vmatpush1.bf16.msra.mxu0 %v5566_v46  ;;  %v5595_v46 = vld [vmem:[#allocation21 + $0x14] ss:$8 sps:$4 sm:$0xff]   ;;  %v9560_v6 = vld [vmem:[#allocation84_spill] sm:$0xff] }
 0x4a0   : > { %2685 = vmatpush1.bf16.msra.mxu1 %v5569_v35  ;;  %2994 = vmatmul.mubr.bf16.vlgmr.msra.gmra.mrb[20].mxu0 %v2755_v3  ;;  %v9562_v35 = vpack.c.bf16 %v9560_v6, %v9561_v55  ;;  %v9564_v3 = vld [vmem:[#allocation100_spill] sm:$0xff]  ;;  %v3030_v55 = vadd.s32 40, %v9475_v36 }
 0x4a1   : > { %2686 = vmatprep.subr.bf16.mxu1 %v5574_v39  ;;  %v9563_v39 = vld [vmem:[#allocation101_spill] sm:$0xff]  ;;  %v5604_v6 = vld [vmem:[#allocation21 + $0x44] ss:$8 sps:$4 sm:$0xff]  }
 0x4a4   : > { %2687 = vmatpush1.bf16.msra.mxu1 %v5572_v34  ;;  %v9565_v34 = vpack.c.bf16 %v9563_v39, %v9564_v3  ;;  %v9573_v39 = vld [vmem:[#allocation60_spill] sm:$0xff] }
 0x4a5   : > { %2688 = vmatprep.subr.bf16.mxu1 %v5577_v44  ;;  %v5593_v44 = vld [vmem:[#allocation21 + $0x10] ss:$8 sps:$4 sm:$0xff]  }
 0x4a8   : > { %2689 = vmatpush1.bf16.msra.mxu1 %v5575_v42  ;;  %v5598_v42 = vld [vmem:[#allocation21 + $0x24] ss:$8 sps:$4 sm:$0xff]  }
 0x4a9   : > { %2690 = vmatprep.subr.bf16.mxu1 %v5580_v14  ;;  %v5596_v14 = vld [vmem:[#allocation21 + $0x20] ss:$8 sps:$4 sm:$0xff]  }
 0x4ac   : > { %2691 = vmatpush1.bf16.msra.mxu1 %v5578_v60  ;;  %v5601_v60 = vld [vmem:[#allocation21 + $0x34] ss:$8 sps:$4 sm:$0xff]  }
 0x4ad   : > { %2692 = vmatprep.subr.bf16.mxu1 %v5583_v61  ;;  %v9566_v61 = vld [vmem:[#allocation56_spill] sm:$0xff] }
 0x4b0   : > { %2693 = vmatpush1.bf16.msra.mxu1 %v5581_v33  ;;  %v9567_v33 = vld [vmem:[#allocation86_spill] sm:$0xff] }
 0x4b1   : > { %2694 = vmatprep.subr.bf16.mxu1 %v5586_v45  ;;  %v9568_v45 = vpack.c.bf16 %v9566_v61, %v9567_v33  ;;  %v5605_v61 = vld [vmem:[#allocation21 + $0x50] ss:$8 sps:$4 sm:$0xff]   ;;  %v5608_v33 = vld [vmem:[#allocation21 + $0x60] ss:$8 sps:$4 sm:$0xff]  }
 0x4b4   : > { %2695 = vmatpush1.bf16.msra.mxu1 %v5584_v62  ;;  %v9569_v62 = vld [vmem:[#allocation103_spill] sm:$0xff] }
 0x4b5   : > { %2696 = vmatprep.subr.bf16.mxu1 %v5589_v7  ;;  %v9570_v7 = vld [vmem:[#allocation102_spill] sm:$0xff] }
 0x4b8   : > { %2697 = vmatpush1.bf16.msra.mxu1 %v5587_v59  ;;  %v9571_v59 = vpack.c.bf16 %v9569_v62, %v9570_v7  ;;  %v3152_v62 = vrot.slane %v8069_v37, 7  ;;  %v3031_v7 = vadd.s32 48, %v9475_v36 }
 0x4b9   : > { %3855 = vmatprep.subr.bf16.mxu1 %v5592_v18  ;;  %v5599_v18 = vld [vmem:[#allocation21 + $0x30] ss:$8 sps:$4 sm:$0xff]  }
 0x4bb   : > { %2699 = vmatmul.mubr.bf16.vlgmr.msra.gmra.mrb[20].mxu1 %v9562_v35  ;;  %v9572_v35 = vld [vmem:[#allocation78_spill] sm:$0xff] }
 0x4bc   : > { %2708 = vmatprep.mubr.bf16.mxu1 %v9565_v34  ;;  %3856 = vmatpush1.bf16.msra.mxu1 %v5590_v54  ;;  %v5602_v54 = vld [vmem:[#allocation21 + $0x40] ss:$8 sps:$4 sm:$0xff]   ;;  %v9574_v3 = vpack.c.bf16 %v9572_v35, %v9573_v39  ;;  %v9575_v34 = vld [vmem:[#allocation105_spill] sm:$0xff] }
 0x4bd   : > { %3857 = vmatprep.subr.bf16.mxu1 %v5595_v46  ;;  %v5607_v46 = vld [vmem:[#allocation21 + $0x54] ss:$8 sps:$4 sm:$0xff]   ;;  %v9581_v35 = vld [vmem:[#allocation59_spill] sm:$0xff] }
 0x4c0   : > { %3858 = vmatpush1.bf16.msra.mxu1 %v5593_v44  ;;  %v9576_v44 = vld [vmem:[#allocation104_spill] sm:$0xff] }
 0x4c1   : > { %3859 = vmatprep.subr.bf16.mxu1 %v5598_v42  ;;  %v9577_v42 = vpack.c.bf16 %v9575_v34, %v9576_v44  ;;  %v9585_v44 = vrot.slane %v8066_v29, 7 }
 0x4c3   : > { %2709 = vmatmul.mubr.bf16.gmra.mrb[24].mxu1 %v9568_v45  ;;  %v5613_v45 = vld [vmem:[#allocation21 + $0x74] ss:$8 sps:$4 sm:$0xff]  }
 0x4c4   : > { %2718 = vmatprep.mubr.bf16.mxu1 %v9571_v59  ;;  %3860 = vmatpush1.bf16.msra.mxu1 %v5596_v14  ;;  %v5610_v14 = vld [vmem:[#allocation21 + $0x64] ss:$8 sps:$4 sm:$0xff]   ;;  %v9578_v59 = vld [vmem:[#allocation97_spill] sm:$0xff] }
 0x4c5   : > { %3861 = vmatprep.subr.bf16.mxu1 %v5601_v60  ;;  %v3038_v60 = vand.u32 7, %v3030_v55  ;;  %v5616_v55 = vld [vmem:[#allocation21 + $0x84] ss:$8 sps:$4 sm:$0xff]  }
 0x4c7   : > { %vm3046_vm1 = vcmp.ge.s32.totalorder %v3038_v60, 1  ;;  %vm3070_vm2 = vcmp.le.s32.totalorder %v3038_v60, 6 }
 0x4c8   : > { %3862 = vmatpush1.bf16.msra.mxu1 %v5599_v18  ;;  %v9579_v18 = vld [vmem:[#allocation43_spill] sm:$0xff] }
 0x4c9   : > { %3863 = vmatprep.subr.bf16.mxu1 %v5604_v6  ;;  %v9580_v6 = vpack.c.bf16 %v9578_v59, %v9579_v18  ;;  %v5614_v59 = vld [vmem:[#allocation21 + $0x80] ss:$8 sps:$4 sm:$0xff]   ;;  %v5619_v18 = vld [vmem:[#allocation21 + $0x94] ss:$8 sps:$4 sm:$0xff]  }
 0x4cb   : > { %2719 = vmatmul.mubr.bf16.gmra.mrb[28].mxu1 %v9574_v3  ;;  %v9584_v3 = vmov 0.0  }
 0x4cc   : > { %2728 = vmatprep.mubr.bf16.mxu1 %v9577_v42  ;;  %3864 = vmatpush1.bf16.msra.mxu1 %v5602_v54  ;;  %v9582_v54 = vld [vmem:[#allocation55_spill] sm:$0xff]  ;;  %v4909_v34 = vsel %vm3046_vm1, 1.0, %v9584_v3  ;;  %v3163_v42 = vsel %vm3157_vm8, %v9585_v44, %v3152_v62  ;;  %v9587_v44 = vrot.slane %v9553_v12, 7 }
 0x4cd   : > { %3865 = vmatprep.subr.bf16.mxu1 %v5607_v46  ;;  %v9583_v39 = vpack.c.bf16 %v9581_v35, %v9582_v54  ;;  %v5611_v46 = vld [vmem:[#allocation21 + $0x70] ss:$8 sps:$4 sm:$0xff]  }
 0x4ce   : > { %v5617_v54 = vld [vmem:[#allocation21 + $0x90] ss:$8 sps:$4 sm:$0xff]  }
 0x4d0   : > { %3866 = vmatpush1.bf16.msra.mxu1 %v5605_v61  ;;  %v3039_v61 = vand.u32 7, %v3031_v7  ;;  %v3256_v7 = vmul.f32 %v9516_v2, %v8288_v53 }
 0x4d1   : > { %3867 = vmatprep.subr.bf16.mxu1 %v5610_v14  ;;  %v3203_v14 = vrot.slane %v9553_v12, 1 }
 0x4d2   : > { %vm3047_vm3 = vcmp.ge.s32.totalorder %v3039_v61, 1  ;;  %vm3071_vm4 = vcmp.le.s32.totalorder %v3039_v61, 6 }
 0x4d3   : > { %2729 = vmatmul.mubr.bf16.gmra.mrb[32].mxu1 %v9580_v6  ;;  %v9586_v6 = vrot.slane %v8069_v37, 1 }
 0x4d4   : > { %3868 = vmatpush1.bf16.msra.mxu1 %v5608_v33  ;;  %3887 = vmatprep.mubr.bf16.mxu1 %v9583_v39  ;;  %v8492_v33 = vmul.f32 %v4909_v34, %v3163_v42  ;;  %v3151_v39 = vrot.slane %v9544_v9, 7  ;;  %v3161_v42 = vsel %vm3157_vm8, %v3152_v62, %v9587_v44  ;;  %v8522_v62 = vsel %vm3071_vm4, 1.0, %v9584_v3 }
 0x4d5   : > { %3869 = vmatprep.subr.bf16.mxu1 %v5613_v45  ;;  %v4917_v45 = vsel %vm3070_vm2, 1.0, %v9584_v3  ;;  %v3210_v35 = vsel %vm3206_vm13, %v9586_v6, %v3203_v14  ;;  %v3280_v6 = vmul.f32 %v9519_v17, %v8066_v29  ;;  %v9588_v44 = vrot.slane %v9554_v38, 1 }
 0x4d6   : > { %v3258_v60 = vmul.f32 %v9516_v2, %v8492_v33  ;;  %v3162_v61 = vsel %vm3157_vm8, %v3149_v11, %v3151_v39  ;;  %v3386_v11 = vmul.f32 %v9522_v20, %v8285_v28  ;;  %v3450_v29 = vmul.f32 %v9525_v47, %v8307_v63 }
 0x4d7   : > { %v3296_v30 = vadd.f32 %v3280_v6, %v3256_v7 }
 0x4d8   : > { %3870 = vmatpush1.bf16.msra.mxu1 %v5611_v46  ;;  %v5622_v46 = vld [vmem:[#allocation21 + $0xa4] ss:$8 sps:$4 sm:$0xff]   ;;  %v3298_v57 = vadd.f32 %v3282_v23, %v3258_v60  ;;  %v3320_v23 = vmul.f32 %v9521_v13, %v8310_v51  ;;  %v3202_v60 = vrot.slane %v9556_v26, 1 }
 0x4d9   : > { %3871 = vmatprep.subr.bf16.mxu1 %v5616_v55  ;;  %v8505_v55 = vsel %vm3047_vm3, 1.0, %v9584_v3  ;;  %v3388_v3 = vmul.f32 %v9522_v20, %v8288_v53  ;;  %v3526_v53 = vmul.f32 %v9527_v41, %v8492_v33 }
 0x4da   : > { %v3336_v6 = vadd.f32 %v3320_v23, %v3296_v30 }
 0x4dc   : > { %3872 = vmatpush1.bf16.msra.mxu1 %v5614_v59  ;;  %v8511_v59 = vmul.f32 %v4917_v45, %v3210_v35  ;;  %v8525_v35 = vmul.f32 %v8505_v55, %v3161_v42  ;;  %v5623_v42 = vld [vmem:[#allocation21 + $0xb0] ss:$8 sps:$4 sm:$0xff]   ;;  %v3364_v23 = vadd.f32 %v9530_v24, %v3336_v6 }
 0x4dd   : > { %3873 = vmatprep.subr.bf16.mxu1 %v5619_v18  ;;  %v5620_v18 = vld [vmem:[#allocation21 + $0xa0] ss:$8 sps:$4 sm:$0xff]  }
 0x4de   : > { %v3322_v7 = vmul.f32 %v9521_v13, %v8511_v59  ;;  %v3528_v30 = vmul.f32 %v9527_v41, %v8525_v35  ;;  %v9592_v41 = vrot.slane %v9556_v26, 7 }
 0x4e0   : > { %3874 = vmatpush1.bf16.msra.mxu1 %v5617_v54  ;;  %v3208_v54 = vsel %vm3206_vm13, %v3203_v14, %v9588_v44  ;;  %v3338_v14 = vadd.f32 %v3322_v7, %v3298_v57  ;;  %v3410_v44 = vmul.f32 %v9524_v8, %v8061_v19  ;;  %v9589_v57 = vrot.slane %v9544_v9, 1 }
 0x4e1   : > { %3875 = vmatprep.subr.bf16.mxu1 %v5622_v46  ;;  %v8540_v46 = vmul.f32 %v4909_v34, %v3162_v61  ;;  %v8547_v28 = vmul.f32 %v8522_v62, %v3208_v54  ;;  %v3428_v61 = vadd.f32 %v3412_v4, %v3388_v3  ;;  %v5626_v54 = vld [vmem:[#allocation21 + $0xc0] ss:$8 sps:$4 sm:$0xff]  }
 0x4e2   : > { %v3426_v34 = vadd.f32 %v3410_v44, %v3386_v11  ;;  %v3209_v19 = vsel %vm3206_vm13, %v9589_v57, %v3202_v60  ;;  %v3366_v7 = vadd.f32 %v9530_v24, %v3338_v14  ;;  %v9590_v11 = vld [vmem:[#allocation72_spill] sm:$0xff]  ;;  %v3279_v57 = vmul.f32 %v9532_v25, %v8077_v50  ;;  %v9591_v24 = vld [vmem:[#allocation57_spill] sm:$0xff] }
 0x4e3   : > { %v3257_v4 = vmul.f32 %v9529_v56, %v8540_v46  ;;  %v3550_v3 = vmul.f32 %v9590_v11, %v8069_v37  ;;  %v3552_v63 = vmul.f32 %v9590_v11, %v9553_v12  ;;  %v8571_v44 = vmul.f32 %v4917_v45, %v3209_v19  ;;  %v5629_v11 = vld [vmem:[#allocation21 + $0xd0] ss:$8 sps:$4 sm:$0xff]  }
 0x4e4   : > { %3876 = vmatpush1.bf16.msra.mxu1 %v5620_v18  ;;  %v3255_v18 = vmul.f32 %v9529_v56, %v8364_v15  ;;  %v3466_v40 = vadd.f32 %v3450_v29, %v3426_v34  ;;  %v3590_v56 = vmul.f32 %v9591_v24, %v8511_v59  ;;  %v3592_v34 = vmul.f32 %v9591_v24, %v8547_v28 }
 0x4e5   : > { %3877 = vmatprep.subr.bf16.mxu1 %v5625_v58  ;;  %v3452_v58 = vmul.f32 %v9525_v47, %v8310_v51  ;;  %v5631_v51 = vld [vmem:[#allocation21 + $0xd4] ss:$8 sps:$4 sm:$0xff]   ;;  %v3566_v47 = vadd.f32 %v3550_v3, %v3526_v53  ;;  %v3568_v14 = vadd.f32 %v3552_v63, %v3528_v30  ;;  %v9593_v53 = vrot.slane %v7997_v0, 1  ;;  %v5634_v30 = vld [vmem:[#allocation21 + $0xe4] ss:$8 sps:$4 sm:$0xff]  }
 0x4e6   : > { %v3295_v45 = vadd.f32 %v3279_v57, %v3255_v18  ;;  %v3500_v8 = vadd.f32 %v3466_v40, %v3364_v23  ;;  %v3319_v29 = vmul.f32 %v9548_v1, %v8384_v5  ;;  %v3385_v40 = vmul.f32 %v7847_v52, %v8361_v22 }
 0x4e7   : > { %v3468_v6 = vadd.f32 %v3452_v58, %v3428_v61  ;;  %v3207_v61 = vsel %vm3206_vm13, %v3202_v60, %v9593_v53  ;;  %v3606_v24 = vadd.f32 %v3590_v56, %v3566_v47  ;;  %v3608_v58 = vadd.f32 %v3592_v34, %v3568_v14 }
 0x4e8   : > { %3878 = vmatpush1.bf16.msra.mxu1 %v5623_v42  ;;  %v3281_v42 = vmul.f32 %v9532_v25, %v9544_v9  ;;  %v3335_v60 = vadd.f32 %v3319_v29, %v3295_v45  ;;  %v3411_v23 = vmul.f32 %v9533_v32, %v8077_v50  ;;  %v8609_v56 = vmul.f32 %v8522_v62, %v3207_v61  ;;  %v9594_v50 = vld [vmem:[#allocation52_spill] sm:$0xff] }
 0x4e9   : > { %3879 = vmatprep.subr.bf16.mxu1 %v5628_v16  ;;  %v3160_v16 = vsel %vm3157_vm8, %v3151_v39, %v9592_v41  ;;  %v3502_v37 = vadd.f32 %v3468_v6, %v3366_v7  ;;  %v3321_v41 = vmul.f32 %v9548_v1, %v8571_v44  ;;  %v3387_v39 = vmul.f32 %v7847_v52, %v8364_v15  ;;  %v5632_v7 = vld [vmem:[#allocation21 + $0xe0] ss:$8 sps:$4 sm:$0xff]   ;;  %v5637_v15 = vld [vmem:[#allocation21 + $0xf4] ss:$8 sps:$4 sm:$0xff]  }
 0x4ea   : > { %v3297_v19 = vadd.f32 %v3281_v42, %v3257_v4  ;;  %v8598_v18 = vmul.f32 %v8505_v55, %v3160_v16  ;;  %v8604_v3 = vadd.f32 %v3606_v24, %v3500_v8  ;;  %v3260_v47 = vmul.f32 %v9516_v2, %v8525_v35 }
 0x4eb   : > { %v8606_v22 = vadd.f32 %v3608_v58, %v3502_v37  ;;  %v3427_v63 = vadd.f32 %v3411_v23, %v3387_v39  ;;  %v3449_v37 = vmul.f32 %v7851_v48, %v8381_v31  ;;  %v3451_v8 = vmul.f32 %v7851_v48, %v8384_v5  ;;  %v5635_v31 = vld [vmem:[#allocation21 + $0xf0] ss:$8 sps:$4 sm:$0xff]   ;;  %v8644_v39 = vld [vmem:[%s9389_s24 + $0x10] ss:$0 sm:$0xff] }
 0x4ec   : > { %3880 = vmatpush1.bf16.msra.mxu1 %v5626_v54  ;;  %v3337_v4 = vadd.f32 %v3321_v41, %v3297_v19  ;;  %v3409_v54 = vmul.f32 %v9533_v32, %v8074_v49  ;;  %v3525_v49 = vmul.f32 %v9536_v43, %v8540_v46  ;;  %v3527_v62 = vmul.f32 %v9536_v43, %v8598_v18  ;;  %v9595_v58 = vld [vmem:[#allocation54_spill] sm:$0xff] }
 0x4ed   : > { %3881 = vmatprep.subr.bf16.mxu1 %v5631_v51  ;;  %v3284_v51 = vmul.f32 %v9519_v17, %v9553_v12  ;;  %v3363_v57 = vadd.f32 %v9537_v27, %v3335_v60  ;;  %v3549_v6 = vmul.f32 %v9538_v10, %v9544_v9  ;;  %v3648_v5 = vpack.c.bf16 %v8606_v22, %v8604_v3 }
 0x4ee   : > { %v3425_v55 = vadd.f32 %v3409_v54, %v3385_v40  ;;  %v3365_v42 = vadd.f32 %v9537_v27, %v3337_v4  ;;  %v3551_v14 = vmul.f32 %v9538_v10, %v9556_v26  ;;  %v3467_v19 = vadd.f32 %v3451_v8, %v3427_v63  ;;  %v9596_v54 = vld [vmem:[#allocation111_spill] sm:$0xff] }
 0x4ef   : > { %v3300_v16 = vadd.f32 %v3284_v51, %v3260_v47  ;;  %v3565_v34 = vadd.f32 %v3549_v6, %v3525_v49  ;;  %v3390_v29 = vmul.f32 %v9522_v20, %v8492_v33  ;;  %v3591_v24 = vmul.f32 %v8644_v39, %v8609_v56  ;;  %v9597_v33 = vld [vmem:[#allocation61_spill] sm:$0xff]  ;;  %v9599_v47 = vld [vmem:[#allocation76_spill] sm:$0xff]  ;;  %v9605_v6 = vld [vmem:[#allocation70_spill] sm:$0xff] }
 0x4f0   : > { %3882 = vmatpush1.bf16.msra.mxu1 %v5629_v11  ;;  %v3262_v11 = vmul.f32 %v9516_v2, %v9594_v50  ;;  %v3286_v2 = vmul.f32 %v9519_v17, %v9554_v38  ;;  %v3465_v45 = vadd.f32 %v3449_v37, %v3425_v55  ;;  %v3567_v61 = vadd.f32 %v3551_v14, %v3527_v62  ;;  %v9600_v49 = vld [vmem:[#allocation64_spill] sm:$0xff]  ;;  %v9601_v37 = vld [vmem:[#allocation49_spill] sm:$0xff]  ;;  %v9607_v14 = vld [vmem:[#allocation75_spill] sm:$0xff] }
 0x4f1   : > { %3883 = vmatprep.subr.bf16.mxu1 %v5634_v30  ;;  %v3589_v30 = vmul.f32 %v8252_v21, %v8571_v44  ;;  %v3324_v17 = vmul.f32 %v9521_v13, %v8547_v28  ;;  %v3501_v40 = vadd.f32 %v3467_v19, %v3365_v42  ;;  %v3326_v60 = vmul.f32 %v9521_v13, %v9595_v58  ;;  %v9604_v42 = vld [vmem:[#allocation73_spill] sm:$0xff] }
 0x4f2   : > { %v3302_v53 = vadd.f32 %v3286_v2, %v3262_v11  ;;  %v3499_v41 = vadd.f32 %v3465_v45, %v3363_v57  ;;  %v3392_v4 = vmul.f32 %v9522_v20, %v8525_v35  ;;  %v3414_v23 = vmul.f32 %v9597_v33, %v9596_v54  ;;  %v9602_v20 = vld [vmem:[#allocation92_spill] sm:$0xff] }
 0x4f3   : > { %v3340_v21 = vadd.f32 %v3324_v17, %v3300_v16  ;;  %v3605_v55 = vadd.f32 %v3589_v30, %v3565_v34  ;;  %v3259_v11 = vmul.f32 %v9600_v49, %v8598_v18  ;;  %v3261_v8 = vmul.f32 %v9600_v49, %v9601_v37  ;;  %v9603_v35 = vld [vmem:[#allocation72_spill] sm:$0xff]  ;;  %v9608_v34 = vld [vmem:[#allocation82_spill] sm:$0xff] }
 0x4f4   : > { %3884 = vmatpush1.bf16.msra.mxu1 %v5632_v7  ;;  %v9598_v7 = vld [vmem:[#allocation113_spill] sm:$0xff]  ;;  %v3342_v63 = vadd.f32 %v3326_v60, %v3302_v53  ;;  %v3607_v13 = vadd.f32 %v3591_v24, %v3567_v61  ;;  %v3416_v62 = vmul.f32 %v9597_v33, %v9553_v12  ;;  %v3430_v51 = vadd.f32 %v3414_v23, %v3390_v29  ;;  %v9609_v12 = vld [vmem:[#allocation58_spill] sm:$0xff] }
 0x4f5   : > { %3885 = vmatprep.subr.bf16.mxu1 %v5637_v15  ;;  %v3516_v15 = vmul.f32 %v9599_v47, %v9598_v7  ;;  %v3540_v57 = vmul.f32 %v9603_v35, %v9602_v20  ;;  %v9606_v2 = vpack.c.bf16 %v9604_v42, %v9605_v6  ;;  %v3454_v16 = vmul.f32 %v9607_v14, %v8511_v59  ;;  %v9611_v61 = vld [vmem:[#allocation81_spill] sm:$0xff]  ;;  %v9613_v7 = vld [vmem:[#allocation67_spill] sm:$0xff]  ;;  %v9615_v20 = vld [vmem:[#allocation106_spill] sm:$0xff] }
 0x4f6   : > { %v3283_v45 = vmul.f32 %v9532_v25, %v9556_v26  ;;  %v3285_v19 = vmul.f32 %v9532_v25, %v7997_v0  ;;  %v9610_v53 = vpack.c.bf16 %v9608_v34, %v9609_v12  ;;  %v3368_v30 = vadd.f32 %v9611_v61, %v3340_v21  ;;  %v5745_v21 = vld [vmem:[%s9389_s24 + $0x18] ss:$0 sm:$0xff]  ;;  %v9616_v42 = vld [vmem:[#allocation80_spill] sm:$0xff]  ;;  %v9617_v6 = vld [vmem:[#allocation74_spill] sm:$0xff] }
 0x4f7   : > { %v3432_v17 = vadd.f32 %v3416_v62, %v3392_v4  ;;  %v3530_v29 = vmul.f32 %v9599_v47, %v9594_v50  ;;  %v3370_v24 = vadd.f32 %v9611_v61, %v3342_v63  ;;  %v3456_v59 = vmul.f32 %v9607_v14, %v8547_v28  ;;  %v9612_v4 = vld [vmem:[#allocation50_spill] sm:$0xff] }
 0x4f8   : > { %3886 = vmatpush1.bf16.msra.mxu1 %v5635_v31  ;;  %v3635_v31 = vadd.f32 %v3605_v55, %v3499_v41  ;;  %v3556_v41 = vadd.f32 %v3540_v57, %v3516_v15  ;;  %v3299_v60 = vadd.f32 %v3283_v45, %v3259_v11  ;;  %v3301_v54 = vadd.f32 %v3285_v19, %v3261_v8  ;;  %v9614_v55 = vld [vmem:[#allocation48_spill] sm:$0xff] }
 0x4f9   : > { %v3470_v33 = vadd.f32 %v3454_v16, %v3430_v51  ;;  %v3554_v25 = vmul.f32 %v9603_v35, %v9554_v38  ;;  %v3580_v23 = vmul.f32 %v5745_v21, %v9612_v4  ;;  %v3323_v50 = vmul.f32 %v9548_v1, %v8609_v56 }
 0x4fa   : > { %v3325_v47 = vmul.f32 %v9548_v1, %v9613_v7  ;;  %v3389_v28 = vmul.f32 %v7847_v52, %v8540_v46  ;;  %v3391_v15 = vmul.f32 %v7847_v52, %v8598_v18  ;;  %v3515_v38 = vmul.f32 %v9536_v43, %v9614_v55 }
 0x4fb   : > { %3888 = vmatmul.mubr.bf16.vlgmr.msra.gmra.mrb[36].mxu1 %v9606_v2  ;;  %v3472_v63 = vadd.f32 %v3456_v59, %v3432_v17  ;;  %v3570_v49 = vadd.f32 %v3554_v25, %v3530_v29  ;;  %v3596_v11 = vadd.f32 %v3580_v23, %v3556_v41  ;;  %v3413_v8 = vmul.f32 %v9533_v32, %v9544_v9 }
 0x4fc   : > { %3897 = vmatprep.mubr.bf16.mxu1 %v9610_v53  ;;  %v3339_v62 = vadd.f32 %v3323_v50, %v3299_v60  ;;  %v3341_v51 = vadd.f32 %v3325_v47, %v3301_v54  ;;  %v3415_v1 = vmul.f32 %v9533_v32, %v9556_v26  ;;  %v3539_v46 = vmul.f32 %v9538_v10, %v9615_v20  ;;  %v8726_v47 = vpop.xlane.xlu1 %2289 }
 0x4fd   : > { %v3637_v35 = vadd.f32 %v3607_v13, %v3501_v40  ;;  %v3504_v57 = vadd.f32 %v3470_v33, %v3368_v30  ;;  %v3506_v52 = vadd.f32 %v3472_v63, %v3370_v24  ;;  %v3594_v18 = vmul.f32 %v5745_v21, %v9595_v58  ;;  %v9620_v63 = vld [vmem:[#allocation44_spill] sm:$0xff] }
 0x4fe   : > { %v9618_v2 = vpack.c.bf16 %v9616_v42, %v9617_v6  ;;  %v3429_v14 = vadd.f32 %v3413_v8, %v3389_v28  ;;  %v3431_v16 = vadd.f32 %v3415_v1, %v3391_v15  ;;  %v3529_v9 = vmul.f32 %v9536_v43, %v9601_v37  ;;  %v9619_v37 = vld [vmem:[#allocation53_spill] sm:$0xff]  ;;  %v9623_v6 = vld [vmem:[#allocation66_spill] sm:$0xff] }
 0x4ff   : > { %v3555_v45 = vadd.f32 %v3539_v46, %v3515_v38  ;;  %v3610_v32 = vadd.f32 %v3594_v18, %v3570_v49  ;;  %v3626_v26 = vmul.f32 0.0, %v3596_v11  ;;  %v3453_v40 = vmul.f32 %v7851_v48, %v8571_v44  ;;  %v1884_v28 = vld [vmem:[#allocation17] sm:$0x3] }
 0x500   : > { %v3455_v58 = vmul.f32 %v7851_v48, %v8609_v56  ;;  %v3367_v13 = vadd.f32 %v9537_v27, %v3339_v62  ;;  %v3369_v19 = vadd.f32 %v9537_v27, %v3341_v51  ;;  %v3553_v43 = vmul.f32 %v9538_v10, %v7997_v0  ;;  %v8728_v38 = vpop.xlane.xlu1 %2295  ;;  %v9621_v11 = vld [vmem:[#allocation45_spill] sm:$0xff] }
 0x501   : > { %v3579_v34 = vmul.f32 %v8644_v39, %v9619_v37  ;;  %v3640_v3 = vadd.f32 %v3610_v32, %v3504_v57  ;;  %v3642_v22 = vadd.f32 %v3626_v26, %v3506_v52  ;;  %v3647_v44 = vpack.c.bf16 %v3637_v35, %v3635_v31  ;;  %v1979_v35 = vld [vmem:[#allocation18] sm:$0x3]  ;;  %v2789_v52 = vld [vmem:[#allocation26] sm:$0x3]  ;;  %v9622_v18 = vld [vmem:[#allocation65_spill] sm:$0xff] }
 0x502   : > { %v3471_v12 = vadd.f32 %v3455_v58, %v3431_v16  ;;  %v3569_v53 = vadd.f32 %v3553_v43, %v3529_v9  ;;  %v3593_v48 = vmul.f32 %v8644_v39, %v9613_v7  ;;  %v6356_v60 = vmov 1966171168   ;;  %v9625_v9 = vld [vmem:[#allocation79_spill] sm:$0xff] }
 0x503   : > { %3898 = vmatmul.mubr.bf16.gmra.mrb[40].mxu1 %v9618_v2  ;;  %v3595_v61 = vadd.f32 %v3579_v34, %v3555_v45  ;;  %v3650_v56 = vpack.c.bf16 %v3642_v22, %v3640_v3  ;;  %v1963_v54 = vunpack.c.l.s4 %v6356_v60  ;;  %v2954_v26 = vrot.slane %v2789_v52, %v9620_v63  ;;  %v9628_v60 = vld [vmem:[#allocation63_spill] sm:$0xff] }
 0x504   : > { %3907 = vmatprep.mubr.bf16.mxu1 %v3648_v5  ;;  %v3469_v5 = vadd.f32 %v3453_v40, %v3429_v14  ;;  %v3505_v17 = vadd.f32 %v3471_v12, %v3369_v19  ;;  %v3609_v27 = vadd.f32 %v3593_v48, %v3569_v53  ;;  %v2371_v51 = vpop.permute.xlu1 %2370  ;;  %v9624_v14 = vld [vmem:[#allocation77_spill] sm:$0xff]  ;;  %v2958_v40 = vrot.slane %v2789_v52, %v9621_v11 }
 0x505   : > { %v3625_v29 = vmul.f32 0.0, %v3595_v61  ;;  %v1964_v33 = vunpack.c.0.s8 %v1963_v54  ;;  %v2405_v42 = vmul.f32 %v2371_v51, %v9622_v18  ;;  %v2406_v2 = vmul.f32 %v2371_v51, %v9623_v6  ;;  %v9629_v54 = vld [vmem:[#allocation47_spill] sm:$0xff] }
 0x506   : > { %v3503_v30 = vadd.f32 %v3469_v5, %v3367_v13  ;;  %v9635_v51 = vld [vmem:[#allocation95_spill] sm:$0xff] }
 0x507   : > { %v3641_v10 = vadd.f32 %v3625_v29, %v3505_v17  ;;  %v1967_v39 = vsub.s32 %v1964_v33, %v9475_v36  ;;  %v2261_v33 = vmul.f32 %v9629_v54, %v9628_v60 }
 0x508   : > { %v3639_v0 = vadd.f32 %v3609_v27, %v3503_v30  ;;  %v2376_v46 = vpop.permute.xlu1 %2375 }
 0x509   : > { %v2407_v16 = vmul.f32 %v2376_v46, %v9624_v14  ;;  %v2408_v45 = vmul.f32 %v2376_v46, %v9625_v9  ;;  %v2494_v46 = vld [vmem:[%s9636_s1] sm:$0x3]  ;;  %s6357_s1 = smov [#allocation30]  }
 0x50a   : > { %v3649_v41 = vpack.c.bf16 %v3641_v10, %v3639_v0  ;;  %v8797_v18 = vrot.slane %v2494_v46, %v9621_v11  ;;  %s6231_s4 = sshll.u32 %s6357_s1, 4  ;;  %s6232_s4 = int_to_ptr.vmem [resolvable:$false] %s6231_s4 }
 0x50b   : > { %3908 = vmatmul.mubr.bf16.gmra.mrb[44].mxu1 %v3647_v44  ;;  %s6233_s15 = scalar_lea.vmem %s6232_s4, 6144  ;;  %p6234_p11 = scmp.lt.s32.totalorder %s9064_s2, %s6232_s4 }
 0x50c   : > { %3917 = vmatprep.mubr.bf16.mxu1 %v3650_v56  ;;  %p6235_p3 = scmp.lt.s32.totalorder %s6233_s15, %s6227_s17 }
 0x50e   : > { %p6236_p6 = por %p6235_p3, %p6234_p11 }
 0x510   : > { %p6237_p0 = pnand %p6236_p6, %p6230_p1 }
 0x513   : > { %3918 = vmatmul.mubr.bf16.gmra.mrb[48].mxu1 %v3649_v41  ;;  %v9626_v41 = vld [vmem:[#allocation62_spill] sm:$0xff] }
 0x532   : > { %v1872_v24 = vpop.f32.mrb[18].mxu0 }
 0x533   : > { %v1874_v59 = vpop.f32.mrb[19].mxu0 }
 0x54e   : > { %v1954_v31 = vpop.f32.mrb[18].mxu1 }
 0x54f   : > { %v1955_v25 = vadd.f32 1e-10, %v1954_v31  ;;  %v1956_v21 = vpop.f32.mrb[19].mxu1 }
 0x550   : > { %v1957_v4 = vadd.f32 1e-10, %v1956_v21 }
 0x552   : > { %v1961_v23 = vcombine.low %v1955_v25, %v1957_v4  ;;  %v9630_v25 = vld [vmem:[#allocation83_spill] sm:$0xff]  ;;  %v9631_v4 = vld [vmem:[#allocation85_spill] sm:$0xff] }
 0x554   : > { %v1968_v50 = vrot.slane %v1961_v23, %v1967_v39 }
 0x556   : > { %v1975_v7 = vrot.slane %v1968_v50, %v1967_v39  ;;  %v9632_v50 = vld [vmem:[#allocation89_spill] sm:$0xff] }
 0x558   : > { %5712 = vrcp.f32 %v1975_v7 }
 0x562   : > { %v5713_v15 = vpop.eup %5712 }
 0x563   : > { %v1978_v55 = vmul.f32 %v5713_v15, %v1884_v28  ;;  %v9633_v28 = vld [vmem:[#allocation90_spill] sm:$0xff] }
 0x564   : > { %v2271_v15 = vmul.f32 %v9629_v54, %v9633_v28 }
 0x565   : > { %v8731_v49 = vrot.slane %v1978_v55, %v9620_v63  ;;  %v8734_v8 = vrot.slane %v1978_v55, %v9621_v11 }
 0x567   : > { %v1991_v62 = vmul.f32 %v8731_v49, %v1872_v24  ;;  %v1992_v36 = vmul.f32 %v8734_v8, %v1874_v59  ;;  %v2421_v58 = vmul.f32 %v2405_v42, %v8731_v49  ;;  %v2422_v13 = vmul.f32 %v2406_v2, %v8734_v8  ;;  %v9627_v24 = vld [vmem:[#allocation46_spill] sm:$0xff] }
 0x568   : > { %v2423_v37 = vmul.f32 %v2407_v16, %v8731_v49  ;;  %v2424_v34 = vmul.f32 %v2408_v45, %v8734_v8  ;;  %v2260_v59 = vmul.f32 %v9627_v24, %v9626_v41  ;;  %v2266_v21 = vmul.f32 %v9627_v24, %v9630_v25 }
 0x569   : > { %v1995_v1 = vcombine.low %v1991_v62, %v1992_v36  ;;  %v2270_v7 = vmul.f32 %v9627_v24, %v9632_v50  ;;  %v9634_v62 = vld [vmem:[#allocation94_spill] sm:$0xff] }
 0x56a   : > { %v2276_v31 = vadd.f32 %v2261_v33, %v2260_v59  ;;  %v2274_v36 = vmul.f32 %v9627_v24, %v9634_v62 }
 0x56b   : > { %v2002_v20 = vrot.slane %v1995_v1, %v1967_v39  ;;  %v2291_v55 = vadd.f32 %v2271_v15, %v2270_v7  ;;  %v2275_v1 = vmul.f32 %v9629_v54, %v9635_v51 }
 0x56d   : > { %v2009_v57 = vrot.slane %v2002_v20, %v1967_v39  ;;  %v2267_v39 = vmul.f32 %v9629_v54, %v9631_v4  ;;  %v2297_v20 = vadd.f32 %v2275_v1, %v2274_v36 }
 0x56f   : > { %v2011_v32 = vsub.f32 %v1979_v35, %v2009_v57  ;;  %v2285_v23 = vadd.f32 %v2267_v39, %v2266_v21  ;;  %v8792_v57 = vrot.slane %v2494_v46, %v9620_v63  ;;  %v8863_v46 = vld [vmem:[#allocation2] ss:$0 sm:$0xff] }
 0x571   : > { %v8747_v19 = vrot.slane %v2011_v32, %v9620_v63  ;;  %v8750_v43 = vrot.slane %v2011_v32, %v9621_v11 }
 0x573   : > { %v2995_v3 = vpop.f32.mrb[20].mxu0  ;;  %v2448_v22 = vadd.f32 %v8747_v19, %v2421_v58  ;;  %v2449_v5 = vadd.f32 %v8750_v43, %v2422_v13  ;;  %v2450_v12 = vadd.f32 %v8747_v19, %v2423_v37  ;;  %v2451_v53 = vadd.f32 %v8750_v43, %v2424_v34 }
 0x574   : > { %v8758_v61 = vadd.f32 %v2995_v3, %v2954_v26  ;;  %v2997_v44 = vpop.f32.mrb[21].mxu0 }
 0x575   : > { %v8760_v30 = vadd.f32 %v2997_v44, %v2958_v40  ;;  %v2999_v17 = vpop.f32.mrb[22].mxu0 }
 0x576   : > { %v9301_v48 = vmax.f32 %v8758_v61, 0.0  ;;  %v3000_v56 = vpop.f32.mrb[23].mxu0 }
 0x577   : > { %v9300_v27 = vmax.f32 %v8760_v30, 0.0 }
 0x578   : > { %v3005_v29 = vsel %vm3004_vm5, %v9301_v48, -inf }
 0x579   : > { %v3006_v0 = vsel %vm3004_vm5, %v9300_v27, -inf }
 0x57a   : > { %v3007_v10 = vmax.f32 %v3005_v29, %v3006_v0 }
 0x57c   : > { %3008 = vmax.xlane.f32.xlu0 %v3007_v10 }
 0x580   : > { %2277 = vadd.xlane.f32.xlu0 %v2276_v31 }
 0x584   : > { %2286 = vadd.xlane.f32.xlu0 %v2285_v23 }
 0x588   : > { %2292 = vadd.xlane.f32.xlu0 %v2291_v55 }
 0x58c   : > { %2298 = vadd.xlane.f32.xlu0 %v2297_v20 }
 0x58e   : > { %v8789_v35 = vpop.f32.mrb[20].mxu1 }
 0x58f   : > { %v8794_v52 = vpop.f32.mrb[21].mxu1 }
 0x590   : > { %v2704_v42 = vpop.f32.mrb[22].mxu1 }
 0x591   : > { %v2705_v6 = vadd.f32 %v2704_v42, %v8792_v57  ;;  %v2706_v2 = vpop.f32.mrb[23].mxu1  ;;  %v2311_v42 = vadd.f32 %v8863_v46, %v8726_v47 }
 0x592   : > { %v2707_v14 = vadd.f32 %v2706_v2, %v8797_v18 }
 0x593   : > { %v8801_v16 = vadd.f32 %v2705_v6, %v2448_v22 }
 0x594   : > { %v8803_v9 = vadd.f32 %v2707_v14, %v2449_v5 }
 0x595   : > { %9637 = vst [vmem:[#allocation71_spill] sm:$0xff] %v8801_v16 }
 0x596   : > { %9638 = vst [vmem:[#allocation112_spill] sm:$0xff] %v8803_v9  ;;  %v2710_v45 = vpop.f32.mrb[24].mxu1 }
 0x597   : > { %v2711_v32 = vadd.f32 %v2710_v45, %v8792_v57  ;;  %v2712_v26 = vpop.f32.mrb[25].mxu1  ;;  %v4836_v45 = vmul.f32 -1.442695, %v2311_v42 }
 0x598   : > { %v2713_v40 = vadd.f32 %v2712_v26, %v8797_v18  ;;  %v8807_v58 = vpop.f32.mrb[26].mxu1 }
 0x599   : > { %v8809_v13 = vadd.f32 %v2711_v32, %v2450_v12  ;;  %v8811_v37 = vpop.f32.mrb[27].mxu1 }
 0x59a   : > { %v8813_v34 = vadd.f32 %v2713_v40, %v2451_v53 }
 0x59b   : > { %9639 = vst [vmem:[#allocation69_spill] sm:$0xff] %v8809_v13 }
 0x59c   : > { %9640 = vst [vmem:[#allocation96_spill] sm:$0xff] %v8813_v34 }
 0x59e   : > { %v8815_v3 = vpop.f32.mrb[28].mxu1 }
 0x59f   : > { %v8817_v22 = vpop.f32.mrb[29].mxu1 }
 0x5a0   : > { %v8819_v5 = vpop.f32.mrb[30].mxu1 }
 0x5a1   : > { %v8821_v44 = vpop.f32.mrb[31].mxu1 }
 0x5a6   : > { %v8823_v17 = vpop.f32.mrb[32].mxu1 }
 0x5a7   : > { %v8825_v56 = vpop.f32.mrb[33].mxu1 }
 0x5a8   : > { %v8827_v29 = vpop.f32.mrb[34].mxu1 }
 0x5a9   : > { %v8829_v12 = vpop.f32.mrb[35].mxu1 }
 0x5ce   : > { %v8831_v0 = vpop.f32.mrb[36].mxu1 }
 0x5cf   : > { %v8833_v53 = vpop.f32.mrb[37].mxu1 }
 0x5d0   : > { %v8835_v10 = vpop.f32.mrb[38].mxu1 }
 0x5d1   : > { %v8837_v24 = vpop.f32.mrb[39].mxu1 }
 0x5d6   : > { %v8839_v59 = vpop.f32.mrb[40].mxu1 }
 0x5d7   : > { %v8841_v54 = vpop.f32.mrb[41].mxu1 }
 0x5d8   : > { %v8843_v33 = vpop.f32.mrb[42].mxu1 }
 0x5d9   : > { %v8845_v31 = vpop.f32.mrb[43].mxu1 }
 0x5de   : > { %v8847_v21 = vpop.f32.mrb[44].mxu1 }
 0x5df   : > { %v8849_v39 = vpop.f32.mrb[45].mxu1 }
 0x5e0   : > { %v8851_v23 = vpop.f32.mrb[46].mxu1 }
 0x5e1   : > { %v8853_v7 = vpop.f32.mrb[47].mxu1 }
 0x5e6   : > { %v8855_v15 = vpop.f32.mrb[48].mxu1 }
 0x5e7   : > { %v8857_v55 = vpop.f32.mrb[49].mxu1 }
 0x5e8   : > { %v8859_v36 = vpop.f32.mrb[50].mxu1 }
 0x5e9   : > { %v8861_v1 = vpop.f32.mrb[51].mxu1 }
 0x609   : > { %v3009_v20 = vpop.xlane.xlu0 %3008 }
 0x60d   : > { %v2278_v6 = vpop.xlane.xlu0 %2277 }
 0x60e   : > { %v2307_v2 = vadd.f32 %v8863_v46, %v2278_v6 }
 0x610   : > { %v4832_v14 = vmul.f32 -1.442695, %v2307_v2 }
 0x611   : > { %v2287_v32 = vpop.xlane.xlu0 %2286 }
 0x612   : > { %5714 = vpow2.f32 %v4832_v14  ;;  %v2310_v26 = vadd.f32 %v8863_v46, %v2287_v32 }
 0x613   : > { %5716 = vpow2.f32 %v4836_v45 }
 0x614   : > { %v4835_v40 = vmul.f32 -1.442695, %v2310_v26 }
 0x615   : > { %v2293_v27 = vpop.xlane.xlu0 %2292 }
 0x616   : > { %5718 = vpow2.f32 %v4835_v40  ;;  %v2312_v48 = vadd.f32 %v8863_v46, %v2293_v27  ;;  %v5638_v27 = vld [vmem:[#allocation29] ss:$12 sps:$4 sm:$0xff]   ;;  %v5641_v40 = vld [vmem:[#allocation29 + $0x18] ss:$12 sps:$4 sm:$0xff]  }
 0x618   : > { %v4837_v13 = vmul.f32 -1.442695, %v2312_v48 }
 0x61a   : > { %5720 = vpow2.f32 %v4837_v13  ;;  %v5640_v13 = vld [vmem:[#allocation29 + $0x4] ss:$12 sps:$4 sm:$0xff]  }
 0x61b   : > { %4313 = vmatprep.subr.bf16.mxu0 %v5640_v13  ;;  %v5649_v13 = vld [vmem:[#allocation29 + $0x4c] ss:$12 sps:$4 sm:$0xff]  }
 0x61c   : > { %v5715_v34 = vpop.eup %5714  ;;  %4314 = vmatpush1.bf16.msra.mxu0 %v5638_v27  ;;  %v5672_v27 = vld [vmem:[#allocation29 + $0xf8] ss:$12 sps:$4 sm:$0xff]  }
 0x61d   : > { %v2339_v16 = vadd.f32 1.0, %v5715_v34  ;;  %v5717_v47 = vpop.eup %5716  ;;  %v5643_v34 = vld [vmem:[#allocation29 + $0x1c] ss:$12 sps:$4 sm:$0xff]  }
 0x61e   : > { %v2343_v2 = vadd.f32 1.0, %v5717_v47  ;;  %v9642_v47 = vmax.f32 %v8760_v30, 0.0  ;;  %4315 = vmatprep.subr.bf16.mxu0 %v5643_v34  ;;  %v2313_v30 = vadd.f32 %v8863_v46, %v8728_v38  ;;  %v2299_v34 = vpop.xlane.xlu0 %2298 }
 0x61f   : > { %5722 = vrcp.f32 %v2339_v16  ;;  %v9641_v16 = vmax.f32 %v8758_v61, 0.0  ;;  %v5671_v61 = vld [vmem:[#allocation29 + $0x20] ss:$12 sps:$4 sm:$0xff]  }
 0x620   : > { %v5719_v9 = vpop.eup %5718  ;;  %4316 = vmatpush1.bf16.msra.mxu0 %v5641_v40  ;;  %v4838_v40 = vmul.f32 -1.442695, %v2313_v30  ;;  %v5665_v30 = vld [vmem:[#allocation29 + $0xc4] ss:$12 sps:$4 sm:$0xff]  }
 0x621   : > { %v2342_v6 = vadd.f32 1.0, %v5719_v9  ;;  %v3010_v9 = vsub.f32 %v9641_v16, %v3009_v20  ;;  %v5652_v16 = vld [vmem:[#allocation29 + $0x64] ss:$12 sps:$4 sm:$0xff]  }
 0x623   : > { %5724 = vrcp.f32 %v2342_v6  ;;  %v3011_v6 = vsub.f32 %v9642_v47, %v3009_v20  ;;  %v5647_v20 = vld [vmem:[#allocation29 + $0x48] ss:$12 sps:$4 sm:$0xff]   ;;  %v2314_v47 = vadd.f32 %v8863_v46, %v2299_v34  ;;  %v5661_v46 = vld [vmem:[#allocation29 + $0xac] ss:$12 sps:$4 sm:$0xff]  }
 0x624   : > { %v5721_v42 = vpop.eup %5720  ;;  %5726 = vrcp.f32 %v2343_v2  ;;  %v5646_v2 = vld [vmem:[#allocation29 + $0x34] ss:$12 sps:$4 sm:$0xff]  }
 0x625   : > { %v2344_v14 = vadd.f32 1.0, %v5721_v42  ;;  %v5662_v42 = vld [vmem:[#allocation29 + $0xc8] ss:$12 sps:$4 sm:$0xff]   ;;  %4317 = vmatprep.subr.bf16.mxu0 %v5646_v2  ;;  %v4839_v38 = vmul.f32 -1.442695, %v2314_v47 }
 0x626   : > { %5077 = vmatprep.subr.bf16.mxu1 %v5662_v42  ;;  %v5655_v2 = vld [vmem:[#allocation29 + $0x7c] ss:$12 sps:$4 sm:$0xff]   ;;  %v5653_v42 = vld [vmem:[#allocation29 + $0x78] ss:$12 sps:$4 sm:$0xff]   ;;  %v5663_v34 = vld [vmem:[#allocation29 + $0xc0] ss:$12 sps:$4 sm:$0xff]  }
 0x627   : > { %5728 = vrcp.f32 %v2344_v14  ;;  %v5666_v14 = vld [vmem:[#allocation29 + $0x8] ss:$12 sps:$4 sm:$0xff]   ;;  %v5668_v47 = vld [vmem:[#allocation29 + $0xd8] ss:$12 sps:$4 sm:$0xff]  }
 0x628   : > { %5078 = vmatpush3.bf16.msra.mxu1 %v5666_v14  ;;  %v5658_v14 = vld [vmem:[#allocation29 + $0x94] ss:$12 sps:$4 sm:$0xff]  }
 0x629   : > { %v5723_v32 = vpop.eup %5722 }
 0x62a   : > { %2365 = vperm.xlu0 %5404, %v5723_v32   ;;  %v5667_v32 = vld [vmem:[#allocation29 + $0xe0] ss:$12 sps:$4 sm:$0xff]  }
 0x62b   : > { %5079 = vmatprep.subr.bf16.mxu1 %v5667_v32 }
 0x62c   : > { %5080 = vmatpush3.bf16.msra.mxu1 %v5671_v61  ;;  %v5659_v61 = vld [vmem:[#allocation29 + $0xa8] ss:$12 sps:$4 sm:$0xff]  }
 0x62d   : > { %v5725_v45 = vpop.eup %5724  ;;  %5081 = vmatprep.subr.bf16.mxu1 %v5672_v27 }
 0x62e   : > { %2380 = vperm.xlu1 %5405, %v5725_v45   ;;  %v5727_v26 = vpop.eup %5726  ;;  %v3012_v45 = vmul.f32 1.442695, %v3010_v9  ;;  %v5676_v9 = vld [vmem:[#allocation29 + $0x38] ss:$12 sps:$4 sm:$0xff]  }
 0x630   : > { %5730 = vpow2.f32 %v3012_v45  ;;  %5082 = vmatpush3.bf16.msra.mxu1 %v5676_v9  ;;  %v5670_v9 = vld [vmem:[#allocation29 + $0xdc] ss:$12 sps:$4 sm:$0xff]  }
 0x631   : > { %v5729_v48 = vpop.eup %5728 }
 0x632   : > { %2385 = vperm.xlu1 %5405, %v5727_v26   ;;  %v5644_v26 = vld [vmem:[#allocation29 + $0x30] ss:$12 sps:$4 sm:$0xff]  }
 0x633   : > { %4318 = vmatpush1.bf16.msra.mxu0 %v5644_v26  ;;  %v5656_v26 = vld [vmem:[#allocation29 + $0x90] ss:$12 sps:$4 sm:$0xff]  }
 0x634   : > { %4319 = vmatprep.subr.bf16.mxu0 %v5649_v13 }
 0x636   : > { %2390 = vperm.xlu1 %5405, %v5729_v48   ;;  %v3014_v48 = vmul.f32 1.442695, %v3011_v6  ;;  %v5650_v6 = vld [vmem:[#allocation29 + $0x60] ss:$12 sps:$4 sm:$0xff]  }
 0x637   : > { %4320 = vmatpush1.bf16.msra.mxu0 %v5647_v20 }
 0x638   : > { %5732 = vpow2.f32 %v3014_v48  ;;  %4321 = vmatprep.subr.bf16.mxu0 %v5652_v16 }
 0x639   : > { %5734 = vpow2.f32 %v4838_v40 }
 0x63a   : > { %v8877_v32 = vpop.eup %5730  ;;  %5736 = vpow2.f32 %v4839_v38  ;;  %v5673_v38 = vld [vmem:[#allocation29 + $0xf0] ss:$12 sps:$4 sm:$0xff]  }
 0x63b   : > { %4322 = vmatpush1.bf16.msra.mxu0 %v5650_v6  ;;  %v3016_v48 = vsel %vm3004_vm5, %v8877_v32, 0.0 }
 0x63c   : > { %4323 = vmatprep.subr.bf16.mxu0 %v5655_v2  ;;  %v5675_v2 = vld [vmem:[#allocation29 + $0xf4] ss:$12 sps:$4 sm:$0xff]  }
 0x63f   : > { %4324 = vmatpush1.bf16.msra.mxu0 %v5653_v42 }
 0x640   : > { %4325 = vmatprep.subr.bf16.mxu0 %v5658_v14 }
 0x642   : > { %v8879_v45 = vpop.eup %5732 }
 0x643   : > { %v3017_v13 = vsel %vm3004_vm5, %v8879_v45, 0.0  ;;  %4326 = vmatpush1.bf16.msra.mxu0 %v5656_v26  ;;  %v5735_v20 = vpop.eup %5734  ;;  %v5677_v26 = vld [vmem:[#allocation29 + $0x110] ss:$12 sps:$4 sm:$0xff]  }
 0x644   : > { %v3018_v27 = vadd.f32 %v3017_v13, %v3016_v48  ;;  %4327 = vmatprep.subr.bf16.mxu0 %v5661_v46  ;;  %v2345_v16 = vadd.f32 1.0, %v5735_v20  ;;  %v5737_v40 = vpop.eup %5736  ;;  %v5678_v46 = vld [vmem:[#allocation29 + $0x108] ss:$12 sps:$4 sm:$0xff]   ;;  %v5680_v48 = vld [vmem:[#allocation29 + $0x10c] ss:$12 sps:$4 sm:$0xff]   ;;  %5083 = vmatprep.subr.bf16.mxu1 %v5677_v26 }
 0x645   : > { %v2346_v6 = vadd.f32 1.0, %v5737_v40  ;;  %v5681_v13 = vld [vmem:[#allocation29 + $0x50] ss:$12 sps:$4 sm:$0xff]   ;;  %v5686_v20 = vld [vmem:[#allocation29 + $0x68] ss:$12 sps:$4 sm:$0xff]  }
 0x646   : > { %5738 = vrcp.f32 %v2345_v16  ;;  %5084 = vmatpush3.bf16.msra.mxu1 %v5681_v13  ;;  %v5690_v16 = vld [vmem:[#allocation29 + $0x13c] ss:$12 sps:$4 sm:$0xff]   ;;  %v5691_v40 = vld [vmem:[#allocation29 + $0x80] ss:$12 sps:$4 sm:$0xff]  }
 0x647   : > { %4328 = vmatpush1.bf16.msra.mxu0 %v5659_v61  ;;  %5740 = vrcp.f32 %v2346_v6  ;;  %v5682_v61 = vld [vmem:[#allocation29 + $0x128] ss:$12 sps:$4 sm:$0xff]  }
 0x648   : > { %4329 = vmatprep.subr.bf16.mxu0 %v5665_v30  ;;  %v5683_v30 = vld [vmem:[#allocation29 + $0x120] ss:$12 sps:$4 sm:$0xff]   ;;  %5085 = vmatprep.subr.bf16.mxu1 %v5682_v61  ;;  %v5698_v26 = vld [vmem:[#allocation29 + $0x168] ss:$12 sps:$4 sm:$0xff]  }
 0x649   : > { %v5695_v6 = vld [vmem:[#allocation29 + $0x154] ss:$12 sps:$4 sm:$0xff]  }
 0x64a   : > { %5086 = vmatpush3.bf16.msra.mxu1 %v5686_v20  ;;  %v2701_v20 = vadd.f32 %v8789_v35, %v8792_v57 }
 0x64b   : > { %4330 = vmatpush1.bf16.msra.mxu0 %v5663_v34  ;;  %v5687_v34 = vld [vmem:[#allocation29 + $0x140] ss:$12 sps:$4 sm:$0xff]  }
 0x64c   : > { %4331 = vmatprep.subr.bf16.mxu0 %v5670_v9  ;;  %v5688_v9 = vld [vmem:[#allocation29 + $0x138] ss:$12 sps:$4 sm:$0xff]   ;;  %5087 = vmatprep.subr.bf16.mxu1 %v5687_v34  ;;  %v2703_v34 = vadd.f32 %v8794_v52, %v8797_v18  ;;  %v2715_v52 = vadd.f32 %v8807_v58, %v8792_v57 }
 0x64e   : > { %5088 = vmatpush3.bf16.msra.mxu1 %v5691_v40 }
 0x64f   : > { %4332 = vmatpush1.bf16.msra.mxu0 %v5668_v47  ;;  %v5692_v47 = vld [vmem:[#allocation29 + $0x158] ss:$12 sps:$4 sm:$0xff]  }
 0x650   : > { %4333 = vmatprep.subr.bf16.mxu0 %v5675_v2  ;;  %v5739_v42 = vpop.eup %5738  ;;  %v5693_v2 = vld [vmem:[#allocation29 + $0x150] ss:$12 sps:$4 sm:$0xff]   ;;  %5089 = vmatprep.subr.bf16.mxu1 %v5692_v47 }
 0x651   : > { %v5741_v14 = vpop.eup %5740 }
 0x653   : > { %4334 = vmatpush1.bf16.msra.mxu0 %v5673_v38  ;;  %v5696_v38 = vld [vmem:[#allocation29 + $0x98] ss:$12 sps:$4 sm:$0xff]  }
 0x654   : > { %4335 = vmatprep.subr.bf16.mxu0 %v5680_v48  ;;  %5090 = vmatpush3.bf16.msra.mxu1 %v5696_v38  ;;  %v2717_v38 = vadd.f32 %v8811_v37, %v8797_v18  ;;  %v2721_v37 = vadd.f32 %v8815_v3, %v8792_v57 }
 0x657   : > { %4336 = vmatpush1.bf16.msra.mxu0 %v5678_v46  ;;  %v5701_v46 = vld [vmem:[#allocation29 + $0xb0] ss:$12 sps:$4 sm:$0xff]  }
 0x65a   : > { %3019 = vadd.xlane.f32.xlu1 %v3018_v27  ;;  %v5685_v27 = vld [vmem:[#allocation29 + $0x124] ss:$12 sps:$4 sm:$0xff]  }
 0x65b   : > { %4337 = vmatprep.subr.bf16.mxu0 %v5685_v27 }
 0x65c   : > { %4338 = vmatpush1.bf16.msra.mxu0 %v5683_v30 }
 0x65d   : > { %4339 = vmatprep.subr.bf16.mxu0 %v5690_v16 }
 0x660   : > { %4340 = vmatpush1.bf16.msra.mxu0 %v5688_v9 }
 0x661   : > { %4341 = vmatprep.subr.bf16.mxu0 %v5695_v6 }
 0x664   : > { %4342 = vmatpush1.bf16.msra.mxu0 %v5693_v2 }
 0x66b   : > { %2395 = vperm.xlu1 %5405, %v5739_v42   ;;  %v5697_v42 = vld [vmem:[#allocation29 + $0x170] ss:$12 sps:$4 sm:$0xff]  }
 0x66c   : > { %5091 = vmatprep.subr.bf16.mxu1 %v5697_v42 }
 0x66d   : > { %5092 = vmatpush3.bf16.msra.mxu1 %v5701_v46  ;;  %v9644_v46 = vld [vmem:[#allocation88_spill] sm:$0xff] }
 0x66f   : > { %2400 = vperm.xlu1 %5405, %v5741_v14   ;;  %v5700_v14 = vld [vmem:[#allocation29 + $0x16c] ss:$12 sps:$4 sm:$0xff]  }
 0x670   : > { %4343 = vmatprep.subr.bf16.mxu0 %v5700_v14 }
 0x671   : > { %4344 = vmatpush1.bf16.msra.mxu0 %v5698_v26 }
 0x6a9   : > { %v2366_v48 = vpop.permute.xlu0 %2365 }
 0x6aa   : > { %v2403_v13 = vmul.f32 %v2366_v48, %v9626_v41  ;;  %v2404_v61 = vmul.f32 %v2366_v48, %v9628_v60 }
 0x6ac   : > { %v2419_v27 = vmul.f32 %v2403_v13, %v8731_v49  ;;  %v2420_v30 = vmul.f32 %v2404_v61, %v8734_v8 }
 0x6ad   : > { %v2381_v16 = vpop.permute.xlu1 %2380 }
 0x6ae   : > { %v2446_v9 = vadd.f32 %v8747_v19, %v2419_v27  ;;  %v2447_v40 = vadd.f32 %v8750_v43, %v2420_v30  ;;  %v2409_v47 = vmul.f32 %v2381_v16, %v9630_v25  ;;  %v2410_v41 = vmul.f32 %v2381_v16, %v9631_v4  ;;  %v9643_v4 = vld [vmem:[#allocation87_spill] sm:$0xff] }
 0x6af   : > { %v2723_v30 = vadd.f32 %v8817_v22, %v8797_v18  ;;  %v2725_v22 = vadd.f32 %v8819_v5, %v8792_v57  ;;  %v9645_v5 = vld [vmem:[#allocation91_spill] sm:$0xff] }
 0x6b0   : > { %v8897_v60 = vadd.f32 %v2701_v20, %v2446_v9  ;;  %v8899_v6 = vadd.f32 %v2703_v34, %v2447_v40  ;;  %v2425_v2 = vmul.f32 %v2409_v47, %v8731_v49  ;;  %v2426_v35 = vmul.f32 %v2410_v41, %v8734_v8 }
 0x6b1   : > { %v2386_v42 = vpop.permute.xlu1 %2385 }
 0x6b2   : > { %v2452_v14 = vadd.f32 %v8747_v19, %v2425_v2  ;;  %v2453_v25 = vadd.f32 %v8750_v43, %v2426_v35  ;;  %v2411_v26 = vmul.f32 %v2386_v42, %v9643_v4  ;;  %v2412_v48 = vmul.f32 %v2386_v42, %v9644_v46 }
 0x6b3   : > { %v2727_v35 = vadd.f32 %v8821_v44, %v8797_v18 }
 0x6b4   : > { %v8911_v13 = vadd.f32 %v2715_v52, %v2452_v14  ;;  %v8913_v61 = vadd.f32 %v2717_v38, %v2453_v25  ;;  %v2427_v27 = vmul.f32 %v2411_v26, %v8731_v49  ;;  %v2428_v58 = vmul.f32 %v2412_v48, %v8734_v8  ;;  %v3683_v14 = vld [vmem:[#allocation23] sm:$0x3]  ;;  %v9646_v48 = vld [vmem:[#allocation93_spill] sm:$0xff] }
 0x6b5   : > { %v2391_v20 = vpop.permute.xlu1 %2390  ;;  %v3688_v25 = vrot.slane %v3683_v14, %v9620_v63  ;;  %v3692_v4 = vrot.slane %v3683_v14, %v9621_v11 }
 0x6b6   : > { %v2454_v34 = vadd.f32 %v8747_v19, %v2427_v27  ;;  %v2455_v16 = vadd.f32 %v8750_v43, %v2428_v58  ;;  %v2413_v9 = vmul.f32 %v2391_v20, %v9632_v50  ;;  %v2414_v40 = vmul.f32 %v2391_v20, %v9633_v28 }
 0x6b7   : > { %v2731_v27 = vadd.f32 %v8823_v17, %v8792_v57  ;;  %v2733_v58 = vadd.f32 %v8825_v56, %v8797_v18  ;;  %v3896_v17 = vadd.f32 %v8837_v24, %v3692_v4 }
 0x6b8   : > { %v8925_v47 = vadd.f32 %v2721_v37, %v2454_v34  ;;  %v8927_v41 = vadd.f32 %v2723_v30, %v2455_v16  ;;  %v2429_v2 = vmul.f32 %v2413_v9, %v8731_v49  ;;  %v2430_v3 = vmul.f32 %v2414_v40, %v8734_v8 }
 0x6b9   : > { %v2735_v37 = vadd.f32 %v8827_v29, %v8792_v57  ;;  %v2737_v30 = vadd.f32 %v8829_v12, %v8797_v18  ;;  %v3890_v16 = vadd.f32 %v8831_v0, %v3688_v25  ;;  %v3892_v9 = vadd.f32 %v8833_v53, %v3692_v4 }
 0x6ba   : > { %v2456_v52 = vadd.f32 %v8747_v19, %v2429_v2  ;;  %v2457_v50 = vadd.f32 %v8750_v43, %v2430_v3  ;;  %v3894_v40 = vadd.f32 %v8835_v10, %v3688_v25  ;;  %v3900_v12 = vadd.f32 %v8839_v59, %v3688_v25 }
 0x6bb   : > { %v3902_v3 = vadd.f32 %v8841_v54, %v3692_v4  ;;  %v3904_v0 = vadd.f32 %v8843_v33, %v3688_v25  ;;  %v3906_v53 = vadd.f32 %v8845_v31, %v3692_v4  ;;  %v3914_v54 = vadd.f32 %v8851_v23, %v3688_v25 }
 0x6bc   : > { %v8937_v38 = vadd.f32 %v2725_v22, %v2456_v52  ;;  %v8939_v28 = vadd.f32 %v2727_v35, %v2457_v50  ;;  %v3910_v50 = vadd.f32 %v8847_v21, %v3688_v25  ;;  %v3916_v33 = vadd.f32 %v8853_v7, %v3692_v4 }
 0x6e7   : > { %v3020_v42 = vpop.xlane.xlu1 %3019 }
 0x6e8   : > { %5742 = vrcp.f32 %v3020_v42 }
 0x6eb   : > { %v2396_v26 = vpop.permute.xlu1 %2395 }
 0x6ec   : > { %v2415_v46 = vmul.f32 %v2396_v26, %v9645_v5  ;;  %v2416_v44 = vmul.f32 %v2396_v26, %v9646_v48 }
 0x6ee   : > { %v2431_v20 = vmul.f32 %v2415_v46, %v8731_v49  ;;  %v2432_v34 = vmul.f32 %v2416_v44, %v8734_v8  ;;  %v9647_v44 = vld [vmem:[#allocation112_spill] sm:$0xff] }
 0x6ef   : > { %v2401_v2 = vpop.permute.xlu1 %2400 }
 0x6f0   : > { %v2458_v56 = vadd.f32 %v8747_v19, %v2431_v20  ;;  %v2459_v57 = vadd.f32 %v8750_v43, %v2432_v34  ;;  %v2417_v29 = vmul.f32 %v2401_v2, %v9634_v62  ;;  %v2418_v18 = vmul.f32 %v2401_v2, %v9635_v51  ;;  %v9648_v20 = vld [vmem:[#allocation71_spill] sm:$0xff] }
 0x6f1   : > { %v3912_v62 = vadd.f32 %v8849_v39, %v3692_v4 }
 0x6f2   : > { %v5743_v10 = vpop.eup %5742  ;;  %v2751_v22 = vadd.f32 %v2731_v27, %v2458_v56  ;;  %v2752_v24 = vadd.f32 %v2733_v58, %v2459_v57  ;;  %v2433_v35 = vmul.f32 %v2417_v29, %v8731_v49  ;;  %v2434_v52 = vmul.f32 %v2418_v18, %v8734_v8 }
 0x6f3   : > { %v3022_v51 = vmul.f32 %v5743_v10, %v8877_v32  ;;  %v3023_v59 = vmul.f32 %v5743_v10, %v8879_v45  ;;  %v3920_v49 = vadd.f32 %v8855_v15, %v3688_v25  ;;  %v3922_v8 = vadd.f32 %v8857_v55, %v3692_v4 }
 0x6f4   : > { %v2460_v31 = vadd.f32 %v8747_v19, %v2433_v35  ;;  %v2461_v42 = vadd.f32 %v8750_v43, %v2434_v52  ;;  %v3924_v32 = vadd.f32 %v8859_v36, %v3688_v25  ;;  %v3926_v45 = vadd.f32 %v8861_v1, %v3692_v4  ;;  %v9649_v25 = vld [vmem:[#allocation96_spill] sm:$0xff] }
 0x6f5   : > { %v3931_v21 = vrot.slane %v3022_v51, %v9620_v63  ;;  %v3935_v39 = vrot.slane %v3023_v59, %v9620_v63  ;;  %v9652_v59 = vld [vmem:[#allocation68_spill] sm:$0xff] }
 0x6f6   : > { %v2753_v14 = vadd.f32 %v2735_v37, %v2460_v31  ;;  %v2754_v23 = vadd.f32 %v2737_v30, %v2461_v42  ;;  %v9650_v37 = vld [vmem:[#allocation69_spill] sm:$0xff] }
 0x6f7   : > { %v3937_v26 = vmul.f32 %v3935_v39, %v3892_v9  ;;  %v3939_v7 = vmul.f32 %v3935_v39, %v3896_v17  ;;  %v3936_v5 = vmul.f32 %v3931_v21, %v3890_v16  ;;  %v3938_v19 = vmul.f32 %v3931_v21, %v3894_v40 }
 0x6f8   : > { %v3941_v46 = vmul.f32 %v3935_v39, %v3902_v3  ;;  %v3943_v43 = vmul.f32 %v3935_v39, %v3906_v53  ;;  %v3940_v48 = vmul.f32 %v3931_v21, %v3900_v12  ;;  %v3942_v15 = vmul.f32 %v3931_v21, %v3904_v0 }
 0x6f9   : > { %v3953_v55 = vadd.f32 %v3937_v26, %v8899_v6  ;;  %v3955_v27 = vadd.f32 %v3939_v7, %v9647_v44  ;;  %v3952_v58 = vadd.f32 %v3936_v5, %v8897_v60  ;;  %v3954_v36 = vadd.f32 %v3938_v19, %v9648_v20 }
 0x6fa   : > { %v3957_v1 = vadd.f32 %v3941_v46, %v9649_v25  ;;  %v3959_v4 = vadd.f32 %v3943_v43, %v8913_v61  ;;  %v3956_v30 = vadd.f32 %v3940_v48, %v9650_v37  ;;  %v3958_v34 = vadd.f32 %v3942_v15, %v8911_v13 }
 0x6fb   : > { %v3969_v16 = vpack.c.bf16 %v3955_v27, %v3953_v55  ;;  %v3968_v9 = vpack.c.bf16 %v3954_v36, %v3952_v58  ;;  %v3945_v40 = vmul.f32 %v3935_v39, %v3912_v62  ;;  %v3947_v17 = vmul.f32 %v3935_v39, %v3916_v33 }
 0x6fc   : > { %v3971_v2 = vpack.c.bf16 %v3959_v4, %v3957_v1  ;;  %v3970_v6 = vpack.c.bf16 %v3958_v34, %v3956_v30  ;;  %v3944_v56 = vmul.f32 %v3931_v21, %v3910_v50  ;;  %v3946_v57 = vmul.f32 %v3931_v21, %v3914_v54 }
 0x6fd   : > { %4345 = vmatprep.mubr.bf16.mxu0 %v3969_v16  ;;  %4418 = vmatprep.mubr.bf16.mxu1 %v3969_v16  ;;  %v3961_v60 = vadd.f32 %v3945_v40, %v8927_v41  ;;  %v3963_v29 = vadd.f32 %v3947_v17, %v8939_v28  ;;  %v3949_v18 = vmul.f32 %v3935_v39, %v3922_v8 }
 0x6fe   : > { %4346 = vmatmul.mubr.bf16.vlgmr.msra.gmra.mrb[24].mxu0 %v3968_v9  ;;  %4419 = vmatmul.mubr.bf16.vlgmr.msra.gmra.mrb[52].mxu1 %v3968_v9  ;;  %v3960_v61 = vadd.f32 %v3944_v56, %v8925_v47  ;;  %v3962_v13 = vadd.f32 %v3946_v57, %v8937_v38  ;;  %v3951_v12 = vmul.f32 %v3935_v39, %v3926_v45  ;;  %v4040_v47 = vld [vmem:[%s9651_s5] sm:$0x7] }
 0x6ff   : > { %4355 = vmatprep.mubr.bf16.mxu0 %v3971_v2  ;;  %4426 = vmatprep.mubr.bf16.mxu1 %v3971_v2  ;;  %v3973_v3 = vpack.c.bf16 %v3963_v29, %v3961_v60  ;;  %v3965_v0 = vadd.f32 %v3949_v18, %v2752_v24  ;;  %v3948_v53 = vmul.f32 %v3931_v21, %v3920_v49 }
 0x700   : > { %v3972_v10 = vpack.c.bf16 %v3962_v13, %v3960_v61  ;;  %v3967_v35 = vadd.f32 %v3951_v12, %v2754_v23  ;;  %v3950_v52 = vmul.f32 %v3931_v21, %v3924_v32  ;;  %v9000_v38 = vrot.slane %v4040_v47, %v9620_v63 }
 0x701   : > { %v3964_v41 = vadd.f32 %v3948_v53, %v2751_v22  ;;  %v9003_v22 = vrot.slane %v4040_v47, %v9621_v11  ;;  %v9006_v54 = vrot.slane %v4040_v47, %v9652_v59 }
 0x702   : > { %v3975_v50 = vpack.c.bf16 %v3967_v35, %v3965_v0  ;;  %v3966_v28 = vadd.f32 %v3950_v52, %v2753_v14 }
 0x704   : > { %v3974_v62 = vpack.c.bf16 %v3966_v28, %v3964_v41 }
 0x706   : > { %4356 = vmatmul.mubr.bf16.gmra.mrb[28].mxu0 %v3970_v6  ;;  %4427 = vmatmul.mubr.bf16.gmra.mrb[56].mxu1 %v3970_v6 }
 0x707   : > { %4365 = vmatprep.mubr.bf16.mxu0 %v3973_v3  ;;  %4434 = vmatprep.mubr.bf16.mxu1 %v3973_v3 }
 0x70e   : > { %4366 = vmatmul.mubr.bf16.gmra.mrb[32].mxu0 %v3972_v10  ;;  %4435 = vmatmul.mubr.bf16.gmra.mrb[60].mxu1 %v3972_v10 }
 0x70f   : > { %4375 = vmatprep.mubr.bf16.mxu0 %v3975_v50  ;;  %4442 = vmatprep.mubr.bf16.mxu1 %v3975_v50 }
 0x716   : > { %4376 = vmatmul.mubr.bf16.gmra.mrb[36].mxu0 %v3974_v62  ;;  %4443 = vmatmul.mubr.bf16.gmra.mrb[64].mxu1 %v3974_v62 }
 0x7d1   : > { %v4347_v24 = vpop.f32.mrb[24].mxu0  ;;  %v5093_v51 = vpop.f32.mrb[52].mxu1 }
 0x7d2   : > { %v4348_v33 = vadd.f32 %v4347_v24, %v9000_v38  ;;  %v4349_v31 = vpop.f32.mrb[25].mxu0  ;;  %v5094_v42 = vpop.f32.mrb[53].mxu1 }
 0x7d3   : > { %v4350_v49 = vadd.f32 %v4349_v31, %v9003_v22  ;;  %v5095_v8 = vadd.f32 %v5094_v42, %v5093_v51  ;;  %v4351_v21 = vpop.f32.mrb[26].mxu0  ;;  %v5096_v39 = vpop.f32.mrb[54].mxu1 }
 0x7d4   : > { %4451 = vst [vmem:[%s9010_s19] sm:$0xff] %v4348_v33  ;;  %v4352_v63 = vadd.f32 %v4351_v21, %v9000_v38  ;;  %v4353_v11 = vpop.f32.mrb[27].mxu0  ;;  %v5097_v32 = vpop.f32.mrb[55].mxu1 }
 0x7d5   : > { %4452 = vst [vmem:[%s9010_s19 + $0x8] sm:$0xff] %v4350_v49  ;;  %v4421_v45 = vadd.f32 %v5095_v8, %v9006_v54  ;;  %v4354_v14 = vadd.f32 %v4353_v11, %v9003_v22  ;;  %v5098_v23 = vadd.f32 %v5097_v32, %v5096_v39 }
 0x7d6   : > { %4454 = vst [vmem:[%s9010_s19 + $0x18] sm:$0xff] %v4352_v63 }
 0x7d7   : > { %4453 = vst [vmem:[%s9010_s19 + $0x10] sm:$0xff] %v4421_v45  ;;  %4455 = vst [vmem:[%s9010_s19 + $0x20] sm:$0xff] %v4354_v14  ;;  %v4424_v26 = vadd.f32 %v5098_v23, %v9006_v54 }
 0x7d9   : > { %4456 = vst [vmem:[%s9010_s19 + $0x28] sm:$0xff] %v4424_v26  ;;  %v4357_v7 = vpop.f32.mrb[28].mxu0  ;;  %v5099_v5 = vpop.f32.mrb[56].mxu1 }
 0x7da   : > { %v4358_v19 = vadd.f32 %v4357_v7, %v9000_v38  ;;  %v4359_v46 = vpop.f32.mrb[29].mxu0  ;;  %v5100_v43 = vpop.f32.mrb[57].mxu1 }
 0x7db   : > { %v4360_v48 = vadd.f32 %v4359_v46, %v9003_v22  ;;  %v5101_v15 = vadd.f32 %v5100_v43, %v5099_v5  ;;  %v4361_v55 = vpop.f32.mrb[30].mxu0  ;;  %v5102_v44 = vpop.f32.mrb[58].mxu1 }
 0x7dc   : > { %4457 = vst [vmem:[%s9010_s19 + $0x30] sm:$0xff] %v4358_v19  ;;  %v4362_v27 = vadd.f32 %v4361_v55, %v9000_v38  ;;  %v4363_v58 = vpop.f32.mrb[31].mxu0  ;;  %v5103_v20 = vpop.f32.mrb[59].mxu1 }
 0x7dd   : > { %4458 = vst [vmem:[%s9010_s19 + $0x38] sm:$0xff] %v4360_v48  ;;  %v4429_v36 = vadd.f32 %v5101_v15, %v9006_v54  ;;  %v4364_v25 = vadd.f32 %v4363_v58, %v9003_v22  ;;  %v5104_v1 = vadd.f32 %v5103_v20, %v5102_v44 }
 0x7de   : > { %4460 = vst [vmem:[%s9010_s19 + $0x48] sm:$0xff] %v4362_v27 }
 0x7df   : > { %4459 = vst [vmem:[%s9010_s19 + $0x40] sm:$0xff] %v4429_v36  ;;  %4461 = vst [vmem:[%s9010_s19 + $0x50] sm:$0xff] %v4364_v25  ;;  %v4432_v4 = vadd.f32 %v5104_v1, %v9006_v54 }
 0x7e1   : > { %4462 = vst [vmem:[%s9010_s19 + $0x58] sm:$0xff] %v4432_v4  ;;  %v4367_v37 = vpop.f32.mrb[32].mxu0  ;;  %v5105_v30 = vpop.f32.mrb[60].mxu1 }
 0x7e2   : > { %v4368_v34 = vadd.f32 %v4367_v37, %v9000_v38  ;;  %v4369_v16 = vpop.f32.mrb[33].mxu0  ;;  %v5106_v9 = vpop.f32.mrb[61].mxu1 }
 0x7e3   : > { %v4370_v40 = vadd.f32 %v4369_v16, %v9003_v22  ;;  %v5107_v17 = vadd.f32 %v5106_v9, %v5105_v30  ;;  %v4371_v2 = vpop.f32.mrb[34].mxu0  ;;  %v5108_v6 = vpop.f32.mrb[62].mxu1 }
 0x7e4   : > { %4463 = vst [vmem:[%s9010_s19 + $0x60] sm:$0xff] %v4368_v34  ;;  %v4372_v56 = vadd.f32 %v4371_v2, %v9000_v38  ;;  %v4373_v57 = vpop.f32.mrb[35].mxu0  ;;  %v5109_v60 = vpop.f32.mrb[63].mxu1 }
 0x7e5   : > { %4464 = vst [vmem:[%s9010_s19 + $0x68] sm:$0xff] %v4370_v40  ;;  %v4437_v29 = vadd.f32 %v5107_v17, %v9006_v54  ;;  %v4374_v18 = vadd.f32 %v4373_v57, %v9003_v22  ;;  %v5110_v61 = vadd.f32 %v5109_v60, %v5108_v6 }
 0x7e6   : > { %4466 = vst [vmem:[%s9010_s19 + $0x78] sm:$0xff] %v4372_v56 }
 0x7e7   : > { %4465 = vst [vmem:[%s9010_s19 + $0x70] sm:$0xff] %v4437_v29  ;;  %4467 = vst [vmem:[%s9010_s19 + $0x80] sm:$0xff] %v4374_v18  ;;  %v4440_v13 = vadd.f32 %v5110_v61, %v9006_v54 }
 0x7e9   : > { %4468 = vst [vmem:[%s9010_s19 + $0x88] sm:$0xff] %v4440_v13  ;;  %v4377_v12 = vpop.f32.mrb[36].mxu0  ;;  %v5111_v3 = vpop.f32.mrb[64].mxu1 }
 0x7ea   : > { %v4378_v0 = vadd.f32 %v4377_v12, %v9000_v38  ;;  %v4379_v53 = vpop.f32.mrb[37].mxu0  ;;  %v5112_v10 = vpop.f32.mrb[65].mxu1 }
 0x7eb   : > { %v4380_v35 = vadd.f32 %v4379_v53, %v9003_v22  ;;  %v5113_v52 = vadd.f32 %v5112_v10, %v5111_v3  ;;  %v4381_v41 = vpop.f32.mrb[38].mxu0  ;;  %v5114_v50 = vpop.f32.mrb[66].mxu1 }
 0x7ec   : > { %4469 = vst [vmem:[%s9010_s19 + $0x90] sm:$0xff] %v4378_v0  ;;  %v4382_v28 = vadd.f32 %v4381_v41, %v9000_v38  ;;  %v4383_v62 = vpop.f32.mrb[39].mxu0  ;;  %v5115_v47 = vpop.f32.mrb[67].mxu1 }
 0x7ed   : > { %4470 = vst [vmem:[%s9010_s19 + $0x98] sm:$0xff] %v4380_v35  ;;  %v4445_v24 = vadd.f32 %v5113_v52, %v9006_v54  ;;  %v4384_v51 = vadd.f32 %v4383_v62, %v9003_v22  ;;  %v5116_v59 = vadd.f32 %v5115_v47, %v5114_v50 }
 0x7ee   : > { %4472 = vst [vmem:[%s9010_s19 + $0xa8] sm:$0xff] %v4382_v28 }
 0x7ef   : > { %4471 = vst [vmem:[%s9010_s19 + $0xa0] sm:$0xff] %v4445_v24  ;;  %4473 = vst [vmem:[%s9010_s19 + $0xb0] sm:$0xff] %v4384_v51  ;;  %v4448_v38 = vadd.f32 %v5116_v59, %v9006_v54 }
 0x7f1   : > { %4474 = vst [vmem:[%s9010_s19 + $0xb8] sm:$0xff] %v4448_v38 }
 0x7f2   : > { %6240 = shalt.err (!%p6237_p0)
}
 0x7f3   : > { %s6241_s5 = scalar_lea.hbm %s9059_s10, 3072  ;;  %s6245_s26 = scalar_lea.hbm %s9653_s21, 6144 }
 0x7f4   : > { %p6242_p10 = scmp.ne.s32.totalorder %s9059_s10, %s6241_s5  ;;  %p6246_p8 = scmp.lt.u32.totalorder %s9059_s10, %s9653_s21 }
 0x7f5   : > { %p6247_p2 = scmp.lt.u32.totalorder %s6245_s26, %s6241_s5  ;;  %p6249_p5 = scmp.lt.u32.totalorder %s6241_s5, %s9059_s10 }
 0x7f6   : > { %p6243_p12 = pnand %p6242_p10, %p9654_p7 }
 0x7f7   : > { %p6248_p9 = por %p6247_p2, %p6246_p8 }
 0x7f8   : > { %p6244_p13 = pneg %p6243_p12 }
 0x7f9   : > { %p6250_p4 = por %p6249_p5, %p6248_p9 }
 0x7fb   : > { %p6251_p1 = pnand %p6250_p4, %p6244_p13 }
 0x7fd   : > { %6254 = shalt.err (!%p6251_p1)
}
 0x7fe   : > { %s6358_s17 = smov 384   ;;  %s6359_s1 = smov 24  }
 0x7ff   : > { %5255 = dma.vmem_to_hbm [thread:$0]  (%p9654_p7), %s9064_s2, 3072, %s9059_s10, %s4476_s14, %s6358_s17, %s6358_s17, %s6359_s1  }
 0x800 PF: > { %s4504_s4 = sand.u32 1, %s6317_s27   ;;  %p9655_p11 = scmp.ne.s32.totalorder %s9346_s8, 0 }
 0x801   : > { %p9656_p3 = scmp.ge.s32.totalorder %s6329_s9, 2  ;;  %s4505_s15 = scalar_lea.sflag [#allocation5], %s4504_s4 }
 0x803   : > { %p5311_p6 = pnand %p9656_p3, %p9655_p11 }
 0x805   : > { %6312 = dma.done.wait (!%p5311_p6), %s4505_s15, 3072  }
 0x806   : > { %6314 = vsyncadd (!%p5311_p6), %s4505_s15, 4294964224  ;;  %p49_p0 = scmp.ge.s32.totalorder %s6831_s16, 4   ;;  %s9657_s27 = smov %s6321_s28 }
 0x807   : > { %s9658_s28 = smov %s6325_s6  ;;  %s9659_s6 = smov %s6843_s25 }
 0x808   : > { %s9660_s9 = smov %s6831_s16  ;;  %51 = sbr.rel (!%p49_p0) target bundleno = 37 (0x25), region = 234 }
 0x80f   :  { %4510 = vsyncpa [#allocation4], 1 }
 0x810   :  { %4512 = vsyncpa [#allocation4 + $0x1], 1 }
 0x811   :  { %4513 = vsyncpa [#allocation7], 1 }
 0x812   :  { %4515 = vsyncpa [#allocation7 + $0x1], 1 }
 0x813   :  { %4516 = vsyncpa [#allocation10], 1 }
 0x814   :  { %4517 = vsyncpa [#allocation13], 1 }
 0x815   :  { %4518 = vsyncpa [#allocation16], 1 }
 0x816   :  { %4519 = vsyncpa [#allocation19], 1 }
 0x817   :  { %4520 = vsyncpa [#allocation22], 1 }
 0x818   :  { %4521 = vsyncpa [#allocation25], 1 }
 0x819   :  { %4522 = vsyncpa [#allocation28], 1 }
 0x81a   :  { %4523 = vsyncpa [#allocation5], 1 }
 0x81b   :  { %4525 = vsyncpa [#allocation5 + $0x1], 1 }

</bundles_post_ra>
